<compile_context>
chip_gen: v6e
topology: v6e:2x2x1
jax: 0.10.0
libtpu: 0.0.40
codegen_flags: <defaults>
</compile_context>

<pallas_src>
import jax
import jax.numpy as jnp
from jax.experimental import pallas as pl
from jax.experimental.pallas import tpu as pltpu

LEAKY_SLOPE = 0.01   # F.leaky_relu default negative_slope
BN_EPS = 1e-5
LANE = 128


def _round_up(x, m):
    return (x + m - 1) // m * m


def _pick_tile_h(H):
    # Prefer 8 output rows per tile (M = 8*W per matmul); fall back to a smaller
    # divisor, or a single tile for odd H.
    for th in (8, 4, 2):
        if H % th == 0:
            return th
    return H


def arm_kernel(x_ref, w1_ref, b1_ref, w2_ref, b2_ref, out_ref, col, ssum):
    # x_ref  : (1, H, W, Cinp)   bf16  full NHWC image (resident across tiles)
    # w1_ref : (9*Cinp, Coutp)   bf16  3x3 conv weight, BN1 scale folded in
    # b1_ref : (1, Coutp)        f32   BN1 folded bias
    # w2_ref : (Coutp, Coutp)    bf16  1x1 conv weight, BN2 scale folded in
    # b2_ref : (1, Coutp)        f32   BN2 folded bias
    # out_ref: (1, H*W, Coutp)   f32   resident output slab (doubles as feat buffer)
    # col    : (TH, W, 9*Cinp)   bf16  per-tile im2col LHS scratch
    # ssum   : (1, Coutp)        f32   running channel-sum for the global pool
    t = pl.program_id(1)
    n_t = pl.num_programs(1)
    _, H, W, Cinp = x_ref.shape
    TH = col.shape[0]
    r0 = t * TH                               # first output row of this tile

    def write_taps(kh, dst, band):
        # band[i, c, :] holds the x row feeding output row (dst + i) at tap kh.
        rows = band.shape[0]
        base = kh * 3
        zcol = jnp.zeros((rows, 1, Cinp), col.dtype)
        # kw = 1 (center): full-width, lane-aligned store
        col[dst:dst + rows, :, (base + 1) * Cinp:(base + 2) * Cinp] = band
        # kw = 0 (left tap): output col c reads x col c-1; col 0 is the zero halo
        col[dst:dst + rows, 1:W, base * Cinp:(base + 1) * Cinp] = band[:, :W - 1, :]
        col[dst:dst + rows, 0:1, base * Cinp:(base + 1) * Cinp] = zcol
        # kw = 2 (right tap): output col c reads x col c+1; col W-1 is the zero halo
        col[dst:dst + rows, :W - 1, (base + 2) * Cinp:(base + 3) * Cinp] = band[:, 1:, :]
        col[dst:dst + rows, W - 1:W, (base + 2) * Cinp:(base + 3) * Cinp] = zcol

    # ---- im2col for this tile, straight from the resident x block ----
    # kh = 1 (center row band): always in bounds.
    write_taps(1, 0, x_ref[0, pl.ds(r0, TH), :, :])

    # kh = 0 (row above): zero halo only on the first tile.
    @pl.when(t > 0)
    def _():
        write_taps(0, 0, x_ref[0, pl.ds(r0 - 1, TH), :, :])

    @pl.when(t == 0)
    def _():
        col[0:1, :, 0:3 * Cinp] = jnp.zeros((1, W, 3 * Cinp), col.dtype)
        write_taps(0, 1, x_ref[0, 0:TH - 1, :, :])

    # kh = 2 (row below): zero halo only on the last tile.
    @pl.when(t < n_t - 1)
    def _():
        write_taps(2, 0, x_ref[0, pl.ds(r0 + 1, TH), :, :])

    @pl.when(t == n_t - 1)
    def _():
        col[TH - 1:TH, :, 6 * Cinp:9 * Cinp] = jnp.zeros((1, W, 3 * Cinp), col.dtype)
        write_taps(2, 0, x_ref[0, H - TH + 1:H, :, :])

    # ---- one deep-K MXU matmul for this tile (bf16 in, f32 accumulate) ----
    lhs = col[...].reshape(TH * W, 9 * Cinp)
    acc = jnp.dot(lhs, w1_ref[...], preferred_element_type=jnp.float32)

    # ---- BN1 bias + leaky_relu in f32 ----
    feat = acc + b1_ref[...]                                   # (TH*W, Coutp)
    feat = jnp.where(feat >= 0, feat, LEAKY_SLOPE * feat)

    # ---- stash the feat tile into the resident output block ----
    out_ref[0, pl.ds(r0 * W, TH * W), :] = feat

    # ---- running channel-sum for the global average pool ----
    @pl.when(t == 0)
    def _():
        ssum[...] = jnp.zeros_like(ssum)

    ssum[...] += jnp.sum(feat, axis=0, keepdims=True)

    # ---- last tile: pool -> 1x1 conv -> BN2 -> sigmoid -> broadcast multiply ----
    @pl.when(t == n_t - 1)
    def _():
        pooled = ssum[...] * jnp.float32(1.0 / (H * W))        # (1, Coutp) f32
        z = jnp.dot(pooled.astype(jnp.bfloat16), w2_ref[...],
                    preferred_element_type=jnp.float32)
        atten = jax.nn.sigmoid(z + b2_ref[...])                # (1, Coutp)
        out_ref[0] = (out_ref[0] * atten).astype(out_ref.dtype)


def attention_refinement_module(x_nchw, params):
    """x_nchw: (B, Cin, H, W) float32. Returns (B, Cout, H, W) float32."""
    w1, bn1_scale, bn1_bias, w2, bn2_scale, bn2_bias = params
    B, Cin, H, W = x_nchw.shape
    Cout = w1.shape[-1]
    assert H >= 2 and W >= 2, "spatial dims must be >= 2"

    Cinp = _round_up(Cin, LANE)                # lane-aligned im2col stores
    Coutp = _round_up(Cout, LANE)              # lane-dense feat / output stores
    TH = _pick_tile_h(H)
    n_tiles = H // TH

    # ---- one-time weight prep (would live in module init in deployment) ----
    w1f = w1 * bn1_scale.reshape(1, 1, 1, Cout)                 # fold BN1 scale
    w1f = jnp.pad(w1f, ((0, 0), (0, 0), (0, Cinp - Cin), (0, Coutp - Cout)))
    w1f = w1f.reshape(9 * Cinp, Coutp).astype(jnp.bfloat16)
    b1f = jnp.pad(bn1_bias.reshape(1, Cout), ((0, 0), (0, Coutp - Cout)))
    w2f = jnp.pad(w2 * bn2_scale.reshape(1, Cout),              # fold BN2 scale
                  ((0, Coutp - Cout), (0, Coutp - Cout))).astype(jnp.bfloat16)
    b2f = jnp.pad(bn2_bias.reshape(1, Cout), ((0, 0), (0, Coutp - Cout)))

    # NCHW -> NHWC, bf16, channel-padded: halves the activation HBM read and
    # makes every im2col store lane-aligned.
    # TODO(synk): if the surrounding network were NHWC/bf16 end-to-end, this
    # transpose/cast (and the inverse at the end) would disappear.
    x_nhwc = jnp.transpose(x_nchw, (0, 2, 3, 1)).astype(jnp.bfloat16)
    if Cinp != Cin:
        x_nhwc = jnp.pad(x_nhwc, ((0, 0), (0, 0), (0, 0), (0, Cinp - Cin)))

    # VMEM budget computed from the actual block/scratch sizes (+ headroom),
    # instead of a hard-coded limit.
    blocks = 2 * (H * W * Cinp * 2             # x block (bf16, double-buffered)
                  + 9 * Cinp * Coutp * 2       # w1 (bf16)
                  + Coutp * 4                  # b1
                  + Coutp * Coutp * 2          # w2 (bf16)
                  + Coutp * 4                  # b2
                  + H * W * Coutp * 4)         # out block (f32)
    scratch = TH * W * 9 * Cinp * 2 + Coutp * 4
    vmem_limit = max(int((blocks + scratch) * 1.25) + (2 << 20), 8 << 20)

    out_flat = pl.pallas_call(
        arm_kernel,
        out_shape=jax.ShapeDtypeStruct((B, H * W, Coutp), jnp.float32),
        grid_spec=pltpu.PrefetchScalarGridSpec(
            num_scalar_prefetch=0,
            grid=(B, n_tiles),
            in_specs=[
                # x and out ignore the tile axis -> resident in VMEM across it.
                pl.BlockSpec((1, H, W, Cinp), lambda b, t: (b, 0, 0, 0)),
                pl.BlockSpec((9 * Cinp, Coutp), lambda b, t: (0, 0)),
                pl.BlockSpec((1, Coutp), lambda b, t: (0, 0)),
                pl.BlockSpec((Coutp, Coutp), lambda b, t: (0, 0)),
                pl.BlockSpec((1, Coutp), lambda b, t: (0, 0)),
            ],
            out_specs=pl.BlockSpec((1, H * W, Coutp), lambda b, t: (b, 0, 0)),
            scratch_shapes=[
                pltpu.VMEM((TH, W, 9 * Cinp), jnp.bfloat16),   # per-tile im2col LHS
                pltpu.VMEM((1, Coutp), jnp.float32),           # pool channel-sum
            ],
        ),
        compiler_params=pltpu.CompilerParams(
            # TODO(synk): shard the tile axis across v7x's two TensorCores at B=1
            # (cross-core pool-sum reduction via CMEM) instead of batch-only parallel.
            dimension_semantics=("parallel", "arbitrary"),
            vmem_limit_bytes=vmem_limit,
        ),
    )(x_nhwc, w1f, b1f, w2f, b2f)

    out = out_flat.reshape(B, H, W, Coutp)     # metadata-only reshape
    if Coutp != Cout:
        out = out[..., :Cout]
    return jnp.transpose(out, (0, 3, 1, 2))    # back to NCHW (module contract)


def init_params(key, in_chan, out_chan):
    """Deterministic synthetic parameters matching the PyTorch module shapes."""
    k1, k2, k3, k4 = jax.random.split(key, 4)
    # kaiming_normal_(a=1): gain = sqrt(2/(1+1)) = 1, std = 1/sqrt(fan_in)
    w1 = (jax.random.normal(k1, (3, 3, in_chan, out_chan), jnp.float32)
          / jnp.sqrt(in_chan * 9))
    w2 = (jax.random.normal(k2, (out_chan, out_chan), jnp.float32)
          / jnp.sqrt(out_chan))

    # Inference-mode BatchNorm folded to scale/bias (randomized running stats so
    # the fold is actually exercised).
    def bn_fold(k):
        kg, kb, km, kv = jax.random.split(k, 4)
        gamma = 1.0 + 0.1 * jax.random.normal(kg, (out_chan,), jnp.float32)
        beta = 0.1 * jax.random.normal(kb, (out_chan,), jnp.float32)
        mean = 0.1 * jax.random.normal(km, (out_chan,), jnp.float32)
        var = jnp.abs(1.0 + 0.1 * jax.random.normal(kv, (out_chan,), jnp.float32))
        scale = gamma / jnp.sqrt(var + BN_EPS)
        bias = beta - mean * scale
        return scale, bias

    bn1_scale, bn1_bias = bn_fold(k3)
    bn2_scale, bn2_bias = bn_fold(k4)
    return w1, bn1_scale, bn1_bias, w2, bn2_scale, bn2_bias


def reference_jax(x_nchw, params):
    """Pure-JAX f32 reference for sanity checking."""
    w1, s1, b1, w2, s2, b2 = params
    x = jnp.transpose(x_nchw, (0, 2, 3, 1))  # NHWC
    feat = jax.lax.conv_general_dilated(
        x, w1, window_strides=(1, 1), padding="SAME",
        dimension_numbers=("NHWC", "HWIO", "NHWC"))
    feat = feat * s1.reshape(1, 1, 1, -1) + b1.reshape(1, 1, 1, -1)
    feat = jnp.where(feat >= 0, feat, LEAKY_SLOPE * feat)
    atten = jnp.mean(feat, axis=(1, 2), keepdims=True)          # (B,1,1,Cout)
    atten = jnp.einsum("bijc,cd->bijd", atten, w2)
    atten = atten * s2.reshape(1, 1, 1, -1) + b2.reshape(1, 1, 1, -1)
    atten = jax.nn.sigmoid(atten)
    out = feat * atten
    return jnp.transpose(out, (0, 3, 1, 2))


if __name__ == "__main__":
    B, Cin, H, W = 2, 4, 16, 16   # small demo shapes (H=16, TH=8 -> 2 spatial tiles)
    Cout = 8

    key = jax.random.PRNGKey(0)
    kx, kp = jax.random.split(key)
    x = jax.random.normal(kx, (B, Cin, H, W), jnp.float32)
    params = init_params(kp, Cin, Cout)

    arm = jax.jit(attention_refinement_module)
    out = jax.block_until_ready(arm(x, params))

    ref = reference_jax(x, params)
    assert out.shape == (B, Cout, H, W)
    # MXU operands are bf16 (f32 accumulation), so tolerance is loosened vs the
    # pure-f32 reference.
    max_err = float(jnp.max(jnp.abs(out - ref)))
    assert jnp.allclose(out, ref, atol=2e-2, rtol=2e-2), (
        f"mismatch vs JAX reference (max abs err {max_err:.3e})")

    print("KERNEL_OK")
</pallas_src>

<mosaic_0001>
module attributes {stable_mosaic.version = 11 : i64} {
  func.func @arm_kernel(%arg0: i32, %arg1: i32, %arg2: memref<1x16x16x128xbf16, #tpu.memory_space<vmem>>, %arg3: memref<1152x128xbf16, #tpu.memory_space<vmem>>, %arg4: memref<1x128xf32, #tpu.memory_space<vmem>>, %arg5: memref<128x128xbf16, #tpu.memory_space<vmem>>, %arg6: memref<1x128xf32, #tpu.memory_space<vmem>>, %arg7: memref<1x256x128xf32, #tpu.memory_space<vmem>>, %arg8: memref<8x16x1152xbf16, #tpu.memory_space<vmem>>, %arg9: memref<1x128xf32, #tpu.memory_space<vmem>>) attributes {dimension_semantics = [#tpu.dimension_semantics<parallel>, #tpu.dimension_semantics<arbitrary>], iteration_bounds = array<i64: 2, 2>, scalar_prefetch = 0 : i64, scratch_operands = 2 : i64, tpu.core_type = #tpu.core_type<tc>, window_params = [{transform_indices = @transform_0, window_bounds = array<i64: 1, 16, 16, 128>}, {pipeline_mode = #tpu.pipeline_mode<synchronous>, transform_indices = @transform_1, window_bounds = array<i64: 1152, 128>}, {pipeline_mode = #tpu.pipeline_mode<synchronous>, transform_indices = @transform_2, window_bounds = array<i64: 1, 128>}, {pipeline_mode = #tpu.pipeline_mode<synchronous>, transform_indices = @transform_3, window_bounds = array<i64: 128, 128>}, {pipeline_mode = #tpu.pipeline_mode<synchronous>, transform_indices = @transform_4, window_bounds = array<i64: 1, 128>}, {transform_indices = @transform_5, window_bounds = array<i64: 1, 256, 128>}]} {
    %c8_i32 = arith.constant 8 : i32
    %0 = arith.muli %arg1, %c8_i32 : i32
    %c0 = arith.constant 0 : index
    %1 = arith.index_cast %0 : i32 to index
    %c0_0 = arith.constant 0 : index
    %c0_1 = arith.constant 0 : index
    %2 = vector.load %arg2[%c0, %1, %c0_0, %c0_1] : memref<1x16x16x128xbf16, #tpu.memory_space<vmem>>, vector<1x8x16x128xbf16>
    %3 = vector.shape_cast %2 : vector<1x8x16x128xbf16> to vector<8x16x128xbf16>
    %cst = arith.constant 0.000000e+00 : bf16
    %4 = vector.broadcast %cst : bf16 to vector<8x1x128xbf16>
    %c0_2 = arith.constant 0 : index
    %c0_3 = arith.constant 0 : index
    %c512 = arith.constant 512 : index
    %5 = vector.load %arg8[%c0_2, %c0_3, %c512] : memref<8x16x1152xbf16, #tpu.memory_space<vmem>>, vector<8x16x128xbf16>
    tpu.vector_store %arg8[%c0_2, %c0_3, %c512], %3 {strides = array<i32>} : memref<8x16x1152xbf16, #tpu.memory_space<vmem>>, vector<8x16x128xbf16>,
    %6 = vector.extract_strided_slice %3 {offsets = [0, 0, 0], sizes = [8, 15, 128], strides = [1, 1, 1]} : vector<8x16x128xbf16> to vector<8x15x128xbf16>
    %c0_4 = arith.constant 0 : index
    %c1 = arith.constant 1 : index
    %c384 = arith.constant 384 : index
    %7 = vector.load %arg8[%c0_4, %c1, %c384] : memref<8x16x1152xbf16, #tpu.memory_space<vmem>>, vector<8x15x128xbf16>
    tpu.vector_store %arg8[%c0_4, %c1, %c384], %6 {strides = array<i32>} : memref<8x16x1152xbf16, #tpu.memory_space<vmem>>, vector<8x15x128xbf16>,
    %c0_5 = arith.constant 0 : index
    %c0_6 = arith.constant 0 : index
    %c384_7 = arith.constant 384 : index
    %8 = vector.load %arg8[%c0_5, %c0_6, %c384_7] : memref<8x16x1152xbf16, #tpu.memory_space<vmem>>, vector<8x1x128xbf16>
    tpu.vector_store %arg8[%c0_5, %c0_6, %c384_7], %4 {strides = array<i32>} : memref<8x16x1152xbf16, #tpu.memory_space<vmem>>, vector<8x1x128xbf16>,
    %9 = vector.extract_strided_slice %3 {offsets = [0, 1, 0], sizes = [8, 15, 128], strides = [1, 1, 1]} : vector<8x16x128xbf16> to vector<8x15x128xbf16>
    %c0_8 = arith.constant 0 : index
    %c0_9 = arith.constant 0 : index
    %c640 = arith.constant 640 : index
    %10 = vector.load %arg8[%c0_8, %c0_9, %c640] : memref<8x16x1152xbf16, #tpu.memory_space<vmem>>, vector<8x15x128xbf16>
    tpu.vector_store %arg8[%c0_8, %c0_9, %c640], %9 {strides = array<i32>} : memref<8x16x1152xbf16, #tpu.memory_space<vmem>>, vector<8x15x128xbf16>,
    %c0_10 = arith.constant 0 : index
    %c15 = arith.constant 15 : index
    %c640_11 = arith.constant 640 : index
    %11 = vector.load %arg8[%c0_10, %c15, %c640_11] : memref<8x16x1152xbf16, #tpu.memory_space<vmem>>, vector<8x1x128xbf16>
    tpu.vector_store %arg8[%c0_10, %c15, %c640_11], %4 {strides = array<i32>} : memref<8x16x1152xbf16, #tpu.memory_space<vmem>>, vector<8x1x128xbf16>,
    %c0_i32 = arith.constant 0 : i32
    %12 = arith.cmpi sgt, %arg1, %c0_i32 : i32
    %13 = arith.extui %12 : i1 to i32
    %c0_i32_12 = arith.constant 0 : i32
    %14 = arith.cmpi ne, %13, %c0_i32_12 : i32
    scf.if %14 {
      %c1_i32_39 = arith.constant 1 : i32
      %52 = arith.subi %0, %c1_i32_39 : i32
      %c0_40 = arith.constant 0 : index
      %53 = arith.index_cast %52 : i32 to index
      %c0_41 = arith.constant 0 : index
      %c0_42 = arith.constant 0 : index
      %54 = vector.load %arg2[%c0_40, %53, %c0_41, %c0_42] : memref<1x16x16x128xbf16, #tpu.memory_space<vmem>>, vector<1x8x16x128xbf16>
      %55 = vector.shape_cast %54 : vector<1x8x16x128xbf16> to vector<8x16x128xbf16>
      %cst_43 = arith.constant 0.000000e+00 : bf16
      %56 = vector.broadcast %cst_43 : bf16 to vector<8x1x128xbf16>
      %c0_44 = arith.constant 0 : index
      %c0_45 = arith.constant 0 : index
      %c128 = arith.constant 128 : index
      %57 = vector.load %arg8[%c0_44, %c0_45, %c128] : memref<8x16x1152xbf16, #tpu.memory_space<vmem>>, vector<8x16x128xbf16>
      tpu.vector_store %arg8[%c0_44, %c0_45, %c128], %55 {strides = array<i32>} : memref<8x16x1152xbf16, #tpu.memory_space<vmem>>, vector<8x16x128xbf16>,
      %58 = vector.extract_strided_slice %55 {offsets = [0, 0, 0], sizes = [8, 15, 128], strides = [1, 1, 1]} : vector<8x16x128xbf16> to vector<8x15x128xbf16>
      %c0_46 = arith.constant 0 : index
      %c1_47 = arith.constant 1 : index
      %c0_48 = arith.constant 0 : index
      %59 = vector.load %arg8[%c0_46, %c1_47, %c0_48] : memref<8x16x1152xbf16, #tpu.memory_space<vmem>>, vector<8x15x128xbf16>
      tpu.vector_store %arg8[%c0_46, %c1_47, %c0_48], %58 {strides = array<i32>} : memref<8x16x1152xbf16, #tpu.memory_space<vmem>>, vector<8x15x128xbf16>,
      %c0_49 = arith.constant 0 : index
      %c0_50 = arith.constant 0 : index
      %c0_51 = arith.constant 0 : index
      %60 = vector.load %arg8[%c0_49, %c0_50, %c0_51] : memref<8x16x1152xbf16, #tpu.memory_space<vmem>>, vector<8x1x128xbf16>
      tpu.vector_store %arg8[%c0_49, %c0_50, %c0_51], %56 {strides = array<i32>} : memref<8x16x1152xbf16, #tpu.memory_space<vmem>>, vector<8x1x128xbf16>,
      %61 = vector.extract_strided_slice %55 {offsets = [0, 1, 0], sizes = [8, 15, 128], strides = [1, 1, 1]} : vector<8x16x128xbf16> to vector<8x15x128xbf16>
      %c0_52 = arith.constant 0 : index
      %c0_53 = arith.constant 0 : index
      %c256 = arith.constant 256 : index
      %62 = vector.load %arg8[%c0_52, %c0_53, %c256] : memref<8x16x1152xbf16, #tpu.memory_space<vmem>>, vector<8x15x128xbf16>
      tpu.vector_store %arg8[%c0_52, %c0_53, %c256], %61 {strides = array<i32>} : memref<8x16x1152xbf16, #tpu.memory_space<vmem>>, vector<8x15x128xbf16>,
      %c0_54 = arith.constant 0 : index
      %c15_55 = arith.constant 15 : index
      %c256_56 = arith.constant 256 : index
      %63 = vector.load %arg8[%c0_54, %c15_55, %c256_56] : memref<8x16x1152xbf16, #tpu.memory_space<vmem>>, vector<8x1x128xbf16>
      tpu.vector_store %arg8[%c0_54, %c15_55, %c256_56], %56 {strides = array<i32>} : memref<8x16x1152xbf16, #tpu.memory_space<vmem>>, vector<8x1x128xbf16>,
    } else {
    }
    %c0_i32_13 = arith.constant 0 : i32
    %15 = arith.cmpi eq, %arg1, %c0_i32_13 : i32
    %16 = arith.extui %15 : i1 to i32
    %c0_i32_14 = arith.constant 0 : i32
    %17 = arith.cmpi ne, %16, %c0_i32_14 : i32
    scf.if %17 {
      %cst_39 = arith.constant 0.000000e+00 : bf16
      %52 = vector.broadcast %cst_39 : bf16 to vector<1x16x384xbf16>
      %c0_40 = arith.constant 0 : index
      %c0_41 = arith.constant 0 : index
      %c0_42 = arith.constant 0 : index
      %53 = vector.load %arg8[%c0_40, %c0_41, %c0_42] : memref<8x16x1152xbf16, #tpu.memory_space<vmem>>, vector<1x16x384xbf16>
      tpu.vector_store %arg8[%c0_40, %c0_41, %c0_42], %52 {strides = array<i32>} : memref<8x16x1152xbf16, #tpu.memory_space<vmem>>, vector<1x16x384xbf16>,
      %c0_43 = arith.constant 0 : index
      %c0_44 = arith.constant 0 : index
      %c0_45 = arith.constant 0 : index
      %c0_46 = arith.constant 0 : index
      %54 = vector.load %arg2[%c0_43, %c0_44, %c0_45, %c0_46] : memref<1x16x16x128xbf16, #tpu.memory_space<vmem>>, vector<1x7x16x128xbf16>
      %55 = vector.shape_cast %54 : vector<1x7x16x128xbf16> to vector<7x16x128xbf16>
      %cst_47 = arith.constant 0.000000e+00 : bf16
      %56 = vector.broadcast %cst_47 : bf16 to vector<7x1x128xbf16>
      %c1_48 = arith.constant 1 : index
      %c0_49 = arith.constant 0 : index
      %c128 = arith.constant 128 : index
      %57 = vector.load %arg8[%c1_48, %c0_49, %c128] : memref<8x16x1152xbf16, #tpu.memory_space<vmem>>, vector<7x16x128xbf16>
      tpu.vector_store %arg8[%c1_48, %c0_49, %c128], %55 {strides = array<i32>} : memref<8x16x1152xbf16, #tpu.memory_space<vmem>>, vector<7x16x128xbf16>,
      %58 = vector.extract_strided_slice %55 {offsets = [0, 0, 0], sizes = [7, 15, 128], strides = [1, 1, 1]} : vector<7x16x128xbf16> to vector<7x15x128xbf16>
      %c1_50 = arith.constant 1 : index
      %c1_51 = arith.constant 1 : index
      %c0_52 = arith.constant 0 : index
      %59 = vector.load %arg8[%c1_50, %c1_51, %c0_52] : memref<8x16x1152xbf16, #tpu.memory_space<vmem>>, vector<7x15x128xbf16>
      tpu.vector_store %arg8[%c1_50, %c1_51, %c0_52], %58 {strides = array<i32>} : memref<8x16x1152xbf16, #tpu.memory_space<vmem>>, vector<7x15x128xbf16>,
      %c1_53 = arith.constant 1 : index
      %c0_54 = arith.constant 0 : index
      %c0_55 = arith.constant 0 : index
      %60 = vector.load %arg8[%c1_53, %c0_54, %c0_55] : memref<8x16x1152xbf16, #tpu.memory_space<vmem>>, vector<7x1x128xbf16>
      tpu.vector_store %arg8[%c1_53, %c0_54, %c0_55], %56 {strides = array<i32>} : memref<8x16x1152xbf16, #tpu.memory_space<vmem>>, vector<7x1x128xbf16>,
      %61 = vector.extract_strided_slice %55 {offsets = [0, 1, 0], sizes = [7, 15, 128], strides = [1, 1, 1]} : vector<7x16x128xbf16> to vector<7x15x128xbf16>
      %c1_56 = arith.constant 1 : index
      %c0_57 = arith.constant 0 : index
      %c256 = arith.constant 256 : index
      %62 = vector.load %arg8[%c1_56, %c0_57, %c256] : memref<8x16x1152xbf16, #tpu.memory_space<vmem>>, vector<7x15x128xbf16>
      tpu.vector_store %arg8[%c1_56, %c0_57, %c256], %61 {strides = array<i32>} : memref<8x16x1152xbf16, #tpu.memory_space<vmem>>, vector<7x15x128xbf16>,
      %c1_58 = arith.constant 1 : index
      %c15_59 = arith.constant 15 : index
      %c256_60 = arith.constant 256 : index
      %63 = vector.load %arg8[%c1_58, %c15_59, %c256_60] : memref<8x16x1152xbf16, #tpu.memory_space<vmem>>, vector<7x1x128xbf16>
      tpu.vector_store %arg8[%c1_58, %c15_59, %c256_60], %56 {strides = array<i32>} : memref<8x16x1152xbf16, #tpu.memory_space<vmem>>, vector<7x1x128xbf16>,
    } else {
    }
    %c1_i32 = arith.constant 1 : i32
    %18 = arith.cmpi slt, %arg1, %c1_i32 : i32
    %19 = arith.extui %18 : i1 to i32
    %c0_i32_15 = arith.constant 0 : i32
    %20 = arith.cmpi ne, %19, %c0_i32_15 : i32
    scf.if %20 {
      %c1_i32_39 = arith.constant 1 : i32
      %52 = arith.addi %0, %c1_i32_39 : i32
      %c0_40 = arith.constant 0 : index
      %53 = arith.index_cast %52 : i32 to index
      %c0_41 = arith.constant 0 : index
      %c0_42 = arith.constant 0 : index
      %54 = vector.load %arg2[%c0_40, %53, %c0_41, %c0_42] : memref<1x16x16x128xbf16, #tpu.memory_space<vmem>>, vector<1x8x16x128xbf16>
      %55 = vector.shape_cast %54 : vector<1x8x16x128xbf16> to vector<8x16x128xbf16>
      %cst_43 = arith.constant 0.000000e+00 : bf16
      %56 = vector.broadcast %cst_43 : bf16 to vector<8x1x128xbf16>
      %c0_44 = arith.constant 0 : index
      %c0_45 = arith.constant 0 : index
      %c896 = arith.constant 896 : index
      %57 = vector.load %arg8[%c0_44, %c0_45, %c896] : memref<8x16x1152xbf16, #tpu.memory_space<vmem>>, vector<8x16x128xbf16>
      tpu.vector_store %arg8[%c0_44, %c0_45, %c896], %55 {strides = array<i32>} : memref<8x16x1152xbf16, #tpu.memory_space<vmem>>, vector<8x16x128xbf16>,
      %58 = vector.extract_strided_slice %55 {offsets = [0, 0, 0], sizes = [8, 15, 128], strides = [1, 1, 1]} : vector<8x16x128xbf16> to vector<8x15x128xbf16>
      %c0_46 = arith.constant 0 : index
      %c1_47 = arith.constant 1 : index
      %c768 = arith.constant 768 : index
      %59 = vector.load %arg8[%c0_46, %c1_47, %c768] : memref<8x16x1152xbf16, #tpu.memory_space<vmem>>, vector<8x15x128xbf16>
      tpu.vector_store %arg8[%c0_46, %c1_47, %c768], %58 {strides = array<i32>} : memref<8x16x1152xbf16, #tpu.memory_space<vmem>>, vector<8x15x128xbf16>,
      %c0_48 = arith.constant 0 : index
      %c0_49 = arith.constant 0 : index
      %c768_50 = arith.constant 768 : index
      %60 = vector.load %arg8[%c0_48, %c0_49, %c768_50] : memref<8x16x1152xbf16, #tpu.memory_space<vmem>>, vector<8x1x128xbf16>
      tpu.vector_store %arg8[%c0_48, %c0_49, %c768_50], %56 {strides = array<i32>} : memref<8x16x1152xbf16, #tpu.memory_space<vmem>>, vector<8x1x128xbf16>,
      %61 = vector.extract_strided_slice %55 {offsets = [0, 1, 0], sizes = [8, 15, 128], strides = [1, 1, 1]} : vector<8x16x128xbf16> to vector<8x15x128xbf16>
      %c0_51 = arith.constant 0 : index
      %c0_52 = arith.constant 0 : index
      %c1024 = arith.constant 1024 : index
      %62 = vector.load %arg8[%c0_51, %c0_52, %c1024] : memref<8x16x1152xbf16, #tpu.memory_space<vmem>>, vector<8x15x128xbf16>
      tpu.vector_store %arg8[%c0_51, %c0_52, %c1024], %61 {strides = array<i32>} : memref<8x16x1152xbf16, #tpu.memory_space<vmem>>, vector<8x15x128xbf16>,
      %c0_53 = arith.constant 0 : index
      %c15_54 = arith.constant 15 : index
      %c1024_55 = arith.constant 1024 : index
      %63 = vector.load %arg8[%c0_53, %c15_54, %c1024_55] : memref<8x16x1152xbf16, #tpu.memory_space<vmem>>, vector<8x1x128xbf16>
      tpu.vector_store %arg8[%c0_53, %c15_54, %c1024_55], %56 {strides = array<i32>} : memref<8x16x1152xbf16, #tpu.memory_space<vmem>>, vector<8x1x128xbf16>,
    } else {
    }
    %c1_i32_16 = arith.constant 1 : i32
    %21 = arith.cmpi eq, %arg1, %c1_i32_16 : i32
    %22 = arith.extui %21 : i1 to i32
    %c0_i32_17 = arith.constant 0 : i32
    %23 = arith.cmpi ne, %22, %c0_i32_17 : i32
    scf.if %23 {
      %cst_39 = arith.constant 0.000000e+00 : bf16
      %52 = vector.broadcast %cst_39 : bf16 to vector<1x16x384xbf16>
      %c7 = arith.constant 7 : index
      %c0_40 = arith.constant 0 : index
      %c768 = arith.constant 768 : index
      %53 = vector.load %arg8[%c7, %c0_40, %c768] : memref<8x16x1152xbf16, #tpu.memory_space<vmem>>, vector<1x16x384xbf16>
      tpu.vector_store %arg8[%c7, %c0_40, %c768], %52 {strides = array<i32>} : memref<8x16x1152xbf16, #tpu.memory_space<vmem>>, vector<1x16x384xbf16>,
      %c0_41 = arith.constant 0 : index
      %c9 = arith.constant 9 : index
      %c0_42 = arith.constant 0 : index
      %c0_43 = arith.constant 0 : index
      %54 = vector.load %arg2[%c0_41, %c9, %c0_42, %c0_43] : memref<1x16x16x128xbf16, #tpu.memory_space<vmem>>, vector<1x7x16x128xbf16>
      %55 = vector.shape_cast %54 : vector<1x7x16x128xbf16> to vector<7x16x128xbf16>
      %cst_44 = arith.constant 0.000000e+00 : bf16
      %56 = vector.broadcast %cst_44 : bf16 to vector<7x1x128xbf16>
      %c0_45 = arith.constant 0 : index
      %c0_46 = arith.constant 0 : index
      %c896 = arith.constant 896 : index
      %57 = vector.load %arg8[%c0_45, %c0_46, %c896] : memref<8x16x1152xbf16, #tpu.memory_space<vmem>>, vector<7x16x128xbf16>
      tpu.vector_store %arg8[%c0_45, %c0_46, %c896], %55 {strides = array<i32>} : memref<8x16x1152xbf16, #tpu.memory_space<vmem>>, vector<7x16x128xbf16>,
      %58 = vector.extract_strided_slice %55 {offsets = [0, 0, 0], sizes = [7, 15, 128], strides = [1, 1, 1]} : vector<7x16x128xbf16> to vector<7x15x128xbf16>
      %c0_47 = arith.constant 0 : index
      %c1_48 = arith.constant 1 : index
      %c768_49 = arith.constant 768 : index
      %59 = vector.load %arg8[%c0_47, %c1_48, %c768_49] : memref<8x16x1152xbf16, #tpu.memory_space<vmem>>, vector<7x15x128xbf16>
      tpu.vector_store %arg8[%c0_47, %c1_48, %c768_49], %58 {strides = array<i32>} : memref<8x16x1152xbf16, #tpu.memory_space<vmem>>, vector<7x15x128xbf16>,
      %c0_50 = arith.constant 0 : index
      %c0_51 = arith.constant 0 : index
      %c768_52 = arith.constant 768 : index
      %60 = vector.load %arg8[%c0_50, %c0_51, %c768_52] : memref<8x16x1152xbf16, #tpu.memory_space<vmem>>, vector<7x1x128xbf16>
      tpu.vector_store %arg8[%c0_50, %c0_51, %c768_52], %56 {strides = array<i32>} : memref<8x16x1152xbf16, #tpu.memory_space<vmem>>, vector<7x1x128xbf16>,
      %61 = vector.extract_strided_slice %55 {offsets = [0, 1, 0], sizes = [7, 15, 128], strides = [1, 1, 1]} : vector<7x16x128xbf16> to vector<7x15x128xbf16>
      %c0_53 = arith.constant 0 : index
      %c0_54 = arith.constant 0 : index
      %c1024 = arith.constant 1024 : index
      %62 = vector.load %arg8[%c0_53, %c0_54, %c1024] : memref<8x16x1152xbf16, #tpu.memory_space<vmem>>, vector<7x15x128xbf16>
      tpu.vector_store %arg8[%c0_53, %c0_54, %c1024], %61 {strides = array<i32>} : memref<8x16x1152xbf16, #tpu.memory_space<vmem>>, vector<7x15x128xbf16>,
      %c0_55 = arith.constant 0 : index
      %c15_56 = arith.constant 15 : index
      %c1024_57 = arith.constant 1024 : index
      %63 = vector.load %arg8[%c0_55, %c15_56, %c1024_57] : memref<8x16x1152xbf16, #tpu.memory_space<vmem>>, vector<7x1x128xbf16>
      tpu.vector_store %arg8[%c0_55, %c15_56, %c1024_57], %56 {strides = array<i32>} : memref<8x16x1152xbf16, #tpu.memory_space<vmem>>, vector<7x1x128xbf16>,
    } else {
    }
    %c0_18 = arith.constant 0 : index
    %c0_19 = arith.constant 0 : index
    %c0_20 = arith.constant 0 : index
    %24 = vector.load %arg8[%c0_18, %c0_19, %c0_20] : memref<8x16x1152xbf16, #tpu.memory_space<vmem>>, vector<8x16x1152xbf16>
    %25 = vector.shape_cast %24 : vector<8x16x1152xbf16> to vector<128x1152xbf16>
    %c0_21 = arith.constant 0 : index
    %c0_22 = arith.constant 0 : index
    %26 = vector.load %arg3[%c0_21, %c0_22] : memref<1152x128xbf16, #tpu.memory_space<vmem>>, vector<1152x128xbf16>
    %cst_23 = arith.constant dense<0.000000e+00> : vector<128x128xf32>
    %27 = tpu.matmul %25, %26, %cst_23 {dimension_numbers = #tpu.dot_dimension_numbers<[1], [0], [0], [1], [0, 0, 1, 1], [], []>} : vector<128x1152xbf16>, vector<1152x128xbf16>, vector<128x128xf32> -> vector<128x128xf32>
    %c0_24 = arith.constant 0 : index
    %c0_25 = arith.constant 0 : index
    %28 = vector.load %arg4[%c0_24, %c0_25] : memref<1x128xf32, #tpu.memory_space<vmem>>, vector<1x128xf32>
    %29 = vector.broadcast %28 : vector<1x128xf32> to vector<128x128xf32>
    %30 = arith.addf %27, %29 : vector<128x128xf32>
    %cst_26 = arith.constant 0.000000e+00 : f32
    %31 = vector.broadcast %cst_26 : f32 to vector<128x128xf32>
    %32 = arith.cmpf oge, %30, %31 : vector<128x128xf32>
    %cst_27 = arith.constant 0.00999999977 : f32
    %33 = vector.broadcast %cst_27 : f32 to vector<128x128xf32>
    %34 = arith.mulf %33, %30 : vector<128x128xf32>
    %35 = arith.select %32, %30, %34 : vector<128x128xi1>, vector<128x128xf32>
    %c16_i32 = arith.constant 16 : i32
    %36 = arith.muli %0, %c16_i32 : i32
    %c0_28 = arith.constant 0 : index
    %37 = arith.index_cast %36 : i32 to index
    %c0_29 = arith.constant 0 : index
    %38 = vector.load %arg7[%c0_28, %37, %c0_29] : memref<1x256x128xf32, #tpu.memory_space<vmem>>, vector<1x128x128xf32>
    %39 = vector.shape_cast %38 : vector<1x128x128xf32> to vector<128x128xf32>
    %40 = vector.shape_cast %35 : vector<128x128xf32> to vector<1x128x128xf32>
    tpu.vector_store %arg7[%c0_28, %37, %c0_29], %40 {strides = array<i32>} : memref<1x256x128xf32, #tpu.memory_space<vmem>>, vector<1x128x128xf32>,
    %c0_i32_30 = arith.constant 0 : i32
    %41 = arith.cmpi eq, %arg1, %c0_i32_30 : i32
    %42 = arith.extui %41 : i1 to i32
    %c0_i32_31 = arith.constant 0 : i32
    %43 = arith.cmpi ne, %42, %c0_i32_31 : i32
    scf.if %43 {
      %cst_39 = arith.constant 0.000000e+00 : f32
      %52 = vector.broadcast %cst_39 : f32 to vector<1x128xf32>
      %c0_40 = arith.constant 0 : index
      %c0_41 = arith.constant 0 : index
      %53 = vector.load %arg9[%c0_40, %c0_41] : memref<1x128xf32, #tpu.memory_space<vmem>>, vector<1x128xf32>
      tpu.vector_store %arg9[%c0_40, %c0_41], %52 {strides = array<i32>} : memref<1x128xf32, #tpu.memory_space<vmem>>, vector<1x128xf32>,
    } else {
    }
    %c0_32 = arith.constant 0 : index
    %c0_33 = arith.constant 0 : index
    %44 = vector.load %arg9[%c0_32, %c0_33] : memref<1x128xf32, #tpu.memory_space<vmem>>, vector<1x128xf32>
    %cst_34 = arith.constant dense<0.000000e+00> : vector<128xf32>
    %45 = vector.multi_reduction <add>, %35, %cst_34 [0] : vector<128x128xf32> to vector<128xf32>
    %46 = vector.shape_cast %45 : vector<128xf32> to vector<1x128xf32>
    %47 = arith.addf %44, %46 : vector<1x128xf32>
    %c0_35 = arith.constant 0 : index
    %c0_36 = arith.constant 0 : index
    %48 = vector.load %arg9[%c0_35, %c0_36] : memref<1x128xf32, #tpu.memory_space<vmem>>, vector<1x128xf32>
    tpu.vector_store %arg9[%c0_35, %c0_36], %47 {strides = array<i32>} : memref<1x128xf32, #tpu.memory_space<vmem>>, vector<1x128xf32>,
    %c1_i32_37 = arith.constant 1 : i32
    %49 = arith.cmpi eq, %arg1, %c1_i32_37 : i32
    %50 = arith.extui %49 : i1 to i32
    %c0_i32_38 = arith.constant 0 : i32
    %51 = arith.cmpi ne, %50, %c0_i32_38 : i32
    scf.if %51 {
      %c0_39 = arith.constant 0 : index
      %c0_40 = arith.constant 0 : index
      %52 = vector.load %arg9[%c0_39, %c0_40] : memref<1x128xf32, #tpu.memory_space<vmem>>, vector<1x128xf32>
      %cst_41 = arith.constant 3.906250e-03 : f32
      %53 = vector.broadcast %cst_41 : f32 to vector<1x128xf32>
      %54 = arith.mulf %52, %53 : vector<1x128xf32>
      %55 = arith.truncf %54 : vector<1x128xf32> to vector<1x128xbf16>
      %c0_42 = arith.constant 0 : index
      %c0_43 = arith.constant 0 : index
      %56 = vector.load %arg5[%c0_42, %c0_43] : memref<128x128xbf16, #tpu.memory_space<vmem>>, vector<128x128xbf16>
      %cst_44 = arith.constant dense<0.000000e+00> : vector<1x128xf32>
      %57 = tpu.matmul %55, %56, %cst_44 {dimension_numbers = #tpu.dot_dimension_numbers<[1], [0], [0], [1], [0, 0, 1, 1], [], []>} : vector<1x128xbf16>, vector<128x128xbf16>, vector<1x128xf32> -> vector<1x128xf32>
      %c0_45 = arith.constant 0 : index
      %c0_46 = arith.constant 0 : index
      %58 = vector.load %arg6[%c0_45, %c0_46] : memref<1x128xf32, #tpu.memory_space<vmem>>, vector<1x128xf32>
      %59 = arith.addf %57, %58 : vector<1x128xf32>
      %60 = arith.negf %59 : vector<1x128xf32>
      %61 = math.exp %60 : vector<1x128xf32>
      %cst_47 = arith.constant 1.000000e+00 : f32
      %62 = vector.broadcast %cst_47 : f32 to vector<1x128xf32>
      %63 = arith.addf %62, %61 : vector<1x128xf32>
      %64 = arith.divf %62, %63 : vector<1x128xf32>
      %c0_48 = arith.constant 0 : index
      %c0_49 = arith.constant 0 : index
      %c0_50 = arith.constant 0 : index
      %65 = vector.load %arg7[%c0_48, %c0_49, %c0_50] : memref<1x256x128xf32, #tpu.memory_space<vmem>>, vector<1x256x128xf32>
      %66 = vector.shape_cast %65 : vector<1x256x128xf32> to vector<256x128xf32>
      %67 = vector.broadcast %64 : vector<1x128xf32> to vector<256x128xf32>
      %68 = arith.mulf %66, %67 : vector<256x128xf32>
      %c0_51 = arith.constant 0 : index
      %c0_52 = arith.constant 0 : index
      %c0_53 = arith.constant 0 : index
      %69 = vector.load %arg7[%c0_51, %c0_52, %c0_53] : memref<1x256x128xf32, #tpu.memory_space<vmem>>, vector<1x256x128xf32>
      %70 = vector.shape_cast %69 : vector<1x256x128xf32> to vector<256x128xf32>
      %71 = vector.shape_cast %68 : vector<256x128xf32> to vector<1x256x128xf32>
      tpu.vector_store %arg7[%c0_51, %c0_52, %c0_53], %71 {strides = array<i32>} : memref<1x256x128xf32, #tpu.memory_space<vmem>>, vector<1x256x128xf32>,
    } else {
    }
    return
  }
  func.func @transform_0(%arg0: i32, %arg1: i32) -> (i32, i32, i32, i32) {
    %c0_i32 = arith.constant 0 : i32
    %c0_i32_0 = arith.constant 0 : i32
    %c0_i32_1 = arith.constant 0 : i32
    %c0_i32_2 = arith.constant 0 : i32
    return %arg0, %c0_i32, %c0_i32_0, %c0_i32_1 : i32, i32, i32, i32
  }
  func.func @transform_1(%arg0: i32, %arg1: i32) -> (i32, i32) {
    %c0_i32 = arith.constant 0 : i32
    %c0_i32_0 = arith.constant 0 : i32
    %c0_i32_1 = arith.constant 0 : i32
    return %c0_i32, %c0_i32_0 : i32, i32
  }
  func.func @transform_2(%arg0: i32, %arg1: i32) -> (i32, i32) {
    %c0_i32 = arith.constant 0 : i32
    %c0_i32_0 = arith.constant 0 : i32
    %c0_i32_1 = arith.constant 0 : i32
    return %c0_i32, %c0_i32_0 : i32, i32
  }
  func.func @transform_3(%arg0: i32, %arg1: i32) -> (i32, i32) {
    %c0_i32 = arith.constant 0 : i32
    %c0_i32_0 = arith.constant 0 : i32
    %c0_i32_1 = arith.constant 0 : i32
    return %c0_i32, %c0_i32_0 : i32, i32
  }
  func.func @transform_4(%arg0: i32, %arg1: i32) -> (i32, i32) {
    %c0_i32 = arith.constant 0 : i32
    %c0_i32_0 = arith.constant 0 : i32
    %c0_i32_1 = arith.constant 0 : i32
    return %c0_i32, %c0_i32_0 : i32, i32
  }
  func.func @transform_5(%arg0: i32, %arg1: i32) -> (i32, i32, i32) {
    %c0_i32 = arith.constant 0 : i32
    %c0_i32_0 = arith.constant 0 : i32
    %c0_i32_1 = arith.constant 0 : i32
    return %arg0, %c0_i32, %c0_i32_0 : i32, i32, i32
  }
}

</mosaic_0001>

<bundles_post_ra>
// kernel: attention_refinement_module.1
= control target key start
LH: loop header
LB: loop body
LE: loop exit
PB: predicated region body
PF: predicated region fallthrough
CT: control target
= control target key end

     0   :  { %s4854_s18 = smov 0   ;;  %s4856_s19 = smov 0   ;;  %s7299_s0 = inlined_call_operand.vmem [shape: bf16[2,16,16,128], index: 0, kind: input, shape index: {}]   ;;  %s7300_s1 = inlined_call_operand.vmem [shape: bf16[1152,128], index: 1, kind: input, shape index: {}]   ;;  %s7301_s2 = inlined_call_operand.vmem [shape: f32[1,128], index: 2, kind: input, shape index: {}]   ;;  %s7302_s3 = inlined_call_operand.vmem [shape: bf16[128,128], index: 3, kind: input, shape index: {}]   ;;  %s7303_s4 = inlined_call_operand.vmem [shape: f32[1,128], index: 4, kind: input, shape index: {}]   ;;  %s7304_s5 = inlined_call_operand.vmem [shape: f32[2,256,128], index: 5, kind: output, shape index: {}]  }
   0x1   :  { %s4858_s20 = smov 0   ;;  %s4860_s21 = smov 0  }
   0x2   :  { %s4862_s22 = smov 0  }
   0x3 LB: > { %s24_s23 = sadd.s32 1, %s4809_s20  ;;  %s27_s24 = sadd.s32 1, %s4813_s21  ;;  %s4817_s22 = sphi %s4862_s22, %s15_s22   ;;  %s4813_s21 = sphi %s4860_s21, %s7516_s21   ;;  %s4809_s20 = sphi %s4858_s20, %s7515_s20   ;;  %s4805_s19 = sphi %s4856_s19, %s7514_s19   ;;  %s4801_s18 = sphi %s4854_s18, %s7513_s18  }
   0x4   : > { %p25_p0 = scmp.ge.s32.totalorder %s24_s23, 2  ;;  %p3985_p1 = scmp.ge.s32.totalorder %s4817_s22, 1 }
   0x5   : > { %p199_p2 = scmp.lt.s32.totalorder %s4817_s22, 5 }
   0x6   : > { %s7518_s23 = smov (%p25_p0, %s24_s23), 0  ;;  %s7520_s24 = smov (!%p25_p0, %s27_s24), %s4813_s21 }
   0x7   : > { %p200_p3 = pnand %p3985_p1, %p199_p2  ;;  %p29_p4 = scmp.ge.s32.totalorder %s7520_s24, 2 }
   0x9   : > { %s7522_s24 = smov (%p29_p4, %s7520_s24), 0  ;;  %203 = sbr.rel (%p200_p3) target bundleno = 1057 (0x421), region = 40 }
   0xe   : > { %p227_p5 = scmp.lt.s32.totalorder %s4805_s19, 1  ;;  %s4194_s25 = sshll.u32 %s4801_s18, 6  ;;  %vm421_vm0 = vcmask 1043456   ;;  %vm422_vm1 = vsmask.f32 7938  ;;  %vm456_vm5 = vcmask 1040384  }
   0xf   : > { %v424_v8 = vld [vmem:[#allocation2 + $0xc] sm:$0xf]  ;;  %v428_v9 = vld [vmem:[#allocation2 + $0x54] sm:$0xf]  ;;  %v432_v17 = vld [vmem:[#allocation2 + $0x9c] sm:$0xf] }
  0x10   : > { %s7524_s19 = smov (!%p227_p5, %s4805_s19), 1  ;;  %v436_v18 = vld [vmem:[#allocation2 + $0xe4] sm:$0xf]  ;;  %vm4943_vm2 = vmand %vm421_vm0, %vm422_vm1  ;;  %v440_v25 = vld [vmem:[#allocation2 + $0x12c] sm:$0xf]  ;;  %s3990_s10 = sshll.u32 %s4801_s18, 3 }
  0x11   : > { %s4191_s26 = sshll.u32 %s7524_s19, 7  ;;  %s4192_s27 = sshll.u32 %s7524_s19, 8  ;;  %vm482_vm3 = vsmask.f32 3328  ;;  %v444_v32 = vld [vmem:[#allocation2 + $0x174] sm:$0xf] }
  0x12   : > { %s4890_s30 = scalar_lea.vmem %s7299_s0, %s4191_s26  ;;  %s4895_s8 = scalar_lea.vmem %s7304_s5, %s4192_s27  ;;  %v448_v40 = vld [vmem:[#allocation2 + $0x1bc] sm:$0xf]  ;;  %vm5089_vm4 = vmand %vm421_vm0, %vm482_vm3  ;;  %vm274_vm6 = vsmask.f32 256  ;;  %vm275_vm7 = vsmask.f32 4368 }
  0x13   : > { %s4898_s9 = scalar_lea.vmem %s4890_s30, %s4194_s25  ;;  %vm5156_vm8 = vmor %vm274_vm6, %vm275_vm7  ;;  %vm606_vm10 = vcmask 1043459   ;;  %vm483_vm11 = vsmask.f32 7440  ;;  %vm607_vm13 = vsmask.f32 7950  ;;  %p3993_p6 = scmp.le.s32.totalorder %s4801_s18, 0 }
  0x14   : > { %v4901_v0 = vld [vmem:[%s4898_s9] sm:$0xf]  ;;  %v4904_v1 = vld [vmem:[%s4898_s9 + $0x8] sm:$0xf]  ;;  %v4907_v2 = vld [vmem:[%s4898_s9 + $0x10] sm:$0xf] }
  0x15   : > { %v7320_v3 = vshrl.u32 %v4901_v0, 16  ;;  %v7319_v4 = vshll.u32 %v4901_v0, 16  ;;  %258 = vst [vmem:[#allocation2 + $0x10] sm:$0xf] %v4901_v0  ;;  %v7318_v5 = vshrl.u32 %v4904_v1, 16  ;;  %v7317_v6 = vshll.u32 %v4904_v1, 16  ;;  %vm5179_vm9 = vmand %vm456_vm5, %vm274_vm6 }
  0x16   : > { %260 = vst [vmem:[#allocation2 + $0x58] sm:$0xf] %v4904_v1  ;;  %262 = vst [vmem:[#allocation2 + $0xa0] sm:$0xf] %v4907_v2  ;;  %v4917_v7 = vld [vmem:[%s4898_s9 + $0x18] sm:$0xf] }
  0x17   : > { %v7316_v10 = vshrl.u32 %v4907_v2, 16  ;;  %v7315_v11 = vshll.u32 %v4907_v2, 16  ;;  %v7314_v12 = vshrl.u32 %v4917_v7, 16  ;;  %v7313_v13 = vshll.u32 %v4917_v7, 16  ;;  %264 = vst [vmem:[#allocation2 + $0xe8] sm:$0xf] %v4917_v7  ;;  %vm5260_vm12 = vmor %vm482_vm3, %vm483_vm11 }
  0x18   : > { %v4925_v14 = vld [vmem:[%s4898_s9 + $0x20] sm:$0xf]  ;;  %v4929_v15 = vrot.slane %v7320_v3, 7  ;;  %v4933_v16 = vrot.slane %v7318_v5, 7  ;;  %v4939_v21 = vld [vmem:[%s4898_s9 + $0x28] sm:$0xf]  ;;  %vm5293_vm14 = vmand %vm606_vm10, %vm607_vm13 }
  0x19   : > { %v7312_v19 = vshrl.u32 %v4925_v14, 16  ;;  %v7311_v20 = vshll.u32 %v4925_v14, 16  ;;  %266 = vst [vmem:[#allocation2 + $0x130] sm:$0xf] %v4925_v14  ;;  %v4949_v23 = vrot.slane %v7316_v10, 7  ;;  %v4953_v24 = vrot.slane %v7314_v12, 7 }
  0x1a   : > { %v7310_v26 = vshrl.u32 %v4939_v21, 16  ;;  %v7309_v27 = vshll.u32 %v4939_v21, 16  ;;  %268 = vst [vmem:[#allocation2 + $0x178] sm:$0xf] %v4939_v21  ;;  %v4959_v28 = vld [vmem:[%s4898_s9 + $0x30] sm:$0xf]  ;;  %v283_v29 = vor.u32 %v7319_v4, %v4929_v15  ;;  %v299_v30 = vor.u32 %v7317_v6, %v4933_v16 }
  0x1b   : > { %v4969_v31 = vrot.slane %v7312_v19, 7  ;;  %v7308_v33 = vshrl.u32 %v4959_v28, 16  ;;  %270 = vst [vmem:[#allocation2 + $0x1c0] sm:$0xf] %v4959_v28  ;;  %v4974_v34 = vld [vmem:[%s4898_s9 + $0x38] sm:$0xf]  ;;  %v315_v36 = vor.u32 %v7315_v11, %v4949_v23  ;;  %v331_v37 = vor.u32 %v7313_v13, %v4953_v24 }
  0x1c   : > { %v4977_v35 = vld [vmem:[%s4898_s9 + $0x4] sm:$0xf]  ;;  %v4987_v38 = vrot.slane %v7310_v26, 7  ;;  %v7307_v39 = vshll.u32 %v4959_v28, 16  ;;  %272 = vst [vmem:[#allocation2 + $0x208] sm:$0xf] %v4974_v34  ;;  %v425_v43 = vsel %vm4943_vm2, %v283_v29, %v424_v8  ;;  %v429_v44 = vsel %vm4943_vm2, %v299_v30, %v428_v9 }
  0x1d   : > { %259 = vst [vmem:[#allocation2 + $0x34] sm:$0xf] %v4977_v35  ;;  %v4993_v41 = vld [vmem:[%s4898_s9 + $0xc] sm:$0xf]  ;;  %v4996_v42 = vld [vmem:[%s4898_s9 + $0x14] sm:$0xf]  ;;  %v347_v45 = vor.u32 %v7311_v20, %v4969_v31  ;;  %v433_v49 = vsel %vm4943_vm2, %v315_v36, %v432_v17  ;;  %v437_v50 = vsel %vm4943_vm2, %v331_v37, %v436_v18 }
  0x1e   : > { %v5007_v46 = vrot.slane %v7308_v33, 7  ;;  %261 = vst [vmem:[#allocation2 + $0x7c] sm:$0xf] %v4993_v41  ;;  %263 = vst [vmem:[#allocation2 + $0xc4] sm:$0xf] %v4996_v42  ;;  %v363_v51 = vor.u32 %v7309_v27, %v4987_v38  ;;  %v7306_v52 = vshrl.u32 %v4974_v34, 16 }
  0x1f   : > { %v5012_v47 = vld [vmem:[%s4898_s9 + $0x1c] sm:$0xf]  ;;  %v5015_v48 = vld [vmem:[%s4898_s9 + $0x24] sm:$0xf]  ;;  %426 = vst [vmem:[#allocation2 + $0xc] sm:$0xf] %v425_v43  ;;  %v441_v55 = vsel %vm4943_vm2, %v347_v45, %v440_v25 }
  0x20   : > { %430 = vst [vmem:[#allocation2 + $0x54] sm:$0xf] %v429_v44  ;;  %265 = vst [vmem:[#allocation2 + $0x10c] sm:$0xf] %v5012_v47  ;;  %v5029_v53 = vld [vmem:[%s4898_s9 + $0x2c] sm:$0xf]  ;;  %v379_v56 = vor.u32 %v7307_v39, %v5007_v46  ;;  %v445_v60 = vsel %vm4943_vm2, %v363_v51, %v444_v32 }
  0x21   : > { %267 = vst [vmem:[#allocation2 + $0x154] sm:$0xf] %v5015_v48  ;;  %v5032_v54 = vld [vmem:[%s4898_s9 + $0x34] sm:$0xf]  ;;  %434 = vst [vmem:[#allocation2 + $0x9c] sm:$0xf] %v433_v49 }
  0x22   : > { %438 = vst [vmem:[#allocation2 + $0xe4] sm:$0xf] %v437_v50  ;;  %v7305_v57 = vshll.u32 %v4974_v34, 16  ;;  %v286_v58 = vshrl.u32 %v4977_v35, 16  ;;  %269 = vst [vmem:[#allocation2 + $0x19c] sm:$0xf] %v5029_v53  ;;  %v449_v8 = vsel %vm4943_vm2, %v379_v56, %v448_v40 }
  0x23   : > { %271 = vst [vmem:[#allocation2 + $0x1e4] sm:$0xf] %v5032_v54  ;;  %v5044_v59 = vld [vmem:[%s4898_s9 + $0x3c] sm:$0xf]  ;;  %442 = vst [vmem:[#allocation2 + $0x12c] sm:$0xf] %v441_v55 }
  0x24   : > { %v5050_v61 = vrot.slane %v7306_v52, 7  ;;  %v289_v62 = vshll.u32 %v4977_v35, 16  ;;  %v302_v63 = vshrl.u32 %v4993_v41, 16  ;;  %273 = vst [vmem:[#allocation2 + $0x22c] sm:$0xf] %v5044_v59  ;;  %v491_v17 = vrot.slane %v286_v58, 4 }
  0x25   : > { %446 = vst [vmem:[#allocation2 + $0x174] sm:$0xf] %v445_v60  ;;  %v452_v9 = vld [vmem:[#allocation2 + $0x204] sm:$0xf]  ;;  %v305_v18 = vshll.u32 %v4993_v41, 16  ;;  %v318_v25 = vshrl.u32 %v4996_v42, 16 }
  0x26   : > { %450 = vst [vmem:[#allocation2 + $0x1bc] sm:$0xf] %v449_v8  ;;  %v395_v29 = vor.u32 %v7305_v57, %v5050_v61  ;;  %v5066_v30 = vrot.slane %v289_v62, 5  ;;  %v500_v32 = vrot.slane %v302_v63, 4  ;;  %v321_v36 = vshll.u32 %v4996_v42, 16  ;;  %s3994_s11 = sadd.s32 (!%p3993_p6), 4294967295, %s3990_s10 }
  0x27   : > { %v5073_v37 = vrot.slane %v305_v18, 5  ;;  %v509_v40 = vrot.slane %v318_v25, 4  ;;  %v334_v43 = vshrl.u32 %v5012_v47, 16  ;;  %v337_v44 = vshll.u32 %v5012_v47, 16  ;;  %v575_v56 = vld [vmem:[#allocation2 + $0x38] sm:$0xf] }
  0x28   : > { %v453_v45 = vsel %vm4943_vm2, %v395_v29, %v452_v9  ;;  %v492_v49 = vor.u32 %v491_v17, %v5066_v30  ;;  %v5084_v50 = vrot.slane %v321_v36, 5  ;;  %v350_v51 = vshrl.u32 %v5015_v48, 16  ;;  %v587_v19 = vld [vmem:[#allocation2 + $0x110] sm:$0xf]  ;;  %v464_v42 = vld [vmem:[#allocation2 + $0x9c] sm:$0x1] }
  0x29   : > { %454 = vst [vmem:[#allocation2 + $0x204] sm:$0xf] %v453_v45  ;;  %v501_v60 = vor.u32 %v500_v32, %v5073_v37  ;;  %v5096_v8 = vrot.slane %v337_v44, 5  ;;  %v518_v9 = vrot.slane %v334_v43, 4  ;;  %v353_v17 = vshll.u32 %v5015_v48, 16  ;;  %s4195_s12 = sshll.u32 (!%p3993_p6), %s3994_s11, 3 }
  0x2a   : > { %v493_v29 = vrot.slane %v492_v49, 4  ;;  %v579_v45 = vld [vmem:[#allocation2 + $0x80] sm:$0xf]  ;;  %v510_v57 = vor.u32 %v509_v40, %v5084_v50  ;;  %v527_v52 = vrot.slane %v350_v51, 4  ;;  %v366_v39 = vshrl.u32 %v5029_v53, 16  ;;  %s5323_s13 = scalar_lea.vmem (!%p3993_p6), %s4890_s30, %s4195_s12 }
  0x2b   : > { %v502_v33 = vrot.slane %v501_v60, 4  ;;  %v583_v32 = vld [vmem:[#allocation2 + $0xc8] sm:$0xf]  ;;  %v519_v27 = vor.u32 %v518_v9, %v5096_v8  ;;  %v5108_v26 = vrot.slane %v353_v17, 5  ;;  %v369_v20 = vshll.u32 %v5029_v53, 16 }
  0x2c   : > { %v576_v49 = vsel %vm5089_vm4, %v493_v29, %v575_v56  ;;  %v511_v40 = vrot.slane %v510_v57, 4  ;;  %v536_v13 = vrot.slane %v366_v39, 4  ;;  %v382_v60 = vshrl.u32 %v5032_v54, 16  ;;  %v591_v56 = vld [vmem:[#allocation2 + $0x158] sm:$0xf] }
  0x2d   : > { %577 = vst [vmem:[#allocation2 + $0x38] sm:$0xf] %v576_v49  ;;  %v580_v9 = vsel %vm5089_vm4, %v502_v33, %v579_v45  ;;  %v520_v12 = vrot.slane %v519_v27, 4  ;;  %v528_v11 = vor.u32 %v527_v52, %v5108_v26  ;;  %v5121_v10 = vrot.slane %v369_v20, 5  ;;  %v595_v45 = vld [vmem:[#allocation2 + $0x1a0] sm:$0xf] }
  0x2e   : > { %581 = vst [vmem:[#allocation2 + $0x80] sm:$0xf] %v580_v9  ;;  %v584_v57 = vsel %vm5089_vm4, %v511_v40, %v583_v32  ;;  %v385_v29 = vshll.u32 %v5032_v54, 16  ;;  %v545_v49 = vrot.slane %v382_v60, 4  ;;  %v398_v6 = vshrl.u32 %v5044_v59, 16 }
  0x2f   : > { %585 = vst [vmem:[#allocation2 + $0xc8] sm:$0xf] %v584_v57  ;;  %v588_v27 = vsel %vm5089_vm4, %v520_v12, %v587_v19  ;;  %v529_v33 = vrot.slane %v528_v11, 4  ;;  %v537_v52 = vor.u32 %v536_v13, %v5121_v10  ;;  %v401_v9 = vshll.u32 %v5044_v59, 16 }
  0x30   : > { %589 = vst [vmem:[#allocation2 + $0x110] sm:$0xf] %v588_v27  ;;  %v5135_v32 = vrot.slane %v385_v29, 5  ;;  %v554_v40 = vrot.slane %v398_v6, 4  ;;  %v284_v13 = vrot.slane %v4929_v15, 4  ;;  %v288_v27 = vrot.slane %v286_v58, 7 }
  0x31   : > { %v592_v57 = vsel %vm5089_vm4, %v529_v33, %v591_v56  ;;  %v538_v12 = vrot.slane %v537_v52, 4  ;;  %v5143_v11 = vrot.slane %v401_v9, 5  ;;  %v300_v5 = vrot.slane %v4933_v16, 4  ;;  %v599_v33 = vld [vmem:[#allocation2 + $0x1e8] sm:$0xf] }
  0x32   : > { %593 = vst [vmem:[#allocation2 + $0x158] sm:$0xf] %v592_v57  ;;  %v546_v19 = vor.u32 %v545_v49, %v5135_v32  ;;  %v304_v4 = vrot.slane %v302_v63, 7  ;;  %v316_v49 = vrot.slane %v4949_v23, 4  ;;  %v320_v58 = vrot.slane %v318_v25, 7 }
  0x33   : > { %v596_v56 = vsel %vm5089_vm4, %v538_v12, %v595_v45  ;;  %v555_v52 = vor.u32 %v554_v40, %v5143_v11  ;;  %v603_v57 = vld [vmem:[#allocation2 + $0x230] sm:$0xf]  ;;  %v291_v63 = vor.u32 %v289_v62, %v288_v27  ;;  %v332_v40 = vrot.slane %v4953_v24, 4 }
  0x34   : > { %597 = vst [vmem:[#allocation2 + $0x1a0] sm:$0xf] %v596_v56  ;;  %v547_v16 = vrot.slane %v546_v19, 4  ;;  %v307_v45 = vor.u32 %v305_v18, %v304_v4  ;;  %v323_v3 = vor.u32 %v321_v36, %v320_v58  ;;  %v336_v23 = vrot.slane %v334_v43, 7  ;;  %v458_v56 = vld [vmem:[#allocation2 + $0xc] sm:$0x1] }
  0x35   : > { %v556_v12 = vrot.slane %v555_v52, 4  ;;  %v348_v25 = vrot.slane %v4969_v31, 4  ;;  %v292_v35 = vsel %vm5156_vm8, %v284_v13, %v291_v63  ;;  %v352_v41 = vrot.slane %v350_v51, 7  ;;  %v461_v31 = vld [vmem:[#allocation2 + $0x54] sm:$0x1] }
  0x36   : > { %v600_v19 = vsel %vm5089_vm4, %v547_v16, %v599_v33  ;;  %v308_v24 = vsel %vm5156_vm8, %v300_v5, %v307_v45  ;;  %427 = vst [vmem:[#allocation2 + $0x30] sm:$0xf] %v292_v35  ;;  %v324_v18 = vsel %vm5156_vm8, %v316_v49, %v323_v3  ;;  %v339_v36 = vor.u32 %v337_v44, %v336_v23  ;;  %v467_v5 = vld [vmem:[#allocation2 + $0xe4] sm:$0x1]  ;;  %v470_v13 = vld [vmem:[#allocation2 + $0x12c] sm:$0x1] }
  0x37   : > { %601 = vst [vmem:[#allocation2 + $0x1e8] sm:$0xf] %v600_v19  ;;  %v604_v62 = vsel %vm5089_vm4, %v556_v12, %v603_v57  ;;  %431 = vst [vmem:[#allocation2 + $0x78] sm:$0xf] %v308_v24  ;;  %v364_v43 = vrot.slane %v4987_v38, 4  ;;  %v355_v51 = vor.u32 %v353_v17, %v352_v41  ;;  %v368_v27 = vrot.slane %v366_v39, 7 }
  0x38   : > { %605 = vst [vmem:[#allocation2 + $0x230] sm:$0xf] %v604_v62  ;;  %435 = vst [vmem:[#allocation2 + $0xc0] sm:$0xf] %v324_v18  ;;  %v380_v33 = vrot.slane %v5007_v46, 4  ;;  %v384_v3 = vrot.slane %v382_v60, 7  ;;  %v340_v47 = vsel %vm5156_vm8, %v332_v40, %v339_v36 }
  0x39   : > { %v473_v52 = vld [vmem:[#allocation2 + $0x174] sm:$0x1]  ;;  %v396_v38 = vrot.slane %v5050_v61, 4  ;;  %v400_v44 = vrot.slane %v398_v6, 7  ;;  %v459_v48 = vsel %vm5179_vm9, 0, %v458_v56  ;;  %v356_v39 = vsel %vm5156_vm8, %v348_v25, %v355_v51 }
  0x3a   : > { %v476_v17 = vld [vmem:[#allocation2 + $0x1bc] sm:$0x1]  ;;  %439 = vst [vmem:[#allocation2 + $0x108] sm:$0xf] %v340_v47  ;;  %v371_v46 = vor.u32 %v369_v20, %v368_v27  ;;  %v387_v60 = vor.u32 %v385_v29, %v384_v3  ;;  %460 = vst [vmem:[#allocation2 + $0xc] sm:$0x1] %v459_v48 }
  0x3b   : > { %v462_v61 = vsel %vm5179_vm9, 0, %v461_v31  ;;  %v479_v49 = vld [vmem:[#allocation2 + $0x204] sm:$0x1]  ;;  %443 = vst [vmem:[#allocation2 + $0x150] sm:$0xf] %v356_v39  ;;  %v403_v6 = vor.u32 %v401_v9, %v400_v44  ;;  %v465_v58 = vsel %vm5179_vm9, 0, %v464_v42 }
  0x3c   : > { %463 = vst [vmem:[#allocation2 + $0x54] sm:$0x1] %v462_v61  ;;  %v468_v53 = vsel %vm5179_vm9, 0, %v467_v5  ;;  %v471_v20 = vsel %vm5179_vm9, 0, %v470_v13  ;;  %v372_v54 = vsel %vm5156_vm8, %v364_v43, %v371_v46  ;;  %v388_v29 = vsel %vm5156_vm8, %v380_v33, %v387_v60  ;;  %466 = vst [vmem:[#allocation2 + $0x9c] sm:$0x1] %v465_v58 }
  0x3d   : > { %469 = vst [vmem:[#allocation2 + $0xe4] sm:$0x1] %v468_v53  ;;  %472 = vst [vmem:[#allocation2 + $0x12c] sm:$0x1] %v471_v20  ;;  %v474_v59 = vsel %vm5179_vm9, 0, %v473_v52  ;;  %v477_v9 = vsel %vm5179_vm9, 0, %v476_v17  ;;  %v404_v16 = vsel %vm5156_vm8, %v396_v38, %v403_v6 }
  0x3e   : > { %447 = vst [vmem:[#allocation2 + $0x198] sm:$0xf] %v372_v54  ;;  %451 = vst [vmem:[#allocation2 + $0x1e0] sm:$0xf] %v388_v29  ;;  %v480_v57 = vsel %vm5179_vm9, 0, %v479_v49  ;;  %v7396_v63 = vshrl.u32 %v4901_v0, 16 }
  0x3f   : > { %475 = vst [vmem:[#allocation2 + $0x174] sm:$0x1] %v474_v59  ;;  %478 = vst [vmem:[#allocation2 + $0x1bc] sm:$0x1] %v477_v9  ;;  %v7397_v40 = vshll.u32 %v4901_v0, 16  ;;  %v7398_v23 = vshrl.u32 %v4904_v1, 16 }
  0x40   : > { %v485_v45 = vrot.slane %v7396_v63, 4  ;;  %455 = vst [vmem:[#allocation2 + $0x228] sm:$0xf] %v404_v16  ;;  %481 = vst [vmem:[#allocation2 + $0x204] sm:$0x1] %v480_v57  ;;  %v7399_v56 = vshll.u32 %v4904_v1, 16 }
  0x41   : > { %v486_v12 = vrot.slane %v7397_v40, 5  ;;  %v494_v25 = vrot.slane %v7398_v23, 4  ;;  %v7400_v35 = vshrl.u32 %v4907_v2, 16  ;;  %v7401_v41 = vshll.u32 %v4907_v2, 16  ;;  %v609_v53 = vld [vmem:[#allocation2 + $0x38] sm:$0x8] }
  0x42   : > { %v495_v19 = vrot.slane %v7399_v56, 5  ;;  %v7402_v42 = vshrl.u32 %v4917_v7, 16  ;;  %v7403_v18 = vshll.u32 %v4917_v7, 16  ;;  %v7404_v0 = vshrl.u32 %v4925_v14, 16  ;;  %v612_v59 = vld [vmem:[#allocation2 + $0x80] sm:$0x8] }
  0x43   : > { %v503_v24 = vrot.slane %v7400_v35, 4  ;;  %v504_v31 = vrot.slane %v7401_v41, 5  ;;  %v487_v5 = vor.u32 %v486_v12, %v485_v45  ;;  %v7405_v1 = vshll.u32 %v4925_v14, 16  ;;  %v618_v45 = vld [vmem:[#allocation2 + $0x110] sm:$0x8] }
  0x44   : > { %v512_v62 = vrot.slane %v7402_v42, 4  ;;  %v513_v36 = vrot.slane %v7403_v18, 5  ;;  %v521_v43 = vrot.slane %v7404_v0, 4  ;;  %v496_v13 = vor.u32 %v495_v19, %v494_v25  ;;  %v624_v23 = vld [vmem:[#allocation2 + $0x1a0] sm:$0x8] }
  0x45   : > { %v522_v51 = vrot.slane %v7405_v1, 5  ;;  %v7406_v27 = vshrl.u32 %v4939_v21, 16  ;;  %v505_v3 = vor.u32 %v504_v31, %v503_v24  ;;  %v7409_v52 = vshll.u32 %v4939_v21, 16  ;;  %v627_v25 = vld [vmem:[#allocation2 + $0x1e8] sm:$0x8] }
  0x46   : > { %v514_v7 = vor.u32 %v513_v36, %v512_v62  ;;  %v7410_v38 = vshrl.u32 %v4959_v28, 16  ;;  %v488_v48 = vrot.slane %v487_v5, 4  ;;  %v497_v14 = vrot.slane %v496_v13, 4  ;;  %v630_v56 = vld [vmem:[#allocation2 + $0x230] sm:$0x8] }
  0x47   : > { %v530_v33 = vrot.slane %v7406_v27, 4  ;;  %v531_v47 = vrot.slane %v7409_v52, 5  ;;  %v523_v17 = vor.u32 %v522_v51, %v521_v43  ;;  %v7411_v39 = vshll.u32 %v4959_v28, 16  ;;  %v615_v28 = vld [vmem:[#allocation2 + $0xc8] sm:$0x8] }
  0x48   : > { %v539_v44 = vrot.slane %v7410_v38, 4  ;;  %v506_v60 = vrot.slane %v505_v3, 4  ;;  %v515_v61 = vrot.slane %v514_v7, 4  ;;  %v7412_v6 = vshrl.u32 %v4974_v34, 16 }
  0x49   : > { %v540_v46 = vrot.slane %v7411_v39, 5  ;;  %v532_v49 = vor.u32 %v531_v47, %v530_v33  ;;  %v490_v21 = vsel %vm5260_vm12, %v488_v48, %v5066_v30  ;;  %v499_v20 = vsel %vm5260_vm12, %v497_v14, %v5073_v37  ;;  %v621_v37 = vld [vmem:[#allocation2 + $0x158] sm:$0x8] }
  0x4a   : > { %v548_v58 = vrot.slane %v7412_v6, 4  ;;  %v524_v54 = vrot.slane %v523_v17, 4  ;;  %573 = vst [vmem:[#allocation2 + $0x14] sm:$0xf] %v490_v21  ;;  %578 = vst [vmem:[#allocation2 + $0x5c] sm:$0xf] %v499_v20  ;;  %v508_v9 = vsel %vm5260_vm12, %v506_v60, %v5084_v50  ;;  %v517_v16 = vsel %vm5260_vm12, %v515_v61, %v5096_v8 }
  0x4b   : > { %v541_v29 = vor.u32 %v540_v46, %v539_v44  ;;  %v533_v57 = vrot.slane %v532_v49, 4  ;;  %v7413_v30 = vshll.u32 %v4974_v34, 16  ;;  %582 = vst [vmem:[#allocation2 + $0xa4] sm:$0xf] %v508_v9  ;;  %586 = vst [vmem:[#allocation2 + $0xec] sm:$0xf] %v517_v16 }
  0x4c   : > { %v526_v40 = vsel %vm5260_vm12, %v524_v54, %v5108_v26  ;;  %v610_v19 = vsel %vm5293_vm14, 0, %v609_v53  ;;  %v613_v35 = vsel %vm5293_vm14, 0, %v612_v59  ;;  %v619_v41 = vsel %vm5293_vm14, 0, %v618_v45 }
  0x4d   : > { %v549_v63 = vrot.slane %v7413_v30, 5  ;;  %v542_v12 = vrot.slane %v541_v29, 4  ;;  %590 = vst [vmem:[#allocation2 + $0x134] sm:$0xf] %v526_v40  ;;  %v535_v50 = vsel %vm5260_vm12, %v533_v57, %v5121_v10  ;;  %v616_v10 = vsel %vm5293_vm14, 0, %v615_v28 }
  0x4e   : > { %594 = vst [vmem:[#allocation2 + $0x17c] sm:$0xf] %v535_v50  ;;  %611 = vst [vmem:[#allocation2 + $0x38] sm:$0x8] %v610_v19  ;;  %v625_v31 = vsel %vm5293_vm14, 0, %v624_v23  ;;  %v628_v42 = vsel %vm5293_vm14, 0, %v627_v25 }
  0x4f   : > { %v550_v8 = vor.u32 %v549_v63, %v548_v58  ;;  %v544_v26 = vsel %vm5260_vm12, %v542_v12, %v5135_v32  ;;  %614 = vst [vmem:[#allocation2 + $0x80] sm:$0x8] %v613_v35  ;;  %617 = vst [vmem:[#allocation2 + $0xc8] sm:$0x8] %v616_v10  ;;  %v622_v32 = vsel %vm5293_vm14, 0, %v621_v37  ;;  %v631_v62 = vsel %vm5293_vm14, 0, %v630_v56 }
  0x50   : > { %598 = vst [vmem:[#allocation2 + $0x1c4] sm:$0xf] %v544_v26  ;;  %620 = vst [vmem:[#allocation2 + $0x110] sm:$0x8] %v619_v41  ;;  %636 = sbr.rel (%p3993_p6) target bundleno = 151 (0x97), region = 44 }
  0x51   : > { %v551_v24 = vrot.slane %v550_v8, 4  ;;  %623 = vst [vmem:[#allocation2 + $0x158] sm:$0x8] %v622_v32  ;;  %626 = vst [vmem:[#allocation2 + $0x1a0] sm:$0x8] %v625_v31 }
  0x52   : > { %629 = vst [vmem:[#allocation2 + $0x1e8] sm:$0x8] %v628_v42  ;;  %632 = vst [vmem:[#allocation2 + $0x230] sm:$0x8] %v631_v62 }
  0x53   : > { %v553_v18 = vsel %vm5260_vm12, %v551_v24, %v5143_v11 }
  0x54   : > { %602 = vst [vmem:[#allocation2 + $0x20c] sm:$0xf] %v553_v18 }
  0x55   : > { %v5326_v36 = vld [vmem:[%s5323_s13] sm:$0xf]  ;;  %v5329_v11 = vld [vmem:[%s5323_s13 + $0x8] sm:$0xf]  ;;  %v5332_v0 = vld [vmem:[%s5323_s13 + $0x10] sm:$0xf] }
  0x56   : > { %v7336_v43 = vshrl.u32 %v5326_v36, 16  ;;  %v7335_v5 = vshll.u32 %v5326_v36, 16  ;;  %657 = vst [vmem:[#allocation2 + $0x4] sm:$0xf] %v5326_v36  ;;  %v7334_v13 = vshrl.u32 %v5329_v11, 16  ;;  %v7333_v1 = vshll.u32 %v5329_v11, 16 }
  0x57   : > { %659 = vst [vmem:[#allocation2 + $0x4c] sm:$0xf] %v5329_v11  ;;  %661 = vst [vmem:[#allocation2 + $0x94] sm:$0xf] %v5332_v0  ;;  %v5342_v51 = vld [vmem:[%s5323_s13 + $0x18] sm:$0xf] }
  0x58   : > { %v817_v27 = vld [vmem:[#allocation2] sm:$0xf]  ;;  %v821_v33 = vld [vmem:[#allocation2 + $0x48] sm:$0xf]  ;;  %v7332_v3 = vshrl.u32 %v5332_v0, 16  ;;  %v7331_v7 = vshll.u32 %v5332_v0, 16 }
  0x59   : > { %v7330_v52 = vshrl.u32 %v5342_v51, 16  ;;  %v7329_v47 = vshll.u32 %v5342_v51, 16  ;;  %663 = vst [vmem:[#allocation2 + $0xdc] sm:$0xf] %v5342_v51  ;;  %v5350_v38 = vld [vmem:[%s5323_s13 + $0x20] sm:$0xf] }
  0x5a   : > { %v5354_v44 = vrot.slane %v7336_v43, 7  ;;  %v5358_v48 = vrot.slane %v7334_v13, 7  ;;  %v825_v14 = vld [vmem:[#allocation2 + $0x90] sm:$0xf]  ;;  %v7328_v17 = vshrl.u32 %v5350_v38, 16  ;;  %v7327_v39 = vshll.u32 %v5350_v38, 16 }
  0x5b   : > { %665 = vst [vmem:[#allocation2 + $0x124] sm:$0xf] %v5350_v38  ;;  %v5364_v46 = vld [vmem:[%s5323_s13 + $0x28] sm:$0xf]  ;;  %v5368_v60 = vrot.slane %v7332_v3, 7  ;;  %v5372_v61 = vrot.slane %v7330_v52, 7 }
  0x5c   : > { %v7326_v49 = vshrl.u32 %v5364_v46, 16  ;;  %v7325_v6 = vshll.u32 %v5364_v46, 16  ;;  %667 = vst [vmem:[#allocation2 + $0x16c] sm:$0xf] %v5364_v46  ;;  %v5378_v58 = vld [vmem:[%s5323_s13 + $0x30] sm:$0xf]  ;;  %v679_v53 = vor.u32 %v7335_v5, %v5354_v44  ;;  %v695_v21 = vor.u32 %v7333_v1, %v5358_v48 }
  0x5d   : > { %v829_v20 = vld [vmem:[#allocation2 + $0xd8] sm:$0xf]  ;;  %v5388_v54 = vrot.slane %v7328_v17, 7  ;;  %v7324_v29 = vshrl.u32 %v5378_v58, 16  ;;  %669 = vst [vmem:[#allocation2 + $0x1b4] sm:$0xf] %v5378_v58  ;;  %v711_v28 = vor.u32 %v7331_v7, %v5368_v60  ;;  %v727_v9 = vor.u32 %v7329_v47, %v5372_v61 }
  0x5e   : > { %v5393_v59 = vld [vmem:[%s5323_s13 + $0x38] sm:$0xf]  ;;  %v833_v16 = vld [vmem:[#allocation2 + $0x120] sm:$0xf]  ;;  %v5403_v57 = vrot.slane %v7326_v49, 7  ;;  %v7323_v30 = vshll.u32 %v5378_v58, 16  ;;  %v818_v45 = vsel %vm4943_vm2, %v679_v53, %v817_v27  ;;  %v822_v37 = vsel %vm4943_vm2, %v695_v21, %v821_v33 }
  0x5f   : > { %671 = vst [vmem:[#allocation2 + $0x1fc] sm:$0xf] %v5393_v59  ;;  %v5408_v63 = vld [vmem:[%s5323_s13 + $0x4] sm:$0xf]  ;;  %v743_v40 = vor.u32 %v7327_v39, %v5388_v54  ;;  %v837_v12 = vld [vmem:[#allocation2 + $0x168] sm:$0xf]  ;;  %v826_v8 = vsel %vm4943_vm2, %v711_v28, %v825_v14  ;;  %v830_v25 = vsel %vm4943_vm2, %v727_v9, %v829_v20 }
  0x60   : > { %v5419_v23 = vrot.slane %v7324_v29, 7  ;;  %658 = vst [vmem:[#allocation2 + $0x28] sm:$0xf] %v5408_v63  ;;  %v5423_v50 = vld [vmem:[%s5323_s13 + $0xc] sm:$0xf]  ;;  %v759_v56 = vor.u32 %v7325_v6, %v5403_v57  ;;  %v7322_v19 = vshrl.u32 %v5393_v59, 16 }
  0x61   : > { %819 = vst [vmem:[#allocation2] sm:$0xf] %v818_v45  ;;  %823 = vst [vmem:[#allocation2 + $0x48] sm:$0xf] %v822_v37  ;;  %v841_v26 = vld [vmem:[#allocation2 + $0x1b0] sm:$0xf]  ;;  %v834_v10 = vsel %vm4943_vm2, %v743_v40, %v833_v16 }
  0x62   : > { %660 = vst [vmem:[#allocation2 + $0x70] sm:$0xf] %v5423_v50  ;;  %v5435_v35 = vld [vmem:[%s5323_s13 + $0x14] sm:$0xf]  ;;  %827 = vst [vmem:[#allocation2 + $0x90] sm:$0xf] %v826_v8  ;;  %v775_v24 = vor.u32 %v7323_v30, %v5419_v23  ;;  %v838_v42 = vsel %vm4943_vm2, %v759_v56, %v837_v12 }
  0x63   : > { %831 = vst [vmem:[#allocation2 + $0xd8] sm:$0xf] %v830_v25  ;;  %v7321_v41 = vshll.u32 %v5393_v59, 16  ;;  %v682_v32 = vshrl.u32 %v5408_v63, 16  ;;  %662 = vst [vmem:[#allocation2 + $0xb8] sm:$0xf] %v5435_v35 }
  0x64   : > { %v5446_v31 = vld [vmem:[%s5323_s13 + $0x1c] sm:$0xf]  ;;  %835 = vst [vmem:[#allocation2 + $0x120] sm:$0xf] %v834_v10  ;;  %v5452_v62 = vrot.slane %v7322_v19, 7  ;;  %v685_v18 = vshll.u32 %v5408_v63, 16  ;;  %v842_v14 = vsel %vm4943_vm2, %v775_v24, %v841_v26 }
  0x65   : > { %v698_v27 = vshrl.u32 %v5423_v50, 16  ;;  %664 = vst [vmem:[#allocation2 + $0x100] sm:$0xf] %v5446_v31  ;;  %v5458_v33 = vld [vmem:[%s5323_s13 + $0x24] sm:$0xf]  ;;  %v879_v21 = vrot.slane %v682_v32, 4 }
  0x66   : > { %839 = vst [vmem:[#allocation2 + $0x168] sm:$0xf] %v838_v42  ;;  %v845_v53 = vld [vmem:[#allocation2 + $0x1f8] sm:$0xf]  ;;  %v701_v20 = vshll.u32 %v5423_v50, 16  ;;  %v714_v28 = vshrl.u32 %v5435_v35, 16  ;;  %v791_v9 = vor.u32 %v7321_v41, %v5452_v62 }
  0x67   : > { %666 = vst [vmem:[#allocation2 + $0x148] sm:$0xf] %v5458_v33  ;;  %843 = vst [vmem:[#allocation2 + $0x1b0] sm:$0xf] %v842_v14  ;;  %v5472_v16 = vrot.slane %v685_v18, 5  ;;  %v888_v45 = vrot.slane %v698_v27, 4 }
  0x68   : > { %v717_v37 = vshll.u32 %v5435_v35, 16  ;;  %v5478_v40 = vld [vmem:[%s5323_s13 + $0x2c] sm:$0xf]  ;;  %v5482_v12 = vrot.slane %v701_v20, 5  ;;  %v897_v8 = vrot.slane %v714_v28, 4  ;;  %v730_v25 = vshrl.u32 %v5446_v31, 16 }
  0x69   : > { %v733_v56 = vshll.u32 %v5446_v31, 16  ;;  %668 = vst [vmem:[#allocation2 + $0x190] sm:$0xf] %v5478_v40  ;;  %v846_v26 = vsel %vm4943_vm2, %v791_v9, %v845_v53  ;;  %v880_v10 = vor.u32 %v879_v21, %v5472_v16  ;;  %v962_v24 = vld [vmem:[#allocation2 + $0x2c] sm:$0xf]  ;;  %v746_v14 = vshrl.u32 %v5458_v33, 16 }
  0x6a   : > { %v5494_v42 = vrot.slane %v717_v37, 5  ;;  %v5498_v41 = vld [vmem:[%s5323_s13 + $0x34] sm:$0xf]  ;;  %847 = vst [vmem:[#allocation2 + $0x1f8] sm:$0xf] %v846_v26  ;;  %v889_v19 = vor.u32 %v888_v45, %v5482_v12  ;;  %v906_v53 = vrot.slane %v730_v25, 4 }
  0x6b   : > { %v5503_v30 = vrot.slane %v733_v56, 5  ;;  %v749_v21 = vshll.u32 %v5458_v33, 16  ;;  %670 = vst [vmem:[#allocation2 + $0x1d8] sm:$0xf] %v5498_v41  ;;  %v5510_v9 = vld [vmem:[%s5323_s13 + $0x3c] sm:$0xf] }
  0x6c   : > { %v881_v29 = vrot.slane %v880_v10, 4  ;;  %v966_v6 = vld [vmem:[#allocation2 + $0x74] sm:$0xf]  ;;  %v898_v49 = vor.u32 %v897_v8, %v5494_v42  ;;  %v915_v45 = vrot.slane %v746_v14, 4  ;;  %v7337_v26 = vshrl.u32 %v5478_v40, 16 }
  0x6d   : > { %672 = vst [vmem:[#allocation2 + $0x220] sm:$0xf] %v5510_v9  ;;  %v890_v39 = vrot.slane %v889_v19, 4  ;;  %v970_v17 = vld [vmem:[#allocation2 + $0xbc] sm:$0xf]  ;;  %v907_v47 = vor.u32 %v906_v53, %v5503_v30  ;;  %v5520_v52 = vrot.slane %v749_v21, 5 }
  0x6e   : > { %v7338_v10 = vshll.u32 %v5478_v40, 16  ;;  %v963_v8 = vsel %vm5089_vm4, %v881_v29, %v962_v24  ;;  %v899_v7 = vrot.slane %v898_v49, 4  ;;  %v974_v3 = vld [vmem:[#allocation2 + $0x104] sm:$0xf]  ;;  %v924_v1 = vrot.slane %v7337_v26, 4 }
  0x6f   : > { %v778_v13 = vshrl.u32 %v5498_v41, 16  ;;  %964 = vst [vmem:[#allocation2 + $0x2c] sm:$0xf] %v963_v8  ;;  %v967_v19 = vsel %vm5089_vm4, %v890_v39, %v966_v6  ;;  %v908_v53 = vrot.slane %v907_v47, 4  ;;  %v916_v5 = vor.u32 %v915_v45, %v5520_v52  ;;  %v978_v29 = vld [vmem:[#allocation2 + $0x14c] sm:$0xf] }
  0x70   : > { %v5533_v43 = vrot.slane %v7338_v10, 5  ;;  %968 = vst [vmem:[#allocation2 + $0x74] sm:$0xf] %v967_v19  ;;  %v971_v49 = vsel %vm5089_vm4, %v899_v7, %v970_v17  ;;  %v7339_v24 = vshll.u32 %v5498_v41, 16  ;;  %v794_v26 = vshrl.u32 %v5510_v9, 16 }
  0x71   : > { %v933_v8 = vrot.slane %v778_v13, 4  ;;  %972 = vst [vmem:[#allocation2 + $0xbc] sm:$0xf] %v971_v49  ;;  %v975_v47 = vsel %vm5089_vm4, %v908_v53, %v974_v3  ;;  %v917_v39 = vrot.slane %v916_v5, 4  ;;  %v797_v45 = vshll.u32 %v5510_v9, 16 }
  0x72   : > { %v925_v6 = vor.u32 %v924_v1, %v5533_v43  ;;  %976 = vst [vmem:[#allocation2 + $0x104] sm:$0xf] %v975_v47  ;;  %v982_v19 = vld [vmem:[#allocation2 + $0x194] sm:$0xf]  ;;  %v5547_v7 = vrot.slane %v7339_v24, 5  ;;  %v942_v17 = vrot.slane %v794_v26, 4 }
  0x73   : > { %v680_v10 = vrot.slane %v5354_v44, 4  ;;  %v684_v49 = vrot.slane %v682_v32, 7  ;;  %v979_v3 = vsel %vm5089_vm4, %v917_v39, %v978_v29  ;;  %v5556_v1 = vrot.slane %v797_v45, 5  ;;  %v986_v39 = vld [vmem:[#allocation2 + $0x1dc] sm:$0xf] }
  0x74   : > { %v926_v5 = vrot.slane %v925_v6, 4  ;;  %v696_v53 = vrot.slane %v5358_v48, 4  ;;  %980 = vst [vmem:[#allocation2 + $0x14c] sm:$0xf] %v979_v3  ;;  %v934_v47 = vor.u32 %v933_v8, %v5547_v7  ;;  %v700_v44 = vrot.slane %v698_v27, 7 }
  0x75   : > { %v687_v24 = vor.u32 %v685_v18, %v684_v49  ;;  %v712_v32 = vrot.slane %v5368_v60, 4  ;;  %v943_v6 = vor.u32 %v942_v17, %v5556_v1  ;;  %v716_v48 = vrot.slane %v714_v28, 7  ;;  %v990_v63 = vld [vmem:[#allocation2 + $0x224] sm:$0xf]  ;;  %v849_v49 = vld [vmem:[#allocation2] sm:$0x1] }
  0x76   : > { %v983_v29 = vsel %vm5089_vm4, %v926_v5, %v982_v19  ;;  %v728_v3 = vrot.slane %v5372_v61, 4  ;;  %v935_v8 = vrot.slane %v934_v47, 4  ;;  %v703_v60 = vor.u32 %v701_v20, %v700_v44  ;;  %v855_v35 = vld [vmem:[#allocation2 + $0x90] sm:$0x1]  ;;  %v858_v31 = vld [vmem:[#allocation2 + $0xd8] sm:$0x1] }
  0x77   : > { %984 = vst [vmem:[#allocation2 + $0x194] sm:$0xf] %v983_v29  ;;  %v688_v18 = vsel %vm5156_vm8, %v680_v10, %v687_v24  ;;  %v732_v27 = vrot.slane %v730_v25, 7  ;;  %v944_v19 = vrot.slane %v943_v6, 4  ;;  %v719_v17 = vor.u32 %v717_v37, %v716_v48  ;;  %v852_v24 = vld [vmem:[#allocation2 + $0x48] sm:$0x1] }
  0x78   : > { %820 = vst [vmem:[#allocation2 + $0x24] sm:$0xf] %v688_v18  ;;  %v744_v28 = vrot.slane %v5388_v54, 4  ;;  %v748_v61 = vrot.slane %v746_v14, 7  ;;  %v987_v10 = vsel %vm5089_vm4, %v935_v8, %v986_v39  ;;  %v704_v50 = vsel %vm5156_vm8, %v696_v53, %v703_v60  ;;  %v864_v29 = vld [vmem:[#allocation2 + $0x168] sm:$0x1] }
  0x79   : > { %v735_v20 = vor.u32 %v733_v56, %v732_v27  ;;  %v760_v25 = vrot.slane %v5403_v57, 4  ;;  %988 = vst [vmem:[#allocation2 + $0x1dc] sm:$0xf] %v987_v10  ;;  %v991_v54 = vsel %vm5089_vm4, %v944_v19, %v990_v63  ;;  %824 = vst [vmem:[#allocation2 + $0x6c] sm:$0xf] %v704_v50  ;;  %v720_v37 = vsel %vm5156_vm8, %v712_v32, %v719_v17 }
  0x7a   : > { %v751_v14 = vor.u32 %v749_v21, %v748_v61  ;;  %v7416_v5 = vshrl.u32 %v5478_v40, 16  ;;  %v861_v56 = vld [vmem:[#allocation2 + $0x120] sm:$0x1]  ;;  %992 = vst [vmem:[#allocation2 + $0x224] sm:$0xf] %v991_v54  ;;  %v776_v47 = vrot.slane %v5419_v23, 4 }
  0x7b   : > { %828 = vst [vmem:[#allocation2 + $0xb4] sm:$0xf] %v720_v37  ;;  %v736_v57 = vsel %vm5156_vm8, %v728_v3, %v735_v20  ;;  %v780_v44 = vrot.slane %v778_v13, 7  ;;  %v792_v32 = vrot.slane %v5452_v62, 4  ;;  %v7417_v21 = vshll.u32 %v5478_v40, 16 }
  0x7c   : > { %v764_v53 = vrot.slane %v7416_v5, 7  ;;  %832 = vst [vmem:[#allocation2 + $0xfc] sm:$0xf] %v736_v57  ;;  %v752_v33 = vsel %vm5156_vm8, %v744_v28, %v751_v14  ;;  %v796_v6 = vrot.slane %v794_v26, 7  ;;  %v850_v48 = vsel %vm5179_vm9, 0, %v849_v49 }
  0x7d   : > { %v867_v3 = vld [vmem:[#allocation2 + $0x1b0] sm:$0x1]  ;;  %v870_v8 = vld [vmem:[#allocation2 + $0x1f8] sm:$0x1]  ;;  %836 = vst [vmem:[#allocation2 + $0x144] sm:$0xf] %v752_v33 }
  0x7e   : > { %v767_v39 = vor.u32 %v7417_v21, %v764_v53  ;;  %v7418_v23 = vshll.u32 %v5498_v41, 16  ;;  %851 = vst [vmem:[#allocation2] sm:$0x1] %v850_v48  ;;  %v853_v62 = vsel %vm5179_vm9, 0, %v852_v24  ;;  %v856_v63 = vsel %vm5179_vm9, 0, %v855_v35 }
  0x7f   : > { %v859_v40 = vsel %vm5179_vm9, 0, %v858_v31  ;;  %v799_v18 = vor.u32 %v797_v45, %v796_v6  ;;  %854 = vst [vmem:[#allocation2 + $0x48] sm:$0x1] %v853_v62  ;;  %857 = vst [vmem:[#allocation2 + $0x90] sm:$0x1] %v856_v63  ;;  %v862_v41 = vsel %vm5179_vm9, 0, %v861_v56 }
  0x80   : > { %v783_v13 = vor.u32 %v7418_v23, %v780_v44  ;;  %v768_v26 = vsel %vm5156_vm8, %v760_v25, %v767_v39  ;;  %860 = vst [vmem:[#allocation2 + $0xd8] sm:$0x1] %v859_v40  ;;  %v865_v60 = vsel %vm5179_vm9, 0, %v864_v29  ;;  %863 = vst [vmem:[#allocation2 + $0x120] sm:$0x1] %v862_v41  ;;  %v868_v19 = vsel %vm5179_vm9, 0, %v867_v3 }
  0x81   : > { %840 = vst [vmem:[#allocation2 + $0x18c] sm:$0xf] %v768_v26  ;;  %866 = vst [vmem:[#allocation2 + $0x168] sm:$0x1] %v865_v60  ;;  %v871_v9 = vsel %vm5179_vm9, 0, %v870_v8  ;;  %v7419_v45 = vshrl.u32 %v5326_v36, 16  ;;  %v800_v28 = vsel %vm5156_vm8, %v792_v32, %v799_v18 }
  0x82   : > { %v784_v27 = vsel %vm5156_vm8, %v776_v47, %v783_v13  ;;  %869 = vst [vmem:[#allocation2 + $0x1b0] sm:$0x1] %v868_v19  ;;  %872 = vst [vmem:[#allocation2 + $0x1f8] sm:$0x1] %v871_v9  ;;  %v7420_v61 = vshll.u32 %v5326_v36, 16  ;;  %v7421_v10 = vshrl.u32 %v5329_v11, 16 }
  0x83   : > { %v873_v17 = vrot.slane %v7419_v45, 4  ;;  %844 = vst [vmem:[#allocation2 + $0x1d4] sm:$0xf] %v784_v27  ;;  %v7422_v20 = vshll.u32 %v5329_v11, 16  ;;  %848 = vst [vmem:[#allocation2 + $0x21c] sm:$0xf] %v800_v28 }
  0x84   : > { %v874_v49 = vrot.slane %v7420_v61, 5  ;;  %v882_v50 = vrot.slane %v7421_v10, 4  ;;  %v7423_v24 = vshrl.u32 %v5332_v0, 16  ;;  %v7424_v54 = vshll.u32 %v5332_v0, 16  ;;  %v993_v6 = vld [vmem:[#allocation2 + $0x2c] sm:$0x8] }
  0x85   : > { %v883_v25 = vrot.slane %v7422_v20, 5  ;;  %v7425_v14 = vshrl.u32 %v5342_v51, 16  ;;  %v7426_v53 = vshll.u32 %v5342_v51, 16  ;;  %v7427_v57 = vshrl.u32 %v5350_v38, 16  ;;  %v996_v13 = vld [vmem:[#allocation2 + $0x74] sm:$0x8] }
  0x86   : > { %v891_v35 = vrot.slane %v7423_v24, 4  ;;  %v892_v37 = vrot.slane %v7424_v54, 5  ;;  %v875_v31 = vor.u32 %v874_v49, %v873_v17  ;;  %v7428_v11 = vshll.u32 %v5350_v38, 16  ;;  %v999_v18 = vld [vmem:[#allocation2 + $0xbc] sm:$0x8] }
  0x87   : > { %v900_v5 = vrot.slane %v7425_v14, 4  ;;  %v901_v36 = vrot.slane %v7426_v53, 5  ;;  %v884_v56 = vor.u32 %v883_v25, %v882_v50  ;;  %v909_v47 = vrot.slane %v7427_v57, 4  ;;  %v1002_v9 = vld [vmem:[#allocation2 + $0x104] sm:$0x8] }
  0x88   : > { %v910_v44 = vrot.slane %v7428_v11, 5  ;;  %v893_v32 = vor.u32 %v892_v37, %v891_v35  ;;  %v7429_v33 = vshrl.u32 %v5364_v46, 16  ;;  %v7430_v21 = vshll.u32 %v5364_v46, 16  ;;  %v1005_v45 = vld [vmem:[#allocation2 + $0x14c] sm:$0x8] }
  0x89   : > { %v902_v29 = vor.u32 %v901_v36, %v900_v5  ;;  %v876_v48 = vrot.slane %v875_v31, 4  ;;  %v885_v51 = vrot.slane %v884_v56, 4  ;;  %v7431_v8 = vshrl.u32 %v5378_v58, 16  ;;  %v1008_v61 = vld [vmem:[#allocation2 + $0x194] sm:$0x8] }
  0x8a   : > { %v918_v0 = vrot.slane %v7429_v33, 4  ;;  %v919_v39 = vrot.slane %v7430_v21, 5  ;;  %v911_v3 = vor.u32 %v910_v44, %v909_v47  ;;  %v894_v62 = vrot.slane %v893_v32, 4 }
  0x8b   : > { %v927_v23 = vrot.slane %v7431_v8, 4  ;;  %v903_v63 = vrot.slane %v902_v29, 4  ;;  %v7432_v40 = vshll.u32 %v5378_v58, 16  ;;  %v878_v46 = vsel %vm5260_vm12, %v876_v48, %v5472_v16 }
  0x8c   : > { %v920_v38 = vor.u32 %v919_v39, %v918_v0  ;;  %v887_v41 = vsel %vm5260_vm12, %v885_v51, %v5482_v12  ;;  %v912_v60 = vrot.slane %v911_v3, 4  ;;  %v7433_v27 = vshrl.u32 %v5393_v59, 16  ;;  %961 = vst [vmem:[#allocation2 + $0x8] sm:$0xf] %v878_v46  ;;  %v1011_v12 = vld [vmem:[#allocation2 + $0x1dc] sm:$0x8] }
  0x8d   : > { %v928_v26 = vrot.slane %v7432_v40, 5  ;;  %965 = vst [vmem:[#allocation2 + $0x50] sm:$0xf] %v887_v41  ;;  %v896_v58 = vsel %vm5260_vm12, %v894_v62, %v5494_v42  ;;  %v905_v16 = vsel %vm5260_vm12, %v903_v63, %v5503_v30  ;;  %v7434_v10 = vshll.u32 %v5393_v59, 16  ;;  %v1014_v30 = vld [vmem:[#allocation2 + $0x224] sm:$0x8] }
  0x8e   : > { %v936_v19 = vrot.slane %v7433_v27, 4  ;;  %v921_v17 = vrot.slane %v920_v38, 4  ;;  %969 = vst [vmem:[#allocation2 + $0x98] sm:$0xf] %v896_v58  ;;  %973 = vst [vmem:[#allocation2 + $0xe0] sm:$0xf] %v905_v16  ;;  %v914_v49 = vsel %vm5260_vm12, %v912_v60, %v5520_v52 }
  0x8f   : > { %v929_v28 = vor.u32 %v928_v26, %v927_v23  ;;  %v937_v50 = vrot.slane %v7434_v10, 5  ;;  %v994_v42 = vsel %vm5293_vm14, 0, %v993_v6  ;;  %v997_v20 = vsel %vm5293_vm14, 0, %v996_v13  ;;  %977 = vst [vmem:[#allocation2 + $0x128] sm:$0xf] %v914_v49 }
  0x90   : > { %v923_v25 = vsel %vm5260_vm12, %v921_v17, %v5533_v43  ;;  %995 = vst [vmem:[#allocation2 + $0x2c] sm:$0x8] %v994_v42  ;;  %998 = vst [vmem:[#allocation2 + $0x74] sm:$0x8] %v997_v20  ;;  %v1000_v52 = vsel %vm5293_vm14, 0, %v999_v18  ;;  %v1003_v59 = vsel %vm5293_vm14, 0, %v1002_v9 }
  0x91   : > { %v930_v24 = vrot.slane %v929_v28, 4  ;;  %981 = vst [vmem:[#allocation2 + $0x170] sm:$0xf] %v923_v25  ;;  %v938_v35 = vor.u32 %v937_v50, %v936_v19  ;;  %1001 = vst [vmem:[#allocation2 + $0xbc] sm:$0x8] %v1000_v52  ;;  %v1006_v54 = vsel %vm5293_vm14, 0, %v1005_v45 }
  0x92   : > { %1004 = vst [vmem:[#allocation2 + $0x104] sm:$0x8] %v1003_v59  ;;  %v1009_v37 = vsel %vm5293_vm14, 0, %v1008_v61  ;;  %v1012_v43 = vsel %vm5293_vm14, 0, %v1011_v12  ;;  %1007 = vst [vmem:[#allocation2 + $0x14c] sm:$0x8] %v1006_v54 }
  0x93   : > { %v932_v14 = vsel %vm5260_vm12, %v930_v24, %v5547_v7  ;;  %1010 = vst [vmem:[#allocation2 + $0x194] sm:$0x8] %v1009_v37  ;;  %1013 = vst [vmem:[#allocation2 + $0x1dc] sm:$0x8] %v1012_v43  ;;  %v1015_v5 = vsel %vm5293_vm14, 0, %v1014_v30  ;;  %v939_v53 = vrot.slane %v938_v35, 4 }
  0x94   : > { %985 = vst [vmem:[#allocation2 + $0x1b8] sm:$0xf] %v932_v14  ;;  %1016 = vst [vmem:[#allocation2 + $0x224] sm:$0x8] %v1015_v5 }
  0x95   : > { %v941_v36 = vsel %vm5260_vm12, %v939_v53, %v5556_v1 }
  0x96   : > { %989 = vst [vmem:[#allocation2 + $0x200] sm:$0xf] %v941_v36 }
  0x97 PF: > { %p3997_p7 = scmp.ne.s32.totalorder %s4801_s18, 0 }
  0x99   : > { %1020 = sbr.rel (%p3997_p7) target bundleno = 215 (0xd7), region = 48 }
  0x9e   : > { %v5709_v7 = vld [vmem:[%s4890_s30] sm:$0xf]  ;;  %v5712_v31 = vld [vmem:[%s4890_s30 + $0x8] sm:$0xf]  ;;  %v5721_v11 = vld [vmem:[%s4890_s30 + $0x10] sm:$0xf] }
  0x9f   : > { %v7353_v56 = vshrl.u32 %v5709_v7, 16  ;;  %v7352_v57 = vshll.u32 %v5709_v7, 16  ;;  %1040 = vst [vmem:[#allocation2 + $0x4c] sm:$0xf] %v5709_v7  ;;  %v7351_v1 = vshrl.u32 %v5712_v31, 16  ;;  %v7350_v47 = vshll.u32 %v5712_v31, 16 }
  0xa0   : > { %1042 = vst [vmem:[#allocation2 + $0x94] sm:$0xf] %v5712_v31  ;;  %v5724_v44 = vld [vmem:[%s4890_s30 + $0x18] sm:$0xf]  ;;  %v1180_v29 = vld [vmem:[#allocation2 + $0x48] sm:$0xf] }
  0xa1   : > { %v5728_v32 = vrot.slane %v7353_v56, 7  ;;  %v5732_v33 = vrot.slane %v7351_v1, 7  ;;  %v7349_v0 = vshrl.u32 %v5721_v11, 16  ;;  %v7348_v21 = vshll.u32 %v5721_v11, 16  ;;  %1044 = vst [vmem:[#allocation2 + $0xdc] sm:$0xf] %v5721_v11 }
  0xa2   : > { %1046 = vst [vmem:[#allocation2 + $0x124] sm:$0xf] %v5724_v44  ;;  %v1184_v39 = vld [vmem:[#allocation2 + $0x90] sm:$0xf]  ;;  %v7347_v6 = vshrl.u32 %v5724_v44, 16  ;;  %v7346_v48 = vshll.u32 %v5724_v44, 16 }
  0xa3   : > { %v5741_v51 = vld [vmem:[%s4890_s30 + $0x20] sm:$0xf]  ;;  %v1060_v3 = vor.u32 %v7352_v57, %v5728_v32  ;;  %v1076_v8 = vor.u32 %v7350_v47, %v5732_v33  ;;  %v5751_v23 = vrot.slane %v7349_v0, 7  ;;  %v1188_v13 = vld [vmem:[#allocation2 + $0xd8] sm:$0xf] }
  0xa4   : > { %v7345_v62 = vshrl.u32 %v5741_v51, 16  ;;  %1048 = vst [vmem:[#allocation2 + $0x16c] sm:$0xf] %v5741_v51  ;;  %v5756_v63 = vld [vmem:[%s4890_s30 + $0x28] sm:$0xf]  ;;  %v5760_v38 = vrot.slane %v7347_v6, 7 }
  0xa5   : > { %v7344_v40 = vshll.u32 %v5741_v51, 16  ;;  %v7343_v26 = vshrl.u32 %v5756_v63, 16  ;;  %v7342_v18 = vshll.u32 %v5756_v63, 16  ;;  %1050 = vst [vmem:[#allocation2 + $0x1b4] sm:$0xf] %v5756_v63  ;;  %v1181_v41 = vsel %vm4943_vm2, %v1060_v3, %v1180_v29 }
  0xa6   : > { %v5767_v46 = vld [vmem:[%s4890_s30 + $0x30] sm:$0xf]  ;;  %v1185_v60 = vsel %vm4943_vm2, %v1076_v8, %v1184_v39  ;;  %v1092_v27 = vor.u32 %v7348_v21, %v5751_v23  ;;  %v1192_v19 = vld [vmem:[#allocation2 + $0x120] sm:$0xf]  ;;  %v5778_v9 = vrot.slane %v7345_v62, 7  ;;  %v1108_v58 = vor.u32 %v7346_v48, %v5760_v38 }
  0xa7   : > { %1052 = vst [vmem:[#allocation2 + $0x1fc] sm:$0xf] %v5767_v46  ;;  %v5782_v45 = vld [vmem:[%s4890_s30 + $0x4] sm:$0xf]  ;;  %1182 = vst [vmem:[#allocation2 + $0x48] sm:$0xf] %v1181_v41 }
  0xa8   : > { %1186 = vst [vmem:[#allocation2 + $0x90] sm:$0xf] %v1185_v60  ;;  %v1196_v16 = vld [vmem:[#allocation2 + $0x168] sm:$0xf]  ;;  %v5789_v17 = vrot.slane %v7343_v26, 7  ;;  %v7341_v28 = vshrl.u32 %v5767_v46, 16  ;;  %v1189_v12 = vsel %vm4943_vm2, %v1092_v27, %v1188_v13  ;;  %v1124_v49 = vor.u32 %v7344_v40, %v5778_v9 }
  0xa9   : > { %v7340_v61 = vshll.u32 %v5767_v46, 16  ;;  %1041 = vst [vmem:[#allocation2 + $0x70] sm:$0xf] %v5782_v45  ;;  %v1200_v10 = vld [vmem:[#allocation2 + $0x1b0] sm:$0xf]  ;;  %v1063_v50 = vshrl.u32 %v5782_v45, 16  ;;  %v1193_v30 = vsel %vm4943_vm2, %v1108_v58, %v1192_v19 }
  0xaa   : > { %v1066_v42 = vshll.u32 %v5782_v45, 16  ;;  %v5802_v20 = vld [vmem:[%s4890_s30 + $0xc] sm:$0xf]  ;;  %1190 = vst [vmem:[#allocation2 + $0xd8] sm:$0xf] %v1189_v12  ;;  %v1140_v25 = vor.u32 %v7342_v18, %v5789_v17  ;;  %v5811_v24 = vrot.slane %v7341_v28, 7  ;;  %v1197_v54 = vsel %vm4943_vm2, %v1124_v49, %v1196_v16 }
  0xab   : > { %v1204_v52 = vld [vmem:[#allocation2 + $0x1f8] sm:$0xf]  ;;  %v1079_v59 = vshrl.u32 %v5802_v20, 16  ;;  %1043 = vst [vmem:[#allocation2 + $0xb8] sm:$0xf] %v5802_v20  ;;  %v1235_v43 = vrot.slane %v1063_v50, 4 }
  0xac   : > { %v5816_v35 = vld [vmem:[%s4890_s30 + $0x14] sm:$0xf]  ;;  %1194 = vst [vmem:[#allocation2 + $0x120] sm:$0xf] %v1193_v30  ;;  %v5822_v37 = vrot.slane %v1066_v42, 5  ;;  %v1082_v14 = vshll.u32 %v5802_v20, 16  ;;  %v1201_v53 = vsel %vm4943_vm2, %v1140_v25, %v1200_v10  ;;  %v1156_v36 = vor.u32 %v7340_v61, %v5811_v24 }
  0xad   : > { %1045 = vst [vmem:[#allocation2 + $0x100] sm:$0xf] %v5816_v35  ;;  %v5829_v5 = vld [vmem:[%s4890_s30 + $0x1c] sm:$0xf]  ;;  %1198 = vst [vmem:[#allocation2 + $0x168] sm:$0xf] %v1197_v54 }
  0xae   : > { %v1244_v29 = vrot.slane %v1079_v59, 4  ;;  %v1095_v39 = vshrl.u32 %v5816_v35, 16  ;;  %1047 = vst [vmem:[#allocation2 + $0x148] sm:$0xf] %v5829_v5  ;;  %v5841_v3 = vld [vmem:[%s4890_s30 + $0x24] sm:$0xf]  ;;  %v1236_v8 = vor.u32 %v1235_v43, %v5822_v37  ;;  %v1205_v19 = vsel %vm4943_vm2, %v1156_v36, %v1204_v52 }
  0xaf   : > { %1202 = vst [vmem:[#allocation2 + $0x1b0] sm:$0xf] %v1201_v53  ;;  %v1307_v13 = vld [vmem:[#allocation2 + $0x74] sm:$0xf]  ;;  %v5846_v41 = vrot.slane %v1082_v14, 5  ;;  %v1098_v60 = vshll.u32 %v5816_v35, 16 }
  0xb0   : > { %v1111_v27 = vshrl.u32 %v5829_v5, 16  ;;  %1049 = vst [vmem:[#allocation2 + $0x190] sm:$0xf] %v5841_v3  ;;  %v1253_v58 = vrot.slane %v1095_v39, 4  ;;  %v1114_v16 = vshll.u32 %v5829_v5, 16  ;;  %v1127_v12 = vshrl.u32 %v5841_v3, 16 }
  0xb1   : > { %v5858_v49 = vld [vmem:[%s4890_s30 + $0x2c] sm:$0xf]  ;;  %1206 = vst [vmem:[#allocation2 + $0x1f8] sm:$0xf] %v1205_v19  ;;  %v1237_v10 = vrot.slane %v1236_v8, 4  ;;  %v1245_v30 = vor.u32 %v1244_v29, %v5846_v41  ;;  %v5863_v54 = vrot.slane %v1098_v60, 5 }
  0xb2   : > { %v1311_v25 = vld [vmem:[#allocation2 + $0xbc] sm:$0xf]  ;;  %v1262_v52 = vrot.slane %v1111_v27, 4  ;;  %1051 = vst [vmem:[#allocation2 + $0x1d8] sm:$0xf] %v5858_v49  ;;  %v5870_v43 = vrot.slane %v1114_v16, 5 }
  0xb3   : > { %v1130_v53 = vshll.u32 %v5841_v3, 16  ;;  %v1271_v36 = vrot.slane %v1127_v12, 4  ;;  %v1143_v29 = vshrl.u32 %v5858_v49, 16  ;;  %v5877_v8 = vld [vmem:[%s4890_s30 + $0x34] sm:$0xf]  ;;  %v1308_v19 = vsel %vm5089_vm4, %v1237_v10, %v1307_v13 }
  0xb4   : > { %v1246_v61 = vrot.slane %v1245_v30, 4  ;;  %v1254_v28 = vor.u32 %v1253_v58, %v5863_v54  ;;  %v1146_v18 = vshll.u32 %v5858_v49, 16  ;;  %1053 = vst [vmem:[#allocation2 + $0x220] sm:$0xf] %v5877_v8  ;;  %1309 = vst [vmem:[#allocation2 + $0x74] sm:$0xf] %v1308_v19  ;;  %v1263_v40 = vor.u32 %v1262_v52, %v5870_v43 }
  0xb5   : > { %v1315_v26 = vld [vmem:[#allocation2 + $0x104] sm:$0xf]  ;;  %v5887_v62 = vrot.slane %v1130_v53, 5  ;;  %v1280_v48 = vrot.slane %v1143_v29, 4  ;;  %v1159_v13 = vshrl.u32 %v5877_v8, 16  ;;  %v1162_v52 = vshll.u32 %v5877_v8, 16 }
  0xb6   : > { %v1312_v58 = vsel %vm5089_vm4, %v1246_v61, %v1311_v25  ;;  %v1255_v10 = vrot.slane %v1254_v28, 4  ;;  %v1319_v30 = vld [vmem:[#allocation2 + $0x14c] sm:$0xf]  ;;  %v5896_v19 = vrot.slane %v1146_v18, 5  ;;  %v1264_v6 = vrot.slane %v1263_v40, 4 }
  0xb7   : > { %1313 = vst [vmem:[#allocation2 + $0xbc] sm:$0xf] %v1312_v58  ;;  %v1272_v21 = vor.u32 %v1271_v36, %v5887_v62  ;;  %v1289_v0 = vrot.slane %v1159_v13, 4  ;;  %v1323_v1 = vld [vmem:[#allocation2 + $0x194] sm:$0xf]  ;;  %v5907_v61 = vrot.slane %v1162_v52, 5 }
  0xb8   : > { %v1316_v47 = vsel %vm5089_vm4, %v1255_v10, %v1315_v26  ;;  %v1281_v28 = vor.u32 %v1280_v48, %v5896_v19  ;;  %v4819_v25 = vmov 0   ;;  %v1061_v40 = vrot.slane %v5728_v32, 4  ;;  %v1327_v26 = vld [vmem:[#allocation2 + $0x1dc] sm:$0xf]  ;;  %v1226_v5 = vld [vmem:[#allocation2 + $0x1f8] sm:$0x1] }
  0xb9   : > { %1021 = vst [vmem:[#allocation2] sm:$0xff] %v4819_v25  ;;  %1022 = vst [vmem:[#allocation2 + $0x8] sm:$0xf] %v4819_v25  ;;  %v1320_v36 = vsel %vm5089_vm4, %v1264_v6, %v1319_v30  ;;  %v1273_v58 = vrot.slane %v1272_v21, 4  ;;  %v1065_v48 = vrot.slane %v1063_v50, 7  ;;  %v1077_v10 = vrot.slane %v5732_v33, 4 }
  0xba   : > { %1023 = vst [vmem:[#allocation2 + $0x24] sm:$0xff] %v4819_v25  ;;  %1024 = vst [vmem:[#allocation2 + $0x2c] sm:$0xf] %v4819_v25  ;;  %v1282_v57 = vrot.slane %v1281_v28, 4  ;;  %v1290_v56 = vor.u32 %v1289_v0, %v5907_v61  ;;  %v1081_v25 = vrot.slane %v1079_v59, 7  ;;  %v1093_v32 = vrot.slane %v5751_v23, 4 }
  0xbb   : > { %1317 = vst [vmem:[#allocation2 + $0x104] sm:$0xf] %v1316_v47  ;;  %1321 = vst [vmem:[#allocation2 + $0x14c] sm:$0xf] %v1320_v36  ;;  %v1324_v47 = vsel %vm5089_vm4, %v1273_v58, %v1323_v1  ;;  %v1331_v6 = vld [vmem:[#allocation2 + $0x224] sm:$0xf]  ;;  %v1068_v21 = vor.u32 %v1066_v42, %v1065_v48 }
  0xbc   : > { %v1097_v50 = vrot.slane %v1095_v39, 7  ;;  %v1109_v33 = vrot.slane %v5760_v38, 4  ;;  %1325 = vst [vmem:[#allocation2 + $0x194] sm:$0xf] %v1324_v47  ;;  %v1328_v0 = vsel %vm5089_vm4, %v1282_v57, %v1327_v26  ;;  %v1291_v30 = vrot.slane %v1290_v56, 4 }
  0xbd   : > { %v1084_v23 = vor.u32 %v1082_v14, %v1081_v25  ;;  %v1113_v1 = vrot.slane %v1111_v27, 7  ;;  %v1208_v59 = vld [vmem:[#allocation2 + $0x48] sm:$0x1]  ;;  %1329 = vst [vmem:[#allocation2 + $0x1dc] sm:$0xf] %v1328_v0  ;;  %v1069_v45 = vsel %vm5156_vm8, %v1061_v40, %v1068_v21  ;;  %v1125_v38 = vrot.slane %v5778_v9, 4 }
  0xbe   : > { %v1100_v42 = vor.u32 %v1098_v60, %v1097_v50  ;;  %v1129_v57 = vrot.slane %v1127_v12, 7  ;;  %v1211_v56 = vld [vmem:[#allocation2 + $0x90] sm:$0x1]  ;;  %v1214_v39 = vld [vmem:[#allocation2 + $0xd8] sm:$0x1]  ;;  %v1332_v20 = vsel %vm5089_vm4, %v1291_v30, %v1331_v6  ;;  %v1141_v35 = vrot.slane %v5789_v17, 4 }
  0xbf   : > { %1183 = vst [vmem:[#allocation2 + $0x6c] sm:$0xf] %v1069_v45  ;;  %v1085_v14 = vsel %vm5156_vm8, %v1077_v10, %v1084_v23  ;;  %v1116_v27 = vor.u32 %v1114_v16, %v1113_v1  ;;  %v1217_v60 = vld [vmem:[#allocation2 + $0x120] sm:$0x1]  ;;  %v1220_v28 = vld [vmem:[#allocation2 + $0x168] sm:$0x1] }
  0xc0   : > { %1333 = vst [vmem:[#allocation2 + $0x224] sm:$0xf] %v1332_v20  ;;  %1187 = vst [vmem:[#allocation2 + $0xb4] sm:$0xf] %v1085_v14  ;;  %v1101_v9 = vsel %vm5156_vm8, %v1093_v32, %v1100_v42  ;;  %v1132_v12 = vor.u32 %v1130_v53, %v1129_v57  ;;  %v1145_v40 = vrot.slane %v1143_v29, 7  ;;  %v1157_v36 = vrot.slane %v5811_v24, 4 }
  0xc1   : > { %v1223_v58 = vld [vmem:[#allocation2 + $0x1b0] sm:$0x1]  ;;  %1191 = vst [vmem:[#allocation2 + $0xfc] sm:$0xf] %v1101_v9  ;;  %v1117_v17 = vsel %vm5156_vm8, %v1109_v33, %v1116_v27  ;;  %v1161_v16 = vrot.slane %v1159_v13, 7  ;;  %v1209_v26 = vsel %vm5179_vm9, 0, %v1208_v59 }
  0xc2   : > { %v1212_v3 = vsel %vm5179_vm9, 0, %v1211_v56  ;;  %1195 = vst [vmem:[#allocation2 + $0x144] sm:$0xf] %v1117_v17  ;;  %v1133_v53 = vsel %vm5156_vm8, %v1125_v38, %v1132_v12  ;;  %v1148_v24 = vor.u32 %v1146_v18, %v1145_v40  ;;  %1210 = vst [vmem:[#allocation2 + $0x48] sm:$0x1] %v1209_v26  ;;  %v1215_v29 = vsel %vm5179_vm9, 0, %v1214_v39 }
  0xc3   : > { %1213 = vst [vmem:[#allocation2 + $0x90] sm:$0x1] %v1212_v3  ;;  %v1218_v13 = vsel %vm5179_vm9, 0, %v1217_v60  ;;  %1199 = vst [vmem:[#allocation2 + $0x18c] sm:$0xf] %v1133_v53  ;;  %v1164_v48 = vor.u32 %v1162_v52, %v1161_v16  ;;  %v1221_v10 = vsel %vm5179_vm9, 0, %v1220_v28 }
  0xc4   : > { %1216 = vst [vmem:[#allocation2 + $0xd8] sm:$0x1] %v1215_v29  ;;  %1219 = vst [vmem:[#allocation2 + $0x120] sm:$0x1] %v1218_v13  ;;  %v1224_v18 = vsel %vm5179_vm9, 0, %v1223_v58  ;;  %v1227_v49 = vsel %vm5179_vm9, 0, %v1226_v5  ;;  %v1149_v25 = vsel %vm5156_vm8, %v1141_v35, %v1148_v24 }
  0xc5   : > { %1222 = vst [vmem:[#allocation2 + $0x168] sm:$0x1] %v1221_v10  ;;  %1225 = vst [vmem:[#allocation2 + $0x1b0] sm:$0x1] %v1224_v18  ;;  %v7435_v8 = vshrl.u32 %v5709_v7, 16  ;;  %v7436_v32 = vshll.u32 %v5709_v7, 16  ;;  %v1165_v50 = vsel %vm5156_vm8, %v1157_v36, %v1164_v48 }
  0xc6   : > { %1228 = vst [vmem:[#allocation2 + $0x1f8] sm:$0x1] %v1227_v49  ;;  %v7437_v6 = vshrl.u32 %v5712_v31, 16  ;;  %1203 = vst [vmem:[#allocation2 + $0x1d4] sm:$0xf] %v1149_v25  ;;  %v7438_v33 = vshll.u32 %v5712_v31, 16 }
  0xc7   : > { %v1229_v52 = vrot.slane %v7435_v8, 4  ;;  %v1230_v47 = vrot.slane %v7436_v32, 5  ;;  %v7439_v30 = vshrl.u32 %v5721_v11, 16  ;;  %v7440_v1 = vshll.u32 %v5721_v11, 16  ;;  %1207 = vst [vmem:[#allocation2 + $0x21c] sm:$0xf] %v1165_v50 }
  0xc8   : > { %v1238_v21 = vrot.slane %v7437_v6, 4  ;;  %v1239_v0 = vrot.slane %v7438_v33, 5  ;;  %v7441_v7 = vshrl.u32 %v5724_v44, 16  ;;  %v7442_v38 = vshll.u32 %v5724_v44, 16  ;;  %v1334_v60 = vld [vmem:[#allocation2 + $0x74] sm:$0x8] }
  0xc9   : > { %v1247_v23 = vrot.slane %v7439_v30, 4  ;;  %v1248_v59 = vrot.slane %v7440_v1, 5  ;;  %v1231_v45 = vor.u32 %v1230_v47, %v1229_v52  ;;  %v7443_v56 = vshrl.u32 %v5741_v51, 16  ;;  %v1337_v58 = vld [vmem:[#allocation2 + $0xbc] sm:$0x8] }
  0xca   : > { %v1256_v42 = vrot.slane %v7441_v7, 4  ;;  %v1257_v57 = vrot.slane %v7442_v38, 5  ;;  %v1240_v20 = vor.u32 %v1239_v0, %v1238_v21  ;;  %v7444_v14 = vshll.u32 %v5741_v51, 16  ;;  %v1340_v3 = vld [vmem:[#allocation2 + $0x104] sm:$0x8] }
  0xcb   : > { %v1265_v39 = vrot.slane %v7443_v56, 4  ;;  %v1249_v31 = vor.u32 %v1248_v59, %v1247_v23  ;;  %v7445_v35 = vshrl.u32 %v5756_v63, 16  ;;  %v1232_v28 = vrot.slane %v1231_v45, 4  ;;  %v1343_v13 = vld [vmem:[#allocation2 + $0x14c] sm:$0x8] }
  0xcc   : > { %v1266_v27 = vrot.slane %v7444_v14, 5  ;;  %v1258_v9 = vor.u32 %v1257_v57, %v1256_v42  ;;  %v7446_v12 = vshll.u32 %v5756_v63, 16  ;;  %v7447_v44 = vshrl.u32 %v5767_v46, 16  ;;  %v1346_v48 = vld [vmem:[#allocation2 + $0x194] sm:$0x8] }
  0xcd   : > { %v1274_v11 = vrot.slane %v7445_v35, 4  ;;  %v1241_v5 = vrot.slane %v1240_v20, 4  ;;  %v1250_v17 = vrot.slane %v1249_v31, 4  ;;  %v7448_v26 = vshll.u32 %v5767_v46, 16  ;;  %v1352_v25 = vld [vmem:[#allocation2 + $0x224] sm:$0x8] }
  0xce   : > { %v1275_v40 = vrot.slane %v7446_v12, 5  ;;  %v1283_v36 = vrot.slane %v7447_v44, 4  ;;  %v1267_v16 = vor.u32 %v1266_v27, %v1265_v39  ;;  %v1234_v53 = vsel %vm5260_vm12, %v1232_v28, %v5822_v37  ;;  %v1349_v37 = vld [vmem:[#allocation2 + $0x1dc] sm:$0x8] }
  0xcf   : > { %v1284_v51 = vrot.slane %v7448_v26, 5  ;;  %v1259_v24 = vrot.slane %v1258_v9, 4  ;;  %v1335_v63 = vsel %vm5293_vm14, 0, %v1334_v60  ;;  %1306 = vst [vmem:[#allocation2 + $0x50] sm:$0xf] %v1234_v53  ;;  %v1243_v10 = vsel %vm5260_vm12, %v1241_v5, %v5846_v41 }
  0xd0   : > { %v1276_v29 = vor.u32 %v1275_v40, %v1274_v11  ;;  %v1252_v46 = vsel %vm5260_vm12, %v1250_v17, %v5863_v54  ;;  %v1268_v18 = vrot.slane %v1267_v16, 4  ;;  %1336 = vst [vmem:[#allocation2 + $0x74] sm:$0x8] %v1335_v63  ;;  %1310 = vst [vmem:[#allocation2 + $0x98] sm:$0xf] %v1243_v10  ;;  %v1338_v32 = vsel %vm5293_vm14, 0, %v1337_v58 }
  0xd1   : > { %v1285_v49 = vor.u32 %v1284_v51, %v1283_v36  ;;  %1314 = vst [vmem:[#allocation2 + $0xe0] sm:$0xf] %v1252_v46  ;;  %v1261_v8 = vsel %vm5260_vm12, %v1259_v24, %v5870_v43  ;;  %v1341_v41 = vsel %vm5293_vm14, 0, %v1340_v3  ;;  %1339 = vst [vmem:[#allocation2 + $0xbc] sm:$0x8] %v1338_v32  ;;  %v1344_v6 = vsel %vm5293_vm14, 0, %v1343_v13 }
  0xd2   : > { %v1277_v52 = vrot.slane %v1276_v29, 4  ;;  %1318 = vst [vmem:[#allocation2 + $0x128] sm:$0xf] %v1261_v8  ;;  %v1270_v54 = vsel %vm5260_vm12, %v1268_v18, %v5887_v62  ;;  %1342 = vst [vmem:[#allocation2 + $0x104] sm:$0x8] %v1341_v41  ;;  %v1347_v43 = vsel %vm5293_vm14, 0, %v1346_v48 }
  0xd3   : > { %v1286_v47 = vrot.slane %v1285_v49, 4  ;;  %1322 = vst [vmem:[#allocation2 + $0x170] sm:$0xf] %v1270_v54  ;;  %1345 = vst [vmem:[#allocation2 + $0x14c] sm:$0x8] %v1344_v6  ;;  %v1350_v50 = vsel %vm5293_vm14, 0, %v1349_v37 }
  0xd4   : > { %v1279_v21 = vsel %vm5260_vm12, %v1277_v52, %v5896_v19  ;;  %1348 = vst [vmem:[#allocation2 + $0x194] sm:$0x8] %v1347_v43  ;;  %v1353_v62 = vsel %vm5293_vm14, 0, %v1352_v25  ;;  %1351 = vst [vmem:[#allocation2 + $0x1dc] sm:$0x8] %v1350_v50 }
  0xd5   : > { %1326 = vst [vmem:[#allocation2 + $0x1b8] sm:$0xf] %v1279_v21  ;;  %v1288_v33 = vsel %vm5260_vm12, %v1286_v47, %v5907_v61  ;;  %1354 = vst [vmem:[#allocation2 + $0x224] sm:$0x8] %v1353_v62 }
  0xd6   : > { %1330 = vst [vmem:[#allocation2 + $0x200] sm:$0xf] %v1288_v33 }
  0xd7 PF: > { %p3998_p8 = scmp.ge.s32.totalorder %s4801_s18, 1 }
  0xd9   : > { %1358 = sbr.rel (%p3998_p8) target bundleno = 289 (0x121), region = 52 }
  0xde   : > { %v6046_v19 = vld [vmem:[%s4898_s9 + $0x8] sm:$0xf]  ;;  %v6049_v0 = vld [vmem:[%s4898_s9 + $0x10] sm:$0xf]  ;;  %v6058_v59 = vld [vmem:[%s4898_s9 + $0x18] sm:$0xf] }
  0xdf   : > { %v7369_v30 = vshrl.u32 %v6046_v19, 16  ;;  %v7368_v23 = vshll.u32 %v6046_v19, 16  ;;  %1379 = vst [vmem:[#allocation2 + $0x1c] sm:$0xf] %v6046_v19  ;;  %v7367_v61 = vshrl.u32 %v6049_v0, 16  ;;  %v7366_v1 = vshll.u32 %v6049_v0, 16 }
  0xe0   : > { %1381 = vst [vmem:[#allocation2 + $0x64] sm:$0xf] %v6049_v0  ;;  %v6061_v45 = vld [vmem:[%s4898_s9 + $0x20] sm:$0xf]  ;;  %v1539_v42 = vld [vmem:[#allocation2 + $0x18] sm:$0xf] }
  0xe1   : > { %v6065_v7 = vrot.slane %v7369_v30, 7  ;;  %v6069_v38 = vrot.slane %v7367_v61, 7  ;;  %v7365_v57 = vshrl.u32 %v6058_v59, 16  ;;  %v7364_v56 = vshll.u32 %v6058_v59, 16  ;;  %1383 = vst [vmem:[#allocation2 + $0xac] sm:$0xf] %v6058_v59 }
  0xe2   : > { %1385 = vst [vmem:[#allocation2 + $0xf4] sm:$0xf] %v6061_v45  ;;  %v1543_v39 = vld [vmem:[#allocation2 + $0x60] sm:$0xf]  ;;  %v7363_v20 = vshrl.u32 %v6061_v45, 16  ;;  %v7362_v31 = vshll.u32 %v6061_v45, 16 }
  0xe3   : > { %v6078_v14 = vld [vmem:[%s4898_s9 + $0x28] sm:$0xf]  ;;  %v1401_v27 = vor.u32 %v7368_v23, %v6065_v7  ;;  %v1417_v35 = vor.u32 %v7366_v1, %v6069_v38  ;;  %v6088_v11 = vrot.slane %v7365_v57, 7  ;;  %v6093_v9 = vld [vmem:[%s4898_s9 + $0x30] sm:$0xf] }
  0xe4   : > { %v1547_v60 = vld [vmem:[#allocation2 + $0xa8] sm:$0xf]  ;;  %v7361_v28 = vshrl.u32 %v6078_v14, 16  ;;  %1387 = vst [vmem:[#allocation2 + $0x13c] sm:$0xf] %v6078_v14  ;;  %v6097_v12 = vrot.slane %v7363_v20, 7 }
  0xe5   : > { %v7360_v40 = vshll.u32 %v6078_v14, 16  ;;  %v7359_v44 = vshrl.u32 %v6093_v9, 16  ;;  %v7358_v36 = vshll.u32 %v6093_v9, 16  ;;  %1389 = vst [vmem:[#allocation2 + $0x184] sm:$0xf] %v6093_v9  ;;  %v1540_v5 = vsel %vm4943_vm2, %v1401_v27, %v1539_v42 }
  0xe6   : > { %v6104_v58 = vld [vmem:[%s4898_s9 + $0x38] sm:$0xf]  ;;  %v1544_v17 = vsel %vm4943_vm2, %v1417_v35, %v1543_v39  ;;  %v1433_v16 = vor.u32 %v7364_v56, %v6088_v11  ;;  %v1551_v26 = vld [vmem:[#allocation2 + $0xf0] sm:$0xf]  ;;  %v6115_v51 = vrot.slane %v7361_v28, 7  ;;  %v1449_v53 = vor.u32 %v7362_v31, %v6097_v12 }
  0xe7   : > { %1391 = vst [vmem:[#allocation2 + $0x1cc] sm:$0xf] %v6104_v58  ;;  %v6119_v3 = vld [vmem:[%s4898_s9 + $0x40] sm:$0xf]  ;;  %1541 = vst [vmem:[#allocation2 + $0x18] sm:$0xf] %v1540_v5 }
  0xe8   : > { %1545 = vst [vmem:[#allocation2 + $0x60] sm:$0xf] %v1544_v17  ;;  %v1555_v24 = vld [vmem:[#allocation2 + $0x138] sm:$0xf]  ;;  %v6126_v29 = vrot.slane %v7359_v44, 7  ;;  %v7357_v63 = vshrl.u32 %v6104_v58, 16  ;;  %v1548_v48 = vsel %vm4943_vm2, %v1433_v16, %v1547_v60  ;;  %v1465_v10 = vor.u32 %v7360_v40, %v6115_v51 }
  0xe9   : > { %v7356_v13 = vshll.u32 %v6104_v58, 16  ;;  %1393 = vst [vmem:[#allocation2 + $0x214] sm:$0xf] %v6119_v3  ;;  %v1559_v46 = vld [vmem:[#allocation2 + $0x180] sm:$0xf]  ;;  %v7355_v18 = vshrl.u32 %v6119_v3, 16  ;;  %v1552_v25 = vsel %vm4943_vm2, %v1449_v53, %v1551_v26 }
  0xea   : > { %v7354_v49 = vshll.u32 %v6119_v3, 16  ;;  %v6139_v37 = vld [vmem:[%s4898_s9 + $0xc] sm:$0xf]  ;;  %1549 = vst [vmem:[#allocation2 + $0xa8] sm:$0xf] %v1548_v48  ;;  %v1481_v8 = vor.u32 %v7358_v36, %v6126_v29  ;;  %v6148_v52 = vrot.slane %v7357_v63, 7  ;;  %v1556_v47 = vsel %vm4943_vm2, %v1465_v10, %v1555_v24 }
  0xeb   : > { %v1563_v32 = vld [vmem:[#allocation2 + $0x1c8] sm:$0xf]  ;;  %v1404_v41 = vshrl.u32 %v6139_v37, 16  ;;  %1380 = vst [vmem:[#allocation2 + $0x40] sm:$0xf] %v6139_v37  ;;  %v6159_v6 = vrot.slane %v7355_v18, 7 }
  0xec   : > { %v6153_v54 = vld [vmem:[%s4898_s9 + $0x14] sm:$0xf]  ;;  %1553 = vst [vmem:[#allocation2 + $0xf0] sm:$0xf] %v1552_v25  ;;  %v1407_v43 = vshll.u32 %v6139_v37, 16  ;;  %v1560_v62 = vsel %vm4943_vm2, %v1481_v8, %v1559_v46  ;;  %v1497_v33 = vor.u32 %v7356_v13, %v6148_v52 }
  0xed   : > { %v1420_v21 = vshrl.u32 %v6153_v54, 16  ;;  %1382 = vst [vmem:[#allocation2 + $0x88] sm:$0xf] %v6153_v54  ;;  %v6165_v50 = vld [vmem:[%s4898_s9 + $0x1c] sm:$0xf]  ;;  %v1601_v39 = vrot.slane %v1404_v41, 4  ;;  %v1513_v60 = vor.u32 %v7354_v49, %v6159_v6 }
  0xee   : > { %1557 = vst [vmem:[#allocation2 + $0x138] sm:$0xf] %v1556_v47  ;;  %v1567_v42 = vld [vmem:[#allocation2 + $0x210] sm:$0xf]  ;;  %v1423_v27 = vshll.u32 %v6153_v54, 16  ;;  %v6184_v5 = vrot.slane %v1407_v43, 5  ;;  %v1564_v26 = vsel %vm4943_vm2, %v1497_v33, %v1563_v32 }
  0xef   : > { %1384 = vst [vmem:[#allocation2 + $0xd0] sm:$0xf] %v6165_v50  ;;  %v6177_v35 = vld [vmem:[%s4898_s9 + $0x24] sm:$0xf]  ;;  %1561 = vst [vmem:[#allocation2 + $0x180] sm:$0xf] %v1560_v62  ;;  %v1568_v46 = vsel %vm4943_vm2, %v1513_v60, %v1567_v42 }
  0xf0   : > { %v1610_v17 = vrot.slane %v1420_v21, 4  ;;  %v1436_v16 = vshrl.u32 %v6165_v50, 16  ;;  %1386 = vst [vmem:[#allocation2 + $0x118] sm:$0xf] %v6177_v35  ;;  %v6194_v53 = vrot.slane %v1423_v27, 5  ;;  %v1439_v24 = vshll.u32 %v6165_v50, 16 }
  0xf1   : > { %v1452_v48 = vshrl.u32 %v6177_v35, 16  ;;  %v6199_v10 = vld [vmem:[%s4898_s9 + $0x2c] sm:$0xf]  ;;  %1565 = vst [vmem:[#allocation2 + $0x1c8] sm:$0xf] %v1564_v26  ;;  %v1602_v25 = vor.u32 %v1601_v39, %v6184_v5  ;;  %v7373_v47 = vshll.u32 %v6177_v35, 16 }
  0xf2   : > { %v1684_v8 = vld [vmem:[#allocation2 + $0x44] sm:$0xf]  ;;  %v1619_v32 = vrot.slane %v1436_v16, 4  ;;  %1388 = vst [vmem:[#allocation2 + $0x160] sm:$0xf] %v6199_v10  ;;  %v1611_v33 = vor.u32 %v1610_v17, %v6194_v53  ;;  %v6214_v42 = vrot.slane %v1439_v24, 5 }
  0xf3   : > { %v6209_v62 = vld [vmem:[%s4898_s9 + $0x34] sm:$0xf]  ;;  %1569 = vst [vmem:[#allocation2 + $0x210] sm:$0xf] %v1568_v46  ;;  %v1688_v26 = vld [vmem:[#allocation2 + $0x8c] sm:$0xf] }
  0xf4   : > { %v1628_v39 = vrot.slane %v1452_v48, 4  ;;  %v1468_v60 = vshrl.u32 %v6199_v10, 16  ;;  %1390 = vst [vmem:[#allocation2 + $0x1a8] sm:$0xf] %v6209_v62  ;;  %v1603_v49 = vrot.slane %v1602_v25, 4  ;;  %v6222_v18 = vrot.slane %v7373_v47, 5 }
  0xf5   : > { %v7371_v17 = vshll.u32 %v6199_v10, 16  ;;  %v7372_v46 = vshrl.u32 %v6209_v62, 16  ;;  %v6227_v13 = vld [vmem:[%s4898_s9 + $0x3c] sm:$0xf]  ;;  %v1612_v63 = vrot.slane %v1611_v33, 4  ;;  %v1620_v36 = vor.u32 %v1619_v32, %v6214_v42 }
  0xf6   : > { %v1637_v44 = vrot.slane %v1468_v60, 4  ;;  %v7370_v40 = vshll.u32 %v6209_v62, 16  ;;  %1392 = vst [vmem:[#allocation2 + $0x1f0] sm:$0xf] %v6227_v13  ;;  %v1685_v25 = vsel %vm5089_vm4, %v1603_v49, %v1684_v8  ;;  %v1692_v28 = vld [vmem:[#allocation2 + $0xd4] sm:$0xf]  ;;  %v1629_v31 = vor.u32 %v1628_v39, %v6222_v18 }
  0xf7   : > { %v6239_v20 = vrot.slane %v7371_v17, 5  ;;  %v1646_v32 = vrot.slane %v7372_v46, 4  ;;  %v6244_v33 = vld [vmem:[%s4898_s9 + $0x44] sm:$0xf]  ;;  %1686 = vst [vmem:[#allocation2 + $0x44] sm:$0xf] %v1685_v25  ;;  %v1689_v56 = vsel %vm5089_vm4, %v1612_v63, %v1688_v26 }
  0xf8   : > { %v1621_v57 = vrot.slane %v1620_v36, 4  ;;  %v1696_v1 = vld [vmem:[#allocation2 + $0x11c] sm:$0xf]  ;;  %v6250_v49 = vrot.slane %v7370_v40, 5  ;;  %v1500_v8 = vshrl.u32 %v6227_v13, 16  ;;  %v1630_v39 = vrot.slane %v1629_v31, 4 }
  0xf9   : > { %1394 = vst [vmem:[#allocation2 + $0x238] sm:$0xf] %v6244_v33  ;;  %1690 = vst [vmem:[#allocation2 + $0x8c] sm:$0xf] %v1689_v56  ;;  %v1638_v61 = vor.u32 %v1637_v44, %v6239_v20  ;;  %v1503_v23 = vshll.u32 %v6227_v13, 16  ;;  %v1516_v25 = vshrl.u32 %v6244_v33, 16 }
  0xfa   : > { %v1693_v36 = vsel %vm5089_vm4, %v1621_v57, %v1692_v28  ;;  %v1700_v63 = vld [vmem:[#allocation2 + $0x164] sm:$0xf]  ;;  %v1647_v26 = vor.u32 %v1646_v32, %v6250_v49  ;;  %v1655_v30 = vrot.slane %v1500_v8, 4  ;;  %v7374_v40 = vshll.u32 %v6244_v33, 16  ;;  %v1704_v17 = vld [vmem:[#allocation2 + $0x1ac] sm:$0xf] }
  0xfb   : > { %1694 = vst [vmem:[#allocation2 + $0xd4] sm:$0xf] %v1693_v36  ;;  %v1697_v56 = vsel %vm5089_vm4, %v1630_v39, %v1696_v1  ;;  %v1639_v31 = vrot.slane %v1638_v61, 4  ;;  %v6265_v44 = vrot.slane %v1503_v23, 5  ;;  %v1664_v46 = vrot.slane %v1516_v25, 4 }
  0xfc   : > { %1698 = vst [vmem:[#allocation2 + $0x11c] sm:$0xf] %v1697_v56  ;;  %v1648_v47 = vrot.slane %v1647_v26, 4  ;;  %v6269_v57 = vrot.slane %v7374_v40, 5  ;;  %v1402_v28 = vrot.slane %v6065_v7, 4  ;;  %v1406_v32 = vrot.slane %v1404_v41, 7 }
  0xfd   : > { %v1701_v61 = vsel %vm5089_vm4, %v1639_v31, %v1700_v63  ;;  %v1656_v1 = vor.u32 %v1655_v30, %v6265_v44  ;;  %v1418_v39 = vrot.slane %v6069_v38, 4  ;;  %v1422_v36 = vrot.slane %v1420_v21, 7  ;;  %v1708_v56 = vld [vmem:[#allocation2 + $0x1f4] sm:$0xf]  ;;  %v1712_v30 = vld [vmem:[#allocation2 + $0x23c] sm:$0xf] }
  0xfe   : > { %1702 = vst [vmem:[#allocation2 + $0x164] sm:$0xf] %v1701_v61  ;;  %v1705_v26 = vsel %vm5089_vm4, %v1648_v47, %v1704_v17  ;;  %v1665_v7 = vor.u32 %v1664_v46, %v6269_v57  ;;  %v1409_v41 = vor.u32 %v1407_v43, %v1406_v32  ;;  %v1434_v40 = vrot.slane %v6088_v11, 4  ;;  %v1577_v50 = vld [vmem:[#allocation2 + $0xa8] sm:$0x1] }
  0xff   : > { %1706 = vst [vmem:[#allocation2 + $0x1ac] sm:$0xf] %v1705_v26  ;;  %v1657_v63 = vrot.slane %v1656_v1, 4  ;;  %v1425_v38 = vor.u32 %v1423_v27, %v1422_v36  ;;  %v1438_v21 = vrot.slane %v1436_v16, 7  ;;  %v1450_v31 = vrot.slane %v6097_v12, 4 }
 0x100   : > { %v1666_v47 = vrot.slane %v1665_v7, 4  ;;  %v1410_v17 = vsel %vm5156_vm8, %v1402_v28, %v1409_v41  ;;  %v1454_v37 = vrot.slane %v1452_v48, 7  ;;  %v1466_v11 = vrot.slane %v6115_v51, 4  ;;  %v1571_v16 = vld [vmem:[#allocation2 + $0x18] sm:$0x1] }
 0x101   : > { %v1709_v43 = vsel %vm5089_vm4, %v1657_v63, %v1708_v56  ;;  %1542 = vst [vmem:[#allocation2 + $0x3c] sm:$0xf] %v1410_v17  ;;  %v1426_v54 = vsel %vm5156_vm8, %v1418_v39, %v1425_v38  ;;  %v1441_v27 = vor.u32 %v1439_v24, %v1438_v21  ;;  %v1470_v12 = vrot.slane %v1468_v60, 7  ;;  %v1574_v1 = vld [vmem:[#allocation2 + $0x60] sm:$0x1] }
 0x102   : > { %1710 = vst [vmem:[#allocation2 + $0x1f4] sm:$0xf] %v1709_v43  ;;  %v1713_v48 = vsel %vm5089_vm4, %v1666_v47, %v1712_v30  ;;  %1546 = vst [vmem:[#allocation2 + $0x84] sm:$0xf] %v1426_v54  ;;  %v7449_v51 = vshll.u32 %v6177_v35, 16  ;;  %v1482_v28 = vrot.slane %v6126_v29, 4 }
 0x103   : > { %v7450_v32 = vshrl.u32 %v6209_v62, 16  ;;  %1714 = vst [vmem:[#allocation2 + $0x23c] sm:$0xf] %v1713_v48  ;;  %v1442_v24 = vsel %vm5156_vm8, %v1434_v40, %v1441_v27  ;;  %v7451_v60 = vshll.u32 %v6199_v10, 16  ;;  %v1498_v36 = vrot.slane %v6148_v52, 4 }
 0x104   : > { %v1457_v46 = vor.u32 %v7449_v51, %v1454_v37  ;;  %v1502_v26 = vrot.slane %v1500_v8, 7  ;;  %v1580_v56 = vld [vmem:[#allocation2 + $0xf0] sm:$0x1]  ;;  %v1583_v35 = vld [vmem:[#allocation2 + $0x138] sm:$0x1]  ;;  %v7452_v7 = vshll.u32 %v6209_v62, 16 }
 0x105   : > { %v1486_v61 = vrot.slane %v7450_v32, 7  ;;  %v1473_v39 = vor.u32 %v7451_v60, %v1470_v12  ;;  %1550 = vst [vmem:[#allocation2 + $0xcc] sm:$0xf] %v1442_v24  ;;  %v1514_v63 = vrot.slane %v6159_v6, 4  ;;  %v1518_v30 = vrot.slane %v1516_v25, 7 }
 0x106   : > { %v1458_v29 = vsel %vm5156_vm8, %v1450_v31, %v1457_v46  ;;  %v1586_v38 = vld [vmem:[#allocation2 + $0x180] sm:$0x1]  ;;  %v1589_v40 = vld [vmem:[#allocation2 + $0x1c8] sm:$0x1]  ;;  %v1505_v52 = vor.u32 %v1503_v23, %v1502_v26  ;;  %v1572_v8 = vsel %vm5179_vm9, 0, %v1571_v16  ;;  %v1575_v21 = vsel %vm5179_vm9, 0, %v1574_v1 }
 0x107   : > { %v1489_v41 = vor.u32 %v7452_v7, %v1486_v61  ;;  %1554 = vst [vmem:[#allocation2 + $0x114] sm:$0xf] %v1458_v29  ;;  %v1474_v10 = vsel %vm5156_vm8, %v1466_v11, %v1473_v39  ;;  %v1592_v62 = vld [vmem:[#allocation2 + $0x210] sm:$0x1]  ;;  %v7453_v25 = vshll.u32 %v6244_v33, 16  ;;  %v1578_v13 = vsel %vm5179_vm9, 0, %v1577_v50 }
 0x108   : > { %1558 = vst [vmem:[#allocation2 + $0x15c] sm:$0xf] %v1474_v10  ;;  %1573 = vst [vmem:[#allocation2 + $0x18] sm:$0x1] %v1572_v8  ;;  %v1581_v23 = vsel %vm5179_vm9, 0, %v1580_v56  ;;  %v1506_v47 = vsel %vm5156_vm8, %v1498_v36, %v1505_v52  ;;  %v1584_v17 = vsel %vm5179_vm9, 0, %v1583_v35 }
 0x109   : > { %v1490_v6 = vsel %vm5156_vm8, %v1482_v28, %v1489_v41  ;;  %v1521_v31 = vor.u32 %v7453_v25, %v1518_v30  ;;  %1576 = vst [vmem:[#allocation2 + $0x60] sm:$0x1] %v1575_v21  ;;  %1579 = vst [vmem:[#allocation2 + $0xa8] sm:$0x1] %v1578_v13  ;;  %v1587_v33 = vsel %vm5179_vm9, 0, %v1586_v38  ;;  %v1590_v37 = vsel %vm5179_vm9, 0, %v1589_v40 }
 0x10a   : > { %1562 = vst [vmem:[#allocation2 + $0x1a4] sm:$0xf] %v1490_v6  ;;  %1582 = vst [vmem:[#allocation2 + $0xf0] sm:$0x1] %v1581_v23  ;;  %v1593_v43 = vsel %vm5179_vm9, 0, %v1592_v62  ;;  %v7454_v54 = vshrl.u32 %v6046_v19, 16 }
 0x10b   : > { %1566 = vst [vmem:[#allocation2 + $0x1ec] sm:$0xf] %v1506_v47  ;;  %v1522_v11 = vsel %vm5156_vm8, %v1514_v63, %v1521_v31  ;;  %1585 = vst [vmem:[#allocation2 + $0x138] sm:$0x1] %v1584_v17  ;;  %v7455_v12 = vshll.u32 %v6046_v19, 16  ;;  %v7456_v48 = vshrl.u32 %v6049_v0, 16 }
 0x10c   : > { %1588 = vst [vmem:[#allocation2 + $0x180] sm:$0x1] %v1587_v33  ;;  %1591 = vst [vmem:[#allocation2 + $0x1c8] sm:$0x1] %v1590_v37  ;;  %v1595_v27 = vrot.slane %v7454_v54, 4  ;;  %v7457_v46 = vshll.u32 %v6049_v0, 16 }
 0x10d   : > { %v1596_v16 = vrot.slane %v7455_v12, 5  ;;  %1570 = vst [vmem:[#allocation2 + $0x234] sm:$0xf] %v1522_v11  ;;  %1594 = vst [vmem:[#allocation2 + $0x210] sm:$0x1] %v1593_v43  ;;  %v1604_v51 = vrot.slane %v7456_v48, 4 }
 0x10e   : > { %v1605_v28 = vrot.slane %v7457_v46, 5  ;;  %v7458_v32 = vshrl.u32 %v6058_v59, 16  ;;  %v7459_v1 = vshll.u32 %v6058_v59, 16  ;;  %v7460_v60 = vshrl.u32 %v6061_v45, 16  ;;  %v1715_v59 = vld [vmem:[#allocation2 + $0x44] sm:$0x8] }
 0x10f   : > { %v1597_v24 = vor.u32 %v1596_v16, %v1595_v27  ;;  %v7461_v19 = vshll.u32 %v6061_v45, 16  ;;  %v7462_v26 = vshrl.u32 %v6078_v14, 16  ;;  %v7463_v0 = vshll.u32 %v6078_v14, 16  ;;  %v1718_v8 = vld [vmem:[#allocation2 + $0x8c] sm:$0x8] }
 0x110   : > { %v1613_v61 = vrot.slane %v7458_v32, 4  ;;  %v1614_v50 = vrot.slane %v7459_v1, 5  ;;  %v1622_v39 = vrot.slane %v7460_v60, 4  ;;  %v1606_v35 = vor.u32 %v1605_v28, %v1604_v51  ;;  %v1721_v31 = vld [vmem:[#allocation2 + $0xd4] sm:$0x8] }
 0x111   : > { %v1623_v36 = vrot.slane %v7461_v19, 5  ;;  %v1631_v56 = vrot.slane %v7462_v26, 4  ;;  %v1632_v7 = vrot.slane %v7463_v0, 5  ;;  %v7464_v41 = vshrl.u32 %v6093_v9, 16  ;;  %v1724_v33 = vld [vmem:[#allocation2 + $0x11c] sm:$0x8] }
 0x112   : > { %v1615_v29 = vor.u32 %v1614_v50, %v1613_v61  ;;  %v1598_v30 = vrot.slane %v1597_v24, 4  ;;  %v7465_v40 = vshll.u32 %v6093_v9, 16  ;;  %v7466_v45 = vshrl.u32 %v6104_v58, 16  ;;  %v1727_v37 = vld [vmem:[#allocation2 + $0x164] sm:$0x8] }
 0x113   : > { %v1640_v63 = vrot.slane %v7464_v41, 4  ;;  %v1624_v38 = vor.u32 %v1623_v36, %v1622_v39  ;;  %v1607_v21 = vrot.slane %v1606_v35, 4  ;;  %v1633_v6 = vor.u32 %v1632_v7, %v1631_v56  ;;  %v1730_v27 = vld [vmem:[#allocation2 + $0x1ac] sm:$0x8]  ;;  %v1736_v46 = vld [vmem:[#allocation2 + $0x23c] sm:$0x8] }
 0x114   : > { %v1641_v10 = vrot.slane %v7465_v40, 5  ;;  %v1649_v52 = vrot.slane %v7466_v45, 4  ;;  %v1616_v62 = vrot.slane %v1615_v29, 4  ;;  %v7467_v25 = vshll.u32 %v6104_v58, 16 }
 0x115   : > { %v1600_v13 = vsel %vm5260_vm12, %v1598_v30, %v6184_v5  ;;  %v1625_v23 = vrot.slane %v1624_v38, 4  ;;  %v7468_v9 = vshrl.u32 %v6119_v3, 16  ;;  %v1609_v11 = vsel %vm5260_vm12, %v1607_v21, %v6194_v53  ;;  %v1733_v5 = vld [vmem:[#allocation2 + $0x1f4] sm:$0x8] }
 0x116   : > { %v1650_v14 = vrot.slane %v7467_v25, 5  ;;  %v1642_v47 = vor.u32 %v1641_v10, %v1640_v63  ;;  %1683 = vst [vmem:[#allocation2 + $0x20] sm:$0xf] %v1600_v13  ;;  %v1618_v58 = vsel %vm5260_vm12, %v1616_v62, %v6214_v42  ;;  %v1634_v43 = vrot.slane %v1633_v6, 4  ;;  %1687 = vst [vmem:[#allocation2 + $0x68] sm:$0xf] %v1609_v11 }
 0x117   : > { %v1658_v17 = vrot.slane %v7468_v9, 4  ;;  %1691 = vst [vmem:[#allocation2 + $0xb0] sm:$0xf] %v1618_v58  ;;  %v1627_v12 = vsel %vm5260_vm12, %v1625_v23, %v6222_v18  ;;  %v7469_v48 = vshll.u32 %v6119_v3, 16  ;;  %v1716_v53 = vsel %vm5293_vm14, 0, %v1715_v59 }
 0x118   : > { %v1651_v54 = vor.u32 %v1650_v14, %v1649_v52  ;;  %v1643_v16 = vrot.slane %v1642_v47, 4  ;;  %1695 = vst [vmem:[#allocation2 + $0xf8] sm:$0xf] %v1627_v12  ;;  %v1636_v42 = vsel %vm5260_vm12, %v1634_v43, %v6239_v20  ;;  %1717 = vst [vmem:[#allocation2 + $0x44] sm:$0x8] %v1716_v53  ;;  %v1719_v32 = vsel %vm5293_vm14, 0, %v1718_v8 }
 0x119   : > { %v1659_v51 = vrot.slane %v7469_v48, 5  ;;  %v1722_v18 = vsel %vm5293_vm14, 0, %v1721_v31  ;;  %1699 = vst [vmem:[#allocation2 + $0x140] sm:$0xf] %v1636_v42  ;;  %1720 = vst [vmem:[#allocation2 + $0x8c] sm:$0x8] %v1719_v32 }
 0x11a   : > { %v1652_v28 = vrot.slane %v1651_v54, 4  ;;  %v1645_v3 = vsel %vm5260_vm12, %v1643_v16, %v6250_v49  ;;  %1723 = vst [vmem:[#allocation2 + $0xd4] sm:$0x8] %v1722_v18  ;;  %v1725_v1 = vsel %vm5293_vm14, 0, %v1724_v33  ;;  %v1728_v20 = vsel %vm5293_vm14, 0, %v1727_v37 }
 0x11b   : > { %v1660_v61 = vor.u32 %v1659_v51, %v1658_v17  ;;  %1703 = vst [vmem:[#allocation2 + $0x188] sm:$0xf] %v1645_v3  ;;  %1726 = vst [vmem:[#allocation2 + $0x11c] sm:$0x8] %v1725_v1  ;;  %v1731_v24 = vsel %vm5293_vm14, 0, %v1730_v27  ;;  %v1734_v49 = vsel %vm5293_vm14, 0, %v1733_v5 }
 0x11c   : > { %v1654_v50 = vsel %vm5260_vm12, %v1652_v28, %v6265_v44  ;;  %1729 = vst [vmem:[#allocation2 + $0x164] sm:$0x8] %v1728_v20  ;;  %v1737_v60 = vsel %vm5293_vm14, 0, %v1736_v46  ;;  %1732 = vst [vmem:[#allocation2 + $0x1ac] sm:$0x8] %v1731_v24 }
 0x11d   : > { %1707 = vst [vmem:[#allocation2 + $0x1d0] sm:$0xf] %v1654_v50  ;;  %v1661_v39 = vrot.slane %v1660_v61, 4  ;;  %1735 = vst [vmem:[#allocation2 + $0x1f4] sm:$0x8] %v1734_v49 }
 0x11e   : > { %1738 = vst [vmem:[#allocation2 + $0x23c] sm:$0x8] %v1737_v60 }
 0x11f   : > { %v1663_v44 = vsel %vm5260_vm12, %v1661_v39, %v6269_v57 }
 0x120   : > { %1711 = vst [vmem:[#allocation2 + $0x218] sm:$0xf] %v1663_v44 }
 0x121 PF: > { %p4017_p9 = scmp.ne.s32.totalorder %s4801_s18, 1 }
 0x123   : > { %1742 = sbr.rel (%p4017_p9) target bundleno = 353 (0x161), region = 56 }
 0x128   : > { %v6425_v19 = vld [vmem:[%s4890_s30 + $0x48] sm:$0xf]  ;;  %v6428_v36 = vld [vmem:[%s4890_s30 + $0x50] sm:$0xf]  ;;  %v6437_v29 = vld [vmem:[%s4890_s30 + $0x58] sm:$0xf] }
 0x129   : > { %v1778_v26 = vshrl.u32 %v6425_v19, 16  ;;  %v7387_v56 = vshll.u32 %v6425_v19, 16  ;;  %1763 = vst [vmem:[#allocation2 + $0x1c] sm:$0xf] %v6425_v19  ;;  %v7386_v57 = vshrl.u32 %v6428_v36, 16  ;;  %v7385_v35 = vshll.u32 %v6428_v36, 16 }
 0x12a   : > { %1765 = vst [vmem:[#allocation2 + $0x64] sm:$0xf] %v6428_v36  ;;  %v6440_v0 = vld [vmem:[%s4890_s30 + $0x60] sm:$0xf]  ;;  %v1903_v41 = vld [vmem:[#allocation2 + $0x18] sm:$0xf] }
 0x12b   : > { %v6444_v7 = vrot.slane %v1778_v26, 7  ;;  %v6448_v63 = vrot.slane %v7386_v57, 7  ;;  %v7384_v59 = vshrl.u32 %v6437_v29, 16  ;;  %v7383_v30 = vshll.u32 %v6437_v29, 16  ;;  %1767 = vst [vmem:[#allocation2 + $0xac] sm:$0xf] %v6437_v29 }
 0x12c   : > { %1769 = vst [vmem:[#allocation2 + $0xf4] sm:$0xf] %v6440_v0  ;;  %v1907_v38 = vld [vmem:[#allocation2 + $0x60] sm:$0xf]  ;;  %v7382_v40 = vshrl.u32 %v6440_v0, 16  ;;  %v7381_v10 = vshll.u32 %v6440_v0, 16 }
 0x12d   : > { %v6457_v45 = vld [vmem:[%s4890_s30 + $0x68] sm:$0xf]  ;;  %v1783_v52 = vor.u32 %v7387_v56, %v6444_v7  ;;  %v1799_v8 = vor.u32 %v7385_v35, %v6448_v63  ;;  %v6467_v21 = vrot.slane %v7384_v59, 7  ;;  %v6472_v25 = vld [vmem:[%s4890_s30 + $0x70] sm:$0xf] }
 0x12e   : > { %v1911_v62 = vld [vmem:[#allocation2 + $0xa8] sm:$0xf]  ;;  %v7380_v6 = vshrl.u32 %v6457_v45, 16  ;;  %1771 = vst [vmem:[#allocation2 + $0x13c] sm:$0xf] %v6457_v45  ;;  %v6476_v14 = vrot.slane %v7382_v40, 7 }
 0x12f   : > { %v7379_v31 = vshll.u32 %v6457_v45, 16  ;;  %v7378_v13 = vshrl.u32 %v6472_v25, 16  ;;  %v7377_v23 = vshll.u32 %v6472_v25, 16  ;;  %1773 = vst [vmem:[#allocation2 + $0x184] sm:$0xf] %v6472_v25  ;;  %v1904_v9 = vsel %vm4943_vm2, %v1783_v52, %v1903_v41 }
 0x130   : > { %v6483_v47 = vld [vmem:[%s4890_s30 + $0x78] sm:$0xf]  ;;  %v1908_v17 = vsel %vm4943_vm2, %v1799_v8, %v1907_v38  ;;  %v1815_v33 = vor.u32 %v7383_v30, %v6467_v21  ;;  %v1915_v37 = vld [vmem:[#allocation2 + $0xf0] sm:$0xf]  ;;  %v6494_v11 = vrot.slane %v7380_v6, 7  ;;  %v1831_v43 = vor.u32 %v7381_v10, %v6476_v14 }
 0x131   : > { %1775 = vst [vmem:[#allocation2 + $0x1cc] sm:$0xf] %v6483_v47  ;;  %v6498_v58 = vld [vmem:[%s4890_s30 + $0x4c] sm:$0xf]  ;;  %1905 = vst [vmem:[#allocation2 + $0x18] sm:$0xf] %v1904_v9 }
 0x132   : > { %1909 = vst [vmem:[#allocation2 + $0x60] sm:$0xf] %v1908_v17  ;;  %v1919_v54 = vld [vmem:[#allocation2 + $0x138] sm:$0xf]  ;;  %v6505_v27 = vrot.slane %v7378_v13, 7  ;;  %v7376_v5 = vshrl.u32 %v6483_v47, 16  ;;  %v1912_v16 = vsel %vm4943_vm2, %v1815_v33, %v1911_v62  ;;  %v1847_v48 = vor.u32 %v7379_v31, %v6494_v11 }
 0x133   : > { %v7375_v12 = vshll.u32 %v6483_v47, 16  ;;  %1764 = vst [vmem:[#allocation2 + $0x40] sm:$0xf] %v6498_v58  ;;  %v1923_v51 = vld [vmem:[#allocation2 + $0x180] sm:$0xf]  ;;  %v1786_v53 = vshrl.u32 %v6498_v58, 16  ;;  %v1916_v28 = vsel %vm4943_vm2, %v1831_v43, %v1915_v37 }
 0x134   : > { %v1789_v46 = vshll.u32 %v6498_v58, 16  ;;  %v6518_v42 = vld [vmem:[%s4890_s30 + $0x54] sm:$0xf]  ;;  %1913 = vst [vmem:[#allocation2 + $0xa8] sm:$0xf] %v1912_v16  ;;  %v1863_v32 = vor.u32 %v7377_v23, %v6505_v27  ;;  %v6527_v18 = vrot.slane %v7376_v5, 7  ;;  %v1920_v20 = vsel %vm4943_vm2, %v1847_v48, %v1919_v54 }
 0x135   : > { %v1927_v3 = vld [vmem:[#allocation2 + $0x1c8] sm:$0xf]  ;;  %v1802_v61 = vshrl.u32 %v6518_v42, 16  ;;  %1766 = vst [vmem:[#allocation2 + $0x88] sm:$0xf] %v6518_v42  ;;  %v1958_v24 = vrot.slane %v1786_v53, 4 }
 0x136   : > { %v6532_v1 = vld [vmem:[%s4890_s30 + $0x5c] sm:$0xf]  ;;  %1917 = vst [vmem:[#allocation2 + $0xf0] sm:$0xf] %v1916_v28  ;;  %v6538_v50 = vrot.slane %v1789_v46, 5  ;;  %v1805_v49 = vshll.u32 %v6518_v42, 16  ;;  %v1924_v39 = vsel %vm4943_vm2, %v1863_v32, %v1923_v51  ;;  %v1879_v44 = vor.u32 %v7375_v12, %v6527_v18 }
 0x137   : > { %1768 = vst [vmem:[#allocation2 + $0xd0] sm:$0xf] %v6532_v1  ;;  %v6545_v60 = vld [vmem:[%s4890_s30 + $0x64] sm:$0xf]  ;;  %1921 = vst [vmem:[#allocation2 + $0x138] sm:$0xf] %v1920_v20 }
 0x138   : > { %v1967_v41 = vrot.slane %v1802_v61, 4  ;;  %v1818_v38 = vshrl.u32 %v6532_v1, 16  ;;  %1770 = vst [vmem:[#allocation2 + $0x118] sm:$0xf] %v6545_v60  ;;  %v6557_v52 = vld [vmem:[%s4890_s30 + $0x6c] sm:$0xf]  ;;  %v1959_v8 = vor.u32 %v1958_v24, %v6538_v50  ;;  %v1928_v37 = vsel %vm4943_vm2, %v1879_v44, %v1927_v3 }
 0x139   : > { %1925 = vst [vmem:[#allocation2 + $0x180] sm:$0xf] %v1924_v39  ;;  %v2030_v62 = vld [vmem:[#allocation2 + $0x44] sm:$0xf]  ;;  %v6562_v9 = vrot.slane %v1805_v49, 5  ;;  %v1821_v17 = vshll.u32 %v6532_v1, 16 }
 0x13a   : > { %v1834_v33 = vshrl.u32 %v6545_v60, 16  ;;  %1772 = vst [vmem:[#allocation2 + $0x160] sm:$0xf] %v6557_v52  ;;  %v1976_v43 = vrot.slane %v1818_v38, 4  ;;  %v1837_v54 = vshll.u32 %v6545_v60, 16  ;;  %v1850_v16 = vshrl.u32 %v6557_v52, 16 }
 0x13b   : > { %v6574_v48 = vld [vmem:[%s4890_s30 + $0x74] sm:$0xf]  ;;  %1929 = vst [vmem:[#allocation2 + $0x1c8] sm:$0xf] %v1928_v37  ;;  %v1960_v51 = vrot.slane %v1959_v8, 4  ;;  %v1968_v28 = vor.u32 %v1967_v41, %v6562_v9  ;;  %v6579_v20 = vrot.slane %v1821_v17, 5 }
 0x13c   : > { %v2034_v32 = vld [vmem:[#allocation2 + $0x8c] sm:$0xf]  ;;  %v1985_v22 = vrot.slane %v1834_v33, 4  ;;  %1774 = vst [vmem:[#allocation2 + $0x1a8] sm:$0xf] %v6574_v48  ;;  %v6586_v3 = vrot.slane %v1837_v54, 5 }
 0x13d   : > { %v1853_v24 = vshll.u32 %v6557_v52, 16  ;;  %v1994_v39 = vrot.slane %v1850_v16, 4  ;;  %v1866_v44 = vshrl.u32 %v6574_v48, 16  ;;  %v6593_v41 = vld [vmem:[%s4890_s30 + $0x7c] sm:$0xf]  ;;  %v2031_v8 = vsel %vm5089_vm4, %v1960_v51, %v2030_v62 }
 0x13e   : > { %v1969_v37 = vrot.slane %v1968_v28, 4  ;;  %v1977_v12 = vor.u32 %v1976_v43, %v6579_v20  ;;  %v1869_v5 = vshll.u32 %v6574_v48, 16  ;;  %1776 = vst [vmem:[#allocation2 + $0x1f0] sm:$0xf] %v6593_v41  ;;  %2032 = vst [vmem:[#allocation2 + $0x44] sm:$0xf] %v2031_v8  ;;  %v1986_v13 = vor.u32 %v1985_v22, %v6586_v3 }
 0x13f   : > { %v2038_v23 = vld [vmem:[#allocation2 + $0xd4] sm:$0xf]  ;;  %v6603_v31 = vrot.slane %v1853_v24, 5  ;;  %v2003_v6 = vrot.slane %v1866_v44, 4  ;;  %v1882_v62 = vshrl.u32 %v6593_v41, 16  ;;  %v1885_v22 = vshll.u32 %v6593_v41, 16 }
 0x140   : > { %v2035_v43 = vsel %vm5089_vm4, %v1969_v37, %v2034_v32  ;;  %v1978_v51 = vrot.slane %v1977_v12, 4  ;;  %v2042_v28 = vld [vmem:[#allocation2 + $0x11c] sm:$0xf]  ;;  %v6612_v8 = vrot.slane %v1869_v5, 5  ;;  %v1987_v10 = vrot.slane %v1986_v13, 4 }
 0x141   : > { %2036 = vst [vmem:[#allocation2 + $0x8c] sm:$0xf] %v2035_v43  ;;  %v1995_v40 = vor.u32 %v1994_v39, %v6603_v31  ;;  %v2012_v30 = vrot.slane %v1882_v62, 4  ;;  %v2046_v35 = vld [vmem:[#allocation2 + $0x164] sm:$0xf]  ;;  %v6623_v32 = vrot.slane %v1885_v22, 5 }
 0x142   : > { %v2039_v59 = vsel %vm5089_vm4, %v1978_v51, %v2038_v23  ;;  %v2004_v12 = vor.u32 %v2003_v6, %v6612_v8  ;;  %v4820_v37 = vmov 0   ;;  %v1784_v13 = vrot.slane %v6444_v7, 4  ;;  %v2050_v23 = vld [vmem:[#allocation2 + $0x1ac] sm:$0xf]  ;;  %v1949_v60 = vld [vmem:[#allocation2 + $0x1c8] sm:$0x1] }
 0x143   : > { %1744 = vst [vmem:[#allocation2 + $0x210] sm:$0xff] %v4820_v37  ;;  %1745 = vst [vmem:[#allocation2 + $0x218] sm:$0xf] %v4820_v37  ;;  %v2043_v39 = vsel %vm5089_vm4, %v1987_v10, %v2042_v28  ;;  %v1996_v43 = vrot.slane %v1995_v40, 4  ;;  %v1788_v6 = vrot.slane %v1786_v53, 7  ;;  %v1800_v51 = vrot.slane %v6448_v63, 4 }
 0x144   : > { %1746 = vst [vmem:[#allocation2 + $0x234] sm:$0xff] %v4820_v37  ;;  %1747 = vst [vmem:[#allocation2 + $0x23c] sm:$0xf] %v4820_v37  ;;  %v2005_v57 = vrot.slane %v2004_v12, 4  ;;  %v2013_v56 = vor.u32 %v2012_v30, %v6623_v32  ;;  %v1804_v37 = vrot.slane %v1802_v61, 7  ;;  %v1816_v7 = vrot.slane %v6467_v21, 4 }
 0x145   : > { %2040 = vst [vmem:[#allocation2 + $0xd4] sm:$0xf] %v2039_v59  ;;  %2044 = vst [vmem:[#allocation2 + $0x11c] sm:$0xf] %v2043_v39  ;;  %v2047_v59 = vsel %vm5089_vm4, %v1996_v43, %v2046_v35  ;;  %v2054_v10 = vld [vmem:[#allocation2 + $0x1f4] sm:$0xf]  ;;  %v1791_v40 = vor.u32 %v1789_v46, %v1788_v6 }
 0x146   : > { %v1820_v53 = vrot.slane %v1818_v38, 7  ;;  %v1832_v63 = vrot.slane %v6476_v14, 4  ;;  %2048 = vst [vmem:[#allocation2 + $0x164] sm:$0xf] %v2047_v59  ;;  %v2051_v30 = vsel %vm5089_vm4, %v2005_v57, %v2050_v23  ;;  %v2014_v28 = vrot.slane %v2013_v56, 4 }
 0x147   : > { %v1807_v21 = vor.u32 %v1805_v49, %v1804_v37  ;;  %v1836_v35 = vrot.slane %v1834_v33, 7  ;;  %v1931_v61 = vld [vmem:[#allocation2 + $0x18] sm:$0x1]  ;;  %2052 = vst [vmem:[#allocation2 + $0x1ac] sm:$0xf] %v2051_v30  ;;  %v1792_v58 = vsel %vm5156_vm8, %v1784_v13, %v1791_v40  ;;  %v1848_v14 = vrot.slane %v6494_v11, 4 }
 0x148   : > { %v1823_v46 = vor.u32 %v1821_v17, %v1820_v53  ;;  %v1852_v57 = vrot.slane %v1850_v16, 7  ;;  %v1934_v56 = vld [vmem:[#allocation2 + $0x60] sm:$0x1]  ;;  %v1937_v38 = vld [vmem:[#allocation2 + $0xa8] sm:$0x1]  ;;  %v2055_v42 = vsel %vm5089_vm4, %v2014_v28, %v2054_v10  ;;  %v1864_v1 = vrot.slane %v6505_v27, 4 }
 0x149   : > { %1906 = vst [vmem:[#allocation2 + $0x3c] sm:$0xf] %v1792_v58  ;;  %v1808_v49 = vsel %vm5156_vm8, %v1800_v51, %v1807_v21  ;;  %v1839_v33 = vor.u32 %v1837_v54, %v1836_v35  ;;  %v1940_v17 = vld [vmem:[#allocation2 + $0xf0] sm:$0x1]  ;;  %v1943_v12 = vld [vmem:[#allocation2 + $0x138] sm:$0x1] }
 0x14a   : > { %2056 = vst [vmem:[#allocation2 + $0x1f4] sm:$0xf] %v2055_v42  ;;  %1910 = vst [vmem:[#allocation2 + $0x84] sm:$0xf] %v1808_v49  ;;  %v1824_v11 = vsel %vm5156_vm8, %v1816_v7, %v1823_v46  ;;  %v1855_v55 = vor.u32 %v1853_v24, %v1852_v57  ;;  %v1868_v16 = vrot.slane %v1866_v44, 7  ;;  %v1880_v13 = vrot.slane %v6527_v18, 4 }
 0x14b   : > { %v1946_v39 = vld [vmem:[#allocation2 + $0x180] sm:$0x1]  ;;  %1914 = vst [vmem:[#allocation2 + $0xcc] sm:$0xf] %v1824_v11  ;;  %v1840_v27 = vsel %vm5156_vm8, %v1832_v63, %v1839_v33  ;;  %v1884_v54 = vrot.slane %v1882_v62, 7  ;;  %v1932_v43 = vsel %vm5179_vm9, 0, %v1931_v61 }
 0x14c   : > { %v1935_v52 = vsel %vm5179_vm9, 0, %v1934_v56  ;;  %1918 = vst [vmem:[#allocation2 + $0x114] sm:$0xf] %v1840_v27  ;;  %v1856_v24 = vsel %vm5156_vm8, %v1848_v14, %v1855_v55  ;;  %v1871_v18 = vor.u32 %v1869_v5, %v1868_v16  ;;  %1933 = vst [vmem:[#allocation2 + $0x18] sm:$0x1] %v1932_v43  ;;  %v1938_v44 = vsel %vm5179_vm9, 0, %v1937_v38 }
 0x14d   : > { %1936 = vst [vmem:[#allocation2 + $0x60] sm:$0x1] %v1935_v52  ;;  %v1941_v62 = vsel %vm5179_vm9, 0, %v1940_v17  ;;  %1922 = vst [vmem:[#allocation2 + $0x15c] sm:$0xf] %v1856_v24  ;;  %v1887_v23 = vor.u32 %v1885_v22, %v1884_v54  ;;  %v1944_v6 = vsel %vm5179_vm9, 0, %v1943_v12 }
 0x14e   : > { %1939 = vst [vmem:[#allocation2 + $0xa8] sm:$0x1] %v1938_v44  ;;  %1942 = vst [vmem:[#allocation2 + $0xf0] sm:$0x1] %v1941_v62  ;;  %v1947_v5 = vsel %vm5179_vm9, 0, %v1946_v39  ;;  %v1950_v48 = vsel %vm5179_vm9, 0, %v1949_v60  ;;  %v1872_v51 = vsel %vm5156_vm8, %v1864_v1, %v1871_v18 }
 0x14f   : > { %1945 = vst [vmem:[#allocation2 + $0x138] sm:$0x1] %v1944_v6  ;;  %1948 = vst [vmem:[#allocation2 + $0x180] sm:$0x1] %v1947_v5  ;;  %v1952_v41 = vrot.slane %v1778_v26, 4  ;;  %v7470_v22 = vshll.u32 %v6425_v19, 16  ;;  %v1888_v4 = vsel %vm5156_vm8, %v1880_v13, %v1887_v23 }
 0x150   : > { %1951 = vst [vmem:[#allocation2 + $0x1c8] sm:$0x1] %v1950_v48  ;;  %v7471_v7 = vshrl.u32 %v6428_v36, 16  ;;  %1926 = vst [vmem:[#allocation2 + $0x1a4] sm:$0xf] %v1872_v51  ;;  %v7472_v10 = vshll.u32 %v6428_v36, 16 }
 0x151   : > { %v1953_v37 = vrot.slane %v7470_v22, 5  ;;  %v7473_v53 = vshrl.u32 %v6437_v29, 16  ;;  %v7474_v30 = vshll.u32 %v6437_v29, 16  ;;  %1930 = vst [vmem:[#allocation2 + $0x1ec] sm:$0xf] %v1888_v4  ;;  %v7475_v19 = vshrl.u32 %v6440_v0, 16 }
 0x152   : > { %v1961_v59 = vrot.slane %v7471_v7, 4  ;;  %v1962_v40 = vrot.slane %v7472_v10, 5  ;;  %v7476_v35 = vshll.u32 %v6440_v0, 16  ;;  %v7477_v15 = vshrl.u32 %v6457_v45, 16  ;;  %v2057_v38 = vld [vmem:[#allocation2 + $0x44] sm:$0x8] }
 0x153   : > { %v1970_v63 = vrot.slane %v7473_v53, 4  ;;  %v1971_v28 = vrot.slane %v7474_v30, 5  ;;  %v1954_v26 = vor.u32 %v1953_v37, %v1952_v41  ;;  %v1979_v21 = vrot.slane %v7475_v19, 4  ;;  %v2060_v12 = vld [vmem:[#allocation2 + $0x8c] sm:$0x8] }
 0x154   : > { %v1980_v61 = vrot.slane %v7476_v35, 5  ;;  %v1988_v58 = vrot.slane %v7477_v15, 4  ;;  %v1963_v46 = vor.u32 %v1962_v40, %v1961_v59  ;;  %v7478_v14 = vshll.u32 %v6457_v45, 16  ;;  %v2063_v39 = vld [vmem:[#allocation2 + $0xd4] sm:$0x8] }
 0x155   : > { %v1972_v36 = vor.u32 %v1971_v28, %v1970_v63  ;;  %v7479_v56 = vshrl.u32 %v6472_v25, 16  ;;  %v1955_v42 = vrot.slane %v1954_v26, 4  ;;  %v7480_v33 = vshll.u32 %v6472_v25, 16  ;;  %v2066_v43 = vld [vmem:[#allocation2 + $0x11c] sm:$0x8] }
 0x156   : > { %v1989_v57 = vrot.slane %v7478_v14, 5  ;;  %v1981_v49 = vor.u32 %v1980_v61, %v1979_v21  ;;  %v7481_v0 = vshrl.u32 %v6483_v47, 16  ;;  %v1964_v11 = vrot.slane %v1963_v46, 4  ;;  %v2069_v52 = vld [vmem:[#allocation2 + $0x164] sm:$0x8] }
 0x157   : > { %v1997_v29 = vrot.slane %v7479_v56, 4  ;;  %v1998_v1 = vrot.slane %v7480_v33, 5  ;;  %v1973_v55 = vrot.slane %v1972_v36, 4  ;;  %v7482_v13 = vshll.u32 %v6483_v47, 16  ;;  %v2075_v62 = vld [vmem:[#allocation2 + $0x1f4] sm:$0x8] }
 0x158   : > { %v2006_v17 = vrot.slane %v7481_v0, 4  ;;  %v1990_v16 = vor.u32 %v1989_v57, %v1988_v58  ;;  %v1957_v60 = vsel %vm5260_vm12, %v1955_v42, %v6538_v50  ;;  %v1982_v27 = vrot.slane %v1981_v49, 4  ;;  %v2072_v50 = vld [vmem:[#allocation2 + $0x1ac] sm:$0x8] }
 0x159   : > { %v2007_v45 = vrot.slane %v7482_v13, 5  ;;  %v1999_v54 = vor.u32 %v1998_v1, %v1997_v29  ;;  %v2058_v25 = vsel %vm5293_vm14, 0, %v2057_v38  ;;  %2029 = vst [vmem:[#allocation2 + $0x20] sm:$0xf] %v1957_v60  ;;  %v1966_v24 = vsel %vm5260_vm12, %v1964_v11, %v6562_v9 }
 0x15a   : > { %v1975_v47 = vsel %vm5260_vm12, %v1973_v55, %v6579_v20  ;;  %v1991_v18 = vrot.slane %v1990_v16, 4  ;;  %2059 = vst [vmem:[#allocation2 + $0x44] sm:$0x8] %v2058_v25  ;;  %2033 = vst [vmem:[#allocation2 + $0x68] sm:$0xf] %v1966_v24  ;;  %v1984_v23 = vsel %vm5260_vm12, %v1982_v27, %v6586_v3  ;;  %v2061_v5 = vsel %vm5293_vm14, 0, %v2060_v12 }
 0x15b   : > { %v2008_v44 = vor.u32 %v2007_v45, %v2006_v17  ;;  %2037 = vst [vmem:[#allocation2 + $0xb0] sm:$0xf] %v1975_v47  ;;  %v2000_v6 = vrot.slane %v1999_v54, 4  ;;  %v2064_v9 = vsel %vm5293_vm14, 0, %v2063_v39  ;;  %2041 = vst [vmem:[#allocation2 + $0xf8] sm:$0xf] %v1984_v23 }
 0x15c   : > { %v1993_v20 = vsel %vm5260_vm12, %v1991_v18, %v6603_v31  ;;  %2062 = vst [vmem:[#allocation2 + $0x8c] sm:$0x8] %v2061_v5  ;;  %2065 = vst [vmem:[#allocation2 + $0xd4] sm:$0x8] %v2064_v9  ;;  %v2067_v51 = vsel %vm5293_vm14, 0, %v2066_v43  ;;  %v2070_v3 = vsel %vm5293_vm14, 0, %v2069_v52 }
 0x15d   : > { %v2009_v48 = vrot.slane %v2008_v44, 4  ;;  %2045 = vst [vmem:[#allocation2 + $0x140] sm:$0xf] %v1993_v20  ;;  %v2002_v41 = vsel %vm5260_vm12, %v2000_v6, %v6612_v8  ;;  %2068 = vst [vmem:[#allocation2 + $0x11c] sm:$0x8] %v2067_v51  ;;  %v2073_v22 = vsel %vm5293_vm14, 0, %v2072_v50 }
 0x15e   : > { %2071 = vst [vmem:[#allocation2 + $0x164] sm:$0x8] %v2070_v3  ;;  %v2076_v31 = vsel %vm5293_vm14, 0, %v2075_v62  ;;  %2049 = vst [vmem:[#allocation2 + $0x188] sm:$0xf] %v2002_v41 }
 0x15f   : > { %v2011_v37 = vsel %vm5260_vm12, %v2009_v48, %v6623_v32  ;;  %2074 = vst [vmem:[#allocation2 + $0x1ac] sm:$0x8] %v2073_v22  ;;  %2077 = vst [vmem:[#allocation2 + $0x1f4] sm:$0x8] %v2076_v31 }
 0x160   : > { %2053 = vst [vmem:[#allocation2 + $0x1d0] sm:$0xf] %v2011_v37 }
 0x161 PF: > { %v4591_v8 = vld [vmem:[%s7300_s1 + $0x78] sm:$0xff]   ;;  %v4595_v32 = vld [vmem:[%s7300_s1 + $0x70] sm:$0xff]   ;;  %v4599_v40 = vld [vmem:[%s7300_s1 + $0x68] sm:$0xff]   ;;  %s4177_s16 = sshll.u32 %s4801_s18, 7 }
 0x162   : > { %v4592_v7 = vld [vmem:[%s7300_s1 + $0xf8] sm:$0xff]   ;;  %4197 = vmatprep.subr.bf16.mxu0 %v4591_v8  ;;  %v4596_v59 = vld [vmem:[%s7300_s1 + $0xf0] sm:$0xff]   ;;  %v4600_v53 = vld [vmem:[%s7300_s1 + $0xe8] sm:$0xff]   ;;  %s7106_s17 = scalar_lea.vmem %s4895_s8, %s4177_s16 }
 0x163   : > { %v4593_v34 = vld [vmem:[%s7300_s1 + $0x38] sm:$0xff]   ;;  %4261 = vmatprep.subr.bf16.mxu1 %v4592_v7  ;;  %v4597_v4 = vld [vmem:[%s7300_s1 + $0x30] sm:$0xff]   ;;  %v4601_v63 = vld [vmem:[%s7300_s1 + $0x28] sm:$0xff]  }
 0x164   : > { %v4594_v2 = vld [vmem:[%s7300_s1 + $0xb8] sm:$0xff]   ;;  %4198 = vmatpush3.bf16.msra.mxu0 %v4593_v34  ;;  %v4598_v10 = vld [vmem:[%s7300_s1 + $0xb0] sm:$0xff]   ;;  %v4602_v30 = vld [vmem:[%s7300_s1 + $0xa8] sm:$0xff]  }
 0x165   : > { %4262 = vmatpush3.bf16.msra.mxu1 %v4594_v2  ;;  %4199 = vmatprep.subr.bf16.mxu0 %v4595_v32  ;;  %v4603_v28 = vld [vmem:[%s7300_s1 + $0x60] sm:$0xff]   ;;  %v4607_v35 = vld [vmem:[%s7300_s1 + $0x58] sm:$0xff]   ;;  %v4611_v46 = vld [vmem:[%s7300_s1 + $0x50] sm:$0xff]  }
 0x166   : > { %4263 = vmatprep.subr.bf16.mxu1 %v4596_v59  ;;  %v4604_v26 = vld [vmem:[%s7300_s1 + $0xe0] sm:$0xff]   ;;  %v4608_v61 = vld [vmem:[%s7300_s1 + $0xd8] sm:$0xff]   ;;  %v4612_v36 = vld [vmem:[%s7300_s1 + $0xd0] sm:$0xff]  }
 0x167   : > { %v4605_v19 = vld [vmem:[%s7300_s1 + $0x20] sm:$0xff]   ;;  %v4609_v15 = vld [vmem:[%s7300_s1 + $0x18] sm:$0xff]   ;;  %v4613_v14 = vld [vmem:[%s7300_s1 + $0x10] sm:$0xff]  }
 0x168   : > { %4200 = vmatpush3.bf16.msra.mxu0 %v4597_v4  ;;  %v4606_v21 = vld [vmem:[%s7300_s1 + $0xa0] sm:$0xff]   ;;  %v4610_v58 = vld [vmem:[%s7300_s1 + $0x98] sm:$0xff]   ;;  %v4614_v57 = vld [vmem:[%s7300_s1 + $0x90] sm:$0xff]  }
 0x169   : > { %4264 = vmatpush3.bf16.msra.mxu1 %v4598_v10  ;;  %4201 = vmatprep.subr.bf16.mxu0 %v4599_v40  ;;  %v4615_v56 = vld [vmem:[%s7300_s1 + $0x48] sm:$0xff]   ;;  %v4619_v49 = vld [vmem:[%s7300_s1 + $0x40] sm:$0xff]   ;;  %v4629_v16 = vld [vmem:[%s7300_s1 + $0x178] sm:$0xff]  }
 0x16a   : > { %4265 = vmatprep.subr.bf16.mxu1 %v4600_v53  ;;  %v4616_v29 = vld [vmem:[%s7300_s1 + $0xc8] sm:$0xff]   ;;  %v4620_v33 = vld [vmem:[%s7300_s1 + $0xc0] sm:$0xff]   ;;  %v4630_v13 = vld [vmem:[%s7300_s1 + $0x1f8] sm:$0xff]  }
 0x16b   : > { %v4617_v38 = vld [vmem:[%s7300_s1 + $0x8] sm:$0xff]   ;;  %v4621_v1 = vld [vmem:[%s7300_s1] sm:$0xff]   ;;  %v4631_v45 = vld [vmem:[%s7300_s1 + $0x138] sm:$0xff]  }
 0x16c   : > { %4202 = vmatpush3.bf16.msra.mxu0 %v4601_v63  ;;  %v4618_v42 = vld [vmem:[%s7300_s1 + $0x88] sm:$0xff]   ;;  %v4622_v0 = vld [vmem:[%s7300_s1 + $0x80] sm:$0xff]   ;;  %v4632_v39 = vld [vmem:[%s7300_s1 + $0x1b8] sm:$0xff]  }
 0x16d   : > { %4266 = vmatpush3.bf16.msra.mxu1 %v4602_v30  ;;  %4203 = vmatprep.subr.bf16.mxu0 %v4603_v28  ;;  %v4623_v17 = vld [vmem:[#allocation2] ss:$36 sps:$4 sm:$0xff]   ;;  %v4626_v11 = vld [vmem:[#allocation2 + $0x8] ss:$36 sps:$4 sm:$0xff]   ;;  %v4635_v27 = vld [vmem:[#allocation2 + $0x54] ss:$36 sps:$4 sm:$0xff]  }
 0x16e   : > { %4267 = vmatprep.subr.bf16.mxu1 %v4604_v26  ;;  %v4625_v12 = vld [vmem:[#allocation2 + $0x4] ss:$36 sps:$4 sm:$0xff]   ;;  %v4628_v55 = vld [vmem:[#allocation2 + $0xc] ss:$36 sps:$4 sm:$0xff]   ;;  %v4643_v18 = vld [vmem:[#allocation2 + $0x94] ss:$36 sps:$4 sm:$0xff]  }
 0x16f   : > { %3141 = vmatprep.mubr.bf16.mxu0 %v4625_v12  ;;  %3238 = vmatprep.mubr.bf16.mxu1 %v4628_v55  ;;  %v4633_v60 = vld [vmem:[#allocation2 + $0x4c] ss:$36 sps:$4 sm:$0xff]   ;;  %v4645_v44 = vld [vmem:[#allocation2 + $0x9c] ss:$36 sps:$4 sm:$0xff]   ;;  %v4655_v48 = vld [vmem:[#allocation2 + $0xe4] ss:$36 sps:$4 sm:$0xff]  }
 0x170   : > { %4204 = vmatpush3.bf16.msra.mxu0 %v4605_v19  ;;  %v4637_v54 = vld [vmem:[#allocation2 + $0x48] ss:$36 sps:$4 sm:$0xff]   ;;  %v4638_v25 = vld [vmem:[#allocation2 + $0x50] ss:$36 sps:$4 sm:$0xff]   ;;  %v4648_v62 = vld [vmem:[#allocation2 + $0x98] ss:$36 sps:$4 sm:$0xff]  }
 0x171   : > { %4268 = vmatpush3.bf16.msra.mxu1 %v4606_v21  ;;  %4205 = vmatprep.subr.bf16.mxu0 %v4607_v35  ;;  %v4639_v43 = vld [vmem:[%s7300_s1 + $0x170] sm:$0xff]   ;;  %v4649_v23 = vld [vmem:[%s7300_s1 + $0x168] sm:$0xff]   ;;  %v4653_v20 = vld [vmem:[#allocation2 + $0xdc] ss:$36 sps:$4 sm:$0xff]  }
 0x172   : > { %4269 = vmatprep.subr.bf16.mxu1 %v4608_v61  ;;  %v4640_v52 = vld [vmem:[%s7300_s1 + $0x1f0] sm:$0xff]   ;;  %v4650_v6 = vld [vmem:[%s7300_s1 + $0x1e8] sm:$0xff]   ;;  %v4657_v51 = vld [vmem:[#allocation2 + $0xd8] ss:$36 sps:$4 sm:$0xff]  }
 0x173   : > { %v4641_v24 = vld [vmem:[%s7300_s1 + $0x130] sm:$0xff]   ;;  %v4651_v5 = vld [vmem:[%s7300_s1 + $0x128] sm:$0xff]   ;;  %v4658_v3 = vld [vmem:[#allocation2 + $0xe0] ss:$36 sps:$4 sm:$0xff]  }
 0x174   : > { %4206 = vmatpush3.bf16.msra.mxu0 %v4609_v15  ;;  %v4642_v47 = vld [vmem:[%s7300_s1 + $0x1b0] sm:$0xff]   ;;  %v4652_v9 = vld [vmem:[%s7300_s1 + $0x1a8] sm:$0xff]   ;;  %v4659_v41 = vld [vmem:[%s7300_s1 + $0x160] sm:$0xff]  }
 0x175   : > { %4270 = vmatpush3.bf16.msra.mxu1 %v4610_v58  ;;  %4207 = vmatprep.subr.bf16.mxu0 %v4611_v46  ;;  %v4647_v50 = vld [vmem:[#allocation2 + $0x90] ss:$36 sps:$4 sm:$0xff]   ;;  %v4660_v22 = vld [vmem:[%s7300_s1 + $0x1e0] sm:$0xff]   ;;  %v4669_v2 = vld [vmem:[%s7300_s1 + $0x158] sm:$0xff]  }
 0x176   : > { %4271 = vmatprep.subr.bf16.mxu1 %v4612_v36  ;;  %v4661_v31 = vld [vmem:[%s7300_s1 + $0x120] sm:$0xff]   ;;  %v4665_v7 = vld [vmem:[#allocation2 + $0x12c] ss:$36 sps:$4 sm:$0xff]   ;;  %v4670_v59 = vld [vmem:[%s7300_s1 + $0x1d8] sm:$0xff]  }
 0x177   : > { %v4662_v37 = vld [vmem:[%s7300_s1 + $0x1a0] sm:$0xff]   ;;  %v4668_v32 = vld [vmem:[#allocation2 + $0x128] ss:$36 sps:$4 sm:$0xff]   ;;  %v4671_v4 = vld [vmem:[%s7300_s1 + $0x118] sm:$0xff]  }
 0x178   : > { %4208 = vmatpush3.bf16.msra.mxu0 %v4613_v14  ;;  %v4663_v8 = vld [vmem:[#allocation2 + $0x124] ss:$36 sps:$4 sm:$0xff]   ;;  %v4672_v10 = vld [vmem:[%s7300_s1 + $0x198] sm:$0xff]   ;;  %v4673_v40 = vld [vmem:[#allocation2 + $0x16c] ss:$36 sps:$4 sm:$0xff]  }
 0x179   : > { %4272 = vmatpush3.bf16.msra.mxu1 %v4614_v57  ;;  %4209 = vmatprep.subr.bf16.mxu0 %v4615_v56  ;;  %v4667_v34 = vld [vmem:[#allocation2 + $0x120] ss:$36 sps:$4 sm:$0xff]   ;;  %v4675_v53 = vld [vmem:[#allocation2 + $0x174] ss:$36 sps:$4 sm:$0xff]   ;;  %v4677_v28 = vld [vmem:[#allocation2 + $0x168] ss:$36 sps:$4 sm:$0xff]  }
 0x17a   : > { %4273 = vmatprep.subr.bf16.mxu1 %v4616_v29  ;;  %v4679_v63 = vld [vmem:[%s7300_s1 + $0x150] sm:$0xff]   ;;  %v4685_v61 = vld [vmem:[#allocation2 + $0x1bc] ss:$36 sps:$4 sm:$0xff]   ;;  %v4689_v15 = vld [vmem:[%s7300_s1 + $0x148] sm:$0xff]  }
 0x17b   : > { %v4680_v30 = vld [vmem:[%s7300_s1 + $0x1d0] sm:$0xff]   ;;  %v4690_v58 = vld [vmem:[%s7300_s1 + $0x1c8] sm:$0xff]   ;;  %v4688_v57 = vld [vmem:[#allocation2 + $0x1b8] ss:$36 sps:$4 sm:$0xff]  }
 0x17c   : > { %4210 = vmatpush3.bf16.msra.mxu0 %v4617_v38  ;;  %v4681_v26 = vld [vmem:[%s7300_s1 + $0x110] sm:$0xff]   ;;  %v4691_v46 = vld [vmem:[%s7300_s1 + $0x108] sm:$0xff]   ;;  %v4693_v56 = vld [vmem:[#allocation2 + $0x1fc] ss:$36 sps:$4 sm:$0xff]  }
 0x17d   : > { %4274 = vmatpush3.bf16.msra.mxu1 %v4618_v42  ;;  %4211 = vmatprep.subr.bf16.mxu0 %v4619_v49  ;;  %v4682_v19 = vld [vmem:[%s7300_s1 + $0x190] sm:$0xff]   ;;  %v4692_v36 = vld [vmem:[%s7300_s1 + $0x188] sm:$0xff]   ;;  %v4699_v38 = vld [vmem:[%s7300_s1 + $0x140] sm:$0xff]  }
 0x17e   : > { %4275 = vmatprep.subr.bf16.mxu1 %v4620_v33  ;;  %v4678_v21 = vld [vmem:[#allocation2 + $0x170] ss:$36 sps:$4 sm:$0xff]   ;;  %v4695_v29 = vld [vmem:[#allocation2 + $0x204] ss:$36 sps:$4 sm:$0xff]  }
 0x17f   : > { %v4683_v35 = vld [vmem:[#allocation2 + $0x1b4] ss:$36 sps:$4 sm:$0xff]   ;;  %v4700_v42 = vld [vmem:[%s7300_s1 + $0x1c0] sm:$0xff]  }
 0x180   : > { %4212 = vmatpush3.bf16.msra.mxu0 %v4621_v1  ;;  %v4687_v14 = vld [vmem:[#allocation2 + $0x1b0] ss:$36 sps:$4 sm:$0xff]   ;;  %v4701_v49 = vld [vmem:[%s7300_s1 + $0x100] sm:$0xff]   ;;  %v4697_v1 = vld [vmem:[#allocation2 + $0x1f8] ss:$36 sps:$4 sm:$0xff]  }
 0x181   : > { %4276 = vmatpush3.bf16.msra.mxu1 %v4622_v0  ;;  %4325 = vmatprep.subr.bf16.mxu0 %v4629_v16  ;;  %v4702_v33 = vld [vmem:[%s7300_s1 + $0x180] sm:$0xff]   ;;  %v4705_v12 = vld [vmem:[#allocation2 + $0x14] ss:$36 sps:$4 sm:$0xff]  }
 0x182   : > { %4389 = vmatprep.subr.bf16.mxu1 %v4630_v13  ;;  %v4698_v0 = vld [vmem:[#allocation2 + $0x200] ss:$36 sps:$4 sm:$0xff]   ;;  %v4703_v55 = vld [vmem:[#allocation2 + $0x10] ss:$36 sps:$4 sm:$0xff]   ;;  %v4706_v16 = vld [vmem:[#allocation2 + $0x18] ss:$36 sps:$4 sm:$0xff]  }
 0x183   : > { %3142 = vmatmul.mubr.bf16.vlgmr.msra.gmra.mxu0 %v4623_v17  ;;  %v4709_v17 = vld [vmem:[%s7300_s1 + $0x238] sm:$0xff]  }
 0x184   : > { %3239 = vmatmul.mubr.bf16.vlgmr.msra.gmra.mxu1 %v4626_v11  ;;  %4326 = vmatpush3.bf16.msra.mxu0 %v4631_v45  ;;  %v4708_v11 = vld [vmem:[#allocation2 + $0x1c] ss:$36 sps:$4 sm:$0xff]   ;;  %v4712_v45 = vld [vmem:[#allocation2 + $0x64] ss:$36 sps:$4 sm:$0xff]  }
 0x185   : > { %4390 = vmatpush3.bf16.msra.mxu1 %v4632_v39  ;;  %3149 = vmatprep.mubr.bf16.mxu0 %v4633_v60  ;;  %v4710_v13 = vld [vmem:[#allocation2 + $0x5c] ss:$36 sps:$4 sm:$0xff]   ;;  %v4716_v39 = vld [vmem:[%s7300_s1 + $0x230] sm:$0xff]   ;;  %v4723_v60 = vld [vmem:[%s7300_s1 + $0x228] sm:$0xff]  }
 0x186   : > { %3246 = vmatprep.mubr.bf16.mxu1 %v4635_v27  ;;  %4327 = vmatprep.subr.bf16.mxu0 %v4639_v43  ;;  %v4714_v27 = vld [vmem:[#allocation2 + $0x58] ss:$36 sps:$4 sm:$0xff]   ;;  %v4719_v43 = vld [vmem:[#allocation2 + $0xac] ss:$36 sps:$4 sm:$0xff]  }
 0x187   : > { %4391 = vmatprep.subr.bf16.mxu1 %v4640_v52  ;;  %v4730_v52 = vld [vmem:[%s7300_s1 + $0x220] sm:$0xff]  }
 0x188   : > { %4328 = vmatpush3.bf16.msra.mxu0 %v4641_v24  ;;  %v4737_v24 = vld [vmem:[%s7300_s1 + $0x218] sm:$0xff]  }
 0x189   : > { %4392 = vmatpush3.bf16.msra.mxu1 %v4642_v47  ;;  %4329 = vmatprep.subr.bf16.mxu0 %v4649_v23  ;;  %v4721_v47 = vld [vmem:[#allocation2 + $0xa0] ss:$36 sps:$4 sm:$0xff]   ;;  %v4728_v23 = vld [vmem:[#allocation2 + $0xe8] ss:$36 sps:$4 sm:$0xff]  }
 0x18a   : > { %4393 = vmatprep.subr.bf16.mxu1 %v4650_v6  ;;  %v4751_v6 = vld [vmem:[%s7300_s1 + $0x208] sm:$0xff]  }
 0x18b   : > { %3150 = vmatmul.mubr.bf16.gmra.mxu0 %v4637_v54  ;;  %v4715_v54 = vld [vmem:[#allocation2 + $0x60] ss:$36 sps:$4 sm:$0xff]  }
 0x18c   : > { %3247 = vmatmul.mubr.bf16.gmra.mxu1 %v4638_v25  ;;  %3157 = vmatprep.mubr.bf16.mxu0 %v4643_v18  ;;  %v4717_v25 = vld [vmem:[#allocation2 + $0xa4] ss:$36 sps:$4 sm:$0xff]  }
 0x18d   : > { %3254 = vmatprep.mubr.bf16.mxu1 %v4645_v44  ;;  %4330 = vmatpush3.bf16.msra.mxu0 %v4651_v5  ;;  %v4722_v18 = vld [vmem:[#allocation2 + $0xa8] ss:$36 sps:$4 sm:$0xff]   ;;  %v4729_v5 = vld [vmem:[#allocation2 + $0xf0] ss:$36 sps:$4 sm:$0xff]  }
 0x18e   : > { %4394 = vmatpush3.bf16.msra.mxu1 %v4652_v9  ;;  %4331 = vmatprep.subr.bf16.mxu0 %v4659_v41  ;;  %v4724_v44 = vld [vmem:[#allocation2 + $0xec] ss:$36 sps:$4 sm:$0xff]   ;;  %v4731_v9 = vld [vmem:[#allocation2 + $0x134] ss:$36 sps:$4 sm:$0xff]   ;;  %v4738_v41 = vld [vmem:[#allocation2 + $0x17c] ss:$36 sps:$4 sm:$0xff]  }
 0x18f   : > { %4395 = vmatprep.subr.bf16.mxu1 %v4660_v22  ;;  %v4740_v22 = vld [vmem:[#allocation2 + $0x184] ss:$36 sps:$4 sm:$0xff]  }
 0x191   : > { %4332 = vmatpush3.bf16.msra.mxu0 %v4661_v31  ;;  %v4742_v31 = vld [vmem:[#allocation2 + $0x178] ss:$36 sps:$4 sm:$0xff]  }
 0x192   : > { %4396 = vmatpush3.bf16.msra.mxu1 %v4662_v37  ;;  %4333 = vmatprep.subr.bf16.mxu0 %v4669_v2  ;;  %v4743_v37 = vld [vmem:[#allocation2 + $0x180] ss:$36 sps:$4 sm:$0xff]   ;;  %v4750_v2 = vld [vmem:[#allocation2 + $0x1c8] ss:$36 sps:$4 sm:$0xff]  }
 0x193   : > { %3158 = vmatmul.mubr.bf16.gmra.mxu0 %v4647_v50  ;;  %4397 = vmatprep.subr.bf16.mxu1 %v4670_v59  ;;  %v4726_v50 = vld [vmem:[#allocation2 + $0xf4] ss:$36 sps:$4 sm:$0xff]  }
 0x194   : > { %3255 = vmatmul.mubr.bf16.gmra.mxu1 %v4648_v62  ;;  %3165 = vmatprep.mubr.bf16.mxu0 %v4653_v20  ;;  %v4744_v62 = vld [vmem:[%s7300_s1 + $0x210] sm:$0xff]   ;;  %v4733_v20 = vld [vmem:[#allocation2 + $0x13c] ss:$36 sps:$4 sm:$0xff]  }
 0x195   : > { %3262 = vmatprep.mubr.bf16.mxu1 %v4655_v48  ;;  %4334 = vmatpush3.bf16.msra.mxu0 %v4671_v4  ;;  %v4758_v48 = vld [vmem:[%s7300_s1 + $0x200] sm:$0xff]   ;;  %v4754_v59 = vld [vmem:[#allocation2 + $0x214] ss:$36 sps:$4 sm:$0xff]   ;;  %v4756_v4 = vld [vmem:[#allocation2 + $0x208] ss:$36 sps:$4 sm:$0xff]  }
 0x196   : > { %4398 = vmatpush3.bf16.msra.mxu1 %v4672_v10  ;;  %4335 = vmatprep.subr.bf16.mxu0 %v4679_v63  ;;  %v4757_v10 = vld [vmem:[#allocation2 + $0x210] ss:$36 sps:$4 sm:$0xff]   ;;  %v4761_v63 = vld [vmem:[#allocation2 + $0x68] ss:$36 sps:$4 sm:$0xff]  }
 0x197   : > { %4399 = vmatprep.subr.bf16.mxu1 %v4680_v30  ;;  %v4762_v30 = vld [vmem:[#allocation2 + $0x188] ss:$36 sps:$4 sm:$0xff]  }
 0x199   : > { %4336 = vmatpush3.bf16.msra.mxu0 %v4681_v26  ;;  %v4764_v26 = vld [vmem:[#allocation2 + $0x1d0] ss:$36 sps:$4 sm:$0xff]  }
 0x19a   : > { %4400 = vmatpush3.bf16.msra.mxu1 %v4682_v19  ;;  %4337 = vmatprep.subr.bf16.mxu0 %v4689_v15  ;;  %v4765_v19 = vld [vmem:[#allocation2 + $0xf8] ss:$36 sps:$4 sm:$0xff]   ;;  %v6979_v15 = vld [vmem:[%s7301_s2] ss:$0 sm:$0xff] }
 0x19b   : > { %3166 = vmatmul.mubr.bf16.gmra.mxu0 %v4657_v51  ;;  %4401 = vmatprep.subr.bf16.mxu1 %v4690_v58  ;;  %v4735_v51 = vld [vmem:[#allocation2 + $0x130] ss:$36 sps:$4 sm:$0xff]  }
 0x19c   : > { %3263 = vmatmul.mubr.bf16.gmra.mxu1 %v4658_v3  ;;  %3173 = vmatprep.mubr.bf16.mxu0 %v4663_v8  ;;  %v4736_v3 = vld [vmem:[#allocation2 + $0x138] ss:$36 sps:$4 sm:$0xff]   ;;  %v4745_v8 = vld [vmem:[#allocation2 + $0x1c4] ss:$36 sps:$4 sm:$0xff]  }
 0x19d   : > { %3270 = vmatprep.mubr.bf16.mxu1 %v4665_v7  ;;  %4338 = vmatpush3.bf16.msra.mxu0 %v4691_v46  ;;  %v4747_v7 = vld [vmem:[#allocation2 + $0x1cc] ss:$36 sps:$4 sm:$0xff]  }
 0x19e   : > { %4402 = vmatpush3.bf16.msra.mxu1 %v4692_v36  ;;  %4339 = vmatprep.subr.bf16.mxu0 %v4699_v38 }
 0x19f   : > { %4403 = vmatprep.subr.bf16.mxu1 %v4700_v42 }
 0x1a1   : > { %4340 = vmatpush3.bf16.msra.mxu0 %v4701_v49 }
 0x1a2   : > { %4404 = vmatpush3.bf16.msra.mxu1 %v4702_v33  ;;  %4478 = vmatprep.subr.bf16.mxu0 %v4709_v17 }
 0x1a3   : > { %3174 = vmatmul.mubr.bf16.gmra.mxu0 %v4667_v34  ;;  %4530 = vmatprep.subr.bf16.mxu1 %v4709_v17  ;;  %v4749_v34 = vld [vmem:[#allocation2 + $0x1c0] ss:$36 sps:$4 sm:$0xff]  }
 0x1a4   : > { %3271 = vmatmul.mubr.bf16.gmra.mxu1 %v4668_v32  ;;  %3181 = vmatprep.mubr.bf16.mxu0 %v4673_v40  ;;  %v4752_v32 = vld [vmem:[#allocation2 + $0x20c] ss:$36 sps:$4 sm:$0xff]   ;;  %v4759_v40 = vld [vmem:[#allocation2 + $0x20] ss:$36 sps:$4 sm:$0xff]  }
 0x1a5   : > { %3278 = vmatprep.mubr.bf16.mxu1 %v4675_v53  ;;  %v4760_v53 = vld [vmem:[#allocation2 + $0x140] ss:$36 sps:$4 sm:$0xff]  }
 0x1ab   : > { %3182 = vmatmul.mubr.bf16.gmra.mxu0 %v4677_v28  ;;  %v4763_v28 = vld [vmem:[#allocation2 + $0xb0] ss:$36 sps:$4 sm:$0xff]  }
 0x1ac   : > { %3279 = vmatmul.mubr.bf16.gmra.mxu1 %v4678_v21  ;;  %3189 = vmatprep.mubr.bf16.mxu0 %v4683_v35  ;;  %v4766_v21 = vld [vmem:[#allocation2 + $0x218] ss:$36 sps:$4 sm:$0xff]  }
 0x1ad   : > { %3286 = vmatprep.mubr.bf16.mxu1 %v4685_v61 }
 0x1b3   : > { %3190 = vmatmul.mubr.bf16.gmra.mxu0 %v4687_v14 }
 0x1b4   : > { %3287 = vmatmul.mubr.bf16.gmra.mxu1 %v4688_v57  ;;  %3197 = vmatprep.mubr.bf16.mxu0 %v4693_v56 }
 0x1b5   : > { %3294 = vmatprep.mubr.bf16.mxu1 %v4695_v29 }
 0x1bb   : > { %3198 = vmatmul.mubr.bf16.gmra.mxu0 %v4697_v1 }
 0x1bc   : > { %3295 = vmatmul.mubr.bf16.gmra.mxu1 %v4698_v0  ;;  %3335 = vmatprep.mubr.bf16.mxu0 %v4705_v12 }
 0x1bd   : > { %3432 = vmatprep.mubr.bf16.mxu1 %v4708_v11 }
 0x1c3   : > { %3336 = vmatmul.mubr.bf16.vlgmr.msra.gmra.mxu0 %v4703_v55 }
 0x1c4   : > { %3433 = vmatmul.mubr.bf16.vlgmr.msra.gmra.mxu1 %v4706_v16  ;;  %4479 = vmatpush3.bf16.msra.mxu0 %v4709_v17 }
 0x1c5   : > { %4538 = vmatpush3.bf16.msra.mxu1 %v4709_v17  ;;  %3343 = vmatprep.mubr.bf16.mxu0 %v4710_v13 }
 0x1c6   : > { %3440 = vmatprep.mubr.bf16.mxu1 %v4712_v45  ;;  %4480 = vmatprep.subr.bf16.mxu0 %v4716_v39 }
 0x1c7   : > { %4531 = vmatprep.subr.bf16.mxu1 %v4716_v39 }
 0x1c8   : > { %4481 = vmatpush3.bf16.msra.mxu0 %v4716_v39 }
 0x1c9   : > { %4539 = vmatpush3.bf16.msra.mxu1 %v4716_v39  ;;  %4482 = vmatprep.subr.bf16.mxu0 %v4723_v60 }
 0x1ca   : > { %4532 = vmatprep.subr.bf16.mxu1 %v4723_v60 }
 0x1cb   : > { %3344 = vmatmul.mubr.bf16.gmra.mxu0 %v4714_v27 }
 0x1cc   : > { %3441 = vmatmul.mubr.bf16.gmra.mxu1 %v4715_v54  ;;  %3351 = vmatprep.mubr.bf16.mxu0 %v4717_v25 }
 0x1cd   : > { %3448 = vmatprep.mubr.bf16.mxu1 %v4719_v43  ;;  %4483 = vmatpush3.bf16.msra.mxu0 %v4723_v60 }
 0x1ce   : > { %4540 = vmatpush3.bf16.msra.mxu1 %v4723_v60  ;;  %4484 = vmatprep.subr.bf16.mxu0 %v4730_v52 }
 0x1cf   : > { %4533 = vmatprep.subr.bf16.mxu1 %v4730_v52 }
 0x1d1   : > { %4485 = vmatpush3.bf16.msra.mxu0 %v4730_v52 }
 0x1d2   : > { %4541 = vmatpush3.bf16.msra.mxu1 %v4730_v52  ;;  %4486 = vmatprep.subr.bf16.mxu0 %v4737_v24 }
 0x1d3   : > { %3352 = vmatmul.mubr.bf16.gmra.mxu0 %v4721_v47  ;;  %4534 = vmatprep.subr.bf16.mxu1 %v4737_v24 }
 0x1d4   : > { %3449 = vmatmul.mubr.bf16.gmra.mxu1 %v4722_v18  ;;  %3359 = vmatprep.mubr.bf16.mxu0 %v4724_v44 }
 0x1d5   : > { %3456 = vmatprep.mubr.bf16.mxu1 %v4726_v50  ;;  %4487 = vmatpush3.bf16.msra.mxu0 %v4737_v24 }
 0x1d6   : > { %4542 = vmatpush3.bf16.msra.mxu1 %v4737_v24  ;;  %4488 = vmatprep.subr.bf16.mxu0 %v4744_v62 }
 0x1d7   : > { %4535 = vmatprep.subr.bf16.mxu1 %v4744_v62 }
 0x1d9   : > { %4489 = vmatpush3.bf16.msra.mxu0 %v4744_v62 }
 0x1da   : > { %4543 = vmatpush3.bf16.msra.mxu1 %v4744_v62  ;;  %4490 = vmatprep.subr.bf16.mxu0 %v4751_v6 }
 0x1db   : > { %3360 = vmatmul.mubr.bf16.gmra.mxu0 %v4728_v23  ;;  %4536 = vmatprep.subr.bf16.mxu1 %v4751_v6 }
 0x1dc   : > { %3457 = vmatmul.mubr.bf16.gmra.mxu1 %v4729_v5  ;;  %3367 = vmatprep.mubr.bf16.mxu0 %v4731_v9 }
 0x1dd   : > { %3464 = vmatprep.mubr.bf16.mxu1 %v4733_v20  ;;  %4491 = vmatpush3.bf16.msra.mxu0 %v4751_v6 }
 0x1de   : > { %4544 = vmatpush3.bf16.msra.mxu1 %v4751_v6  ;;  %4492 = vmatprep.subr.bf16.mxu0 %v4758_v48 }
 0x1df   : > { %4537 = vmatprep.subr.bf16.mxu1 %v4758_v48 }
 0x1e1   : > { %4493 = vmatpush3.bf16.msra.mxu0 %v4758_v48 }
 0x1e2   : > { %4545 = vmatpush3.bf16.msra.mxu1 %v4758_v48 }
 0x1e3   : > { %3368 = vmatmul.mubr.bf16.gmra.mxu0 %v4735_v51 }
 0x1e4   : > { %3465 = vmatmul.mubr.bf16.gmra.mxu1 %v4736_v3  ;;  %3375 = vmatprep.mubr.bf16.mxu0 %v4738_v41 }
 0x1e5   : > { %3472 = vmatprep.mubr.bf16.mxu1 %v4740_v22 }
 0x1eb   : > { %3376 = vmatmul.mubr.bf16.gmra.mxu0 %v4742_v31 }
 0x1ec   : > { %3473 = vmatmul.mubr.bf16.gmra.mxu1 %v4743_v37  ;;  %3383 = vmatprep.mubr.bf16.mxu0 %v4745_v8 }
 0x1ed   : > { %3480 = vmatprep.mubr.bf16.mxu1 %v4747_v7 }
 0x1f3   : > { %3384 = vmatmul.mubr.bf16.gmra.mxu0 %v4749_v34 }
 0x1f4   : > { %3481 = vmatmul.mubr.bf16.gmra.mxu1 %v4750_v2  ;;  %3391 = vmatprep.mubr.bf16.mxu0 %v4752_v32 }
 0x1f5   : > { %3488 = vmatprep.mubr.bf16.mxu1 %v4754_v59 }
 0x1fb   : > { %3392 = vmatmul.mubr.bf16.gmra.mxu0 %v4756_v4 }
 0x1fc   : > { %3489 = vmatmul.mubr.bf16.gmra.mxu1 %v4757_v10  ;;  %4494 = vmatprep.mubr.bf16.mxu0 %v4759_v40 }
 0x1fd   : > { %4502 = vmatprep.mubr.bf16.mxu1 %v4760_v53 }
 0x203   : > { %4495 = vmatmul.mubr.bf16.vlgmr.msra.gmra.mxu0 %v4761_v63 }
 0x204   : > { %4503 = vmatmul.mubr.bf16.vlgmr.msra.gmra.mxu1 %v4762_v30  ;;  %4498 = vmatprep.mubr.bf16.mxu0 %v4763_v28 }
 0x205   : > { %4506 = vmatprep.mubr.bf16.mxu1 %v4764_v26 }
 0x20b   : > { %4499 = vmatmul.mubr.bf16.gmra.mxu0 %v4765_v19 }
 0x20c   : > { %4507 = vmatmul.mubr.bf16.gmra.mxu1 %v4766_v21 }
 0x243   : > { %v4213_v35 = vpop.f32.mrf.mxu0 }
 0x244   : > { %v4277_v61 = vpop.f32.mrf.mxu1 }
 0x245   : > { %v4214_v58 = vpop.f32.mrf.mxu0 }
 0x246   : > { %v4215_v46 = vadd.f32 %v4214_v58, %v4213_v35  ;;  %v4278_v36 = vpop.f32.mrf.mxu1 }
 0x247   : > { %v4279_v14 = vadd.f32 %v4278_v36, %v4277_v61  ;;  %v4216_v57 = vpop.f32.mrf.mxu0 }
 0x248   : > { %v3144_v56 = vadd.f32 %v4215_v46, %v6979_v15  ;;  %v4280_v29 = vpop.f32.mrf.mxu1 }
 0x249   : > { %v4217_v38 = vpop.f32.mrf.mxu0 }
 0x24a   : > { %v6982_v42 = vadd.f32 %v4279_v14, %v3144_v56  ;;  %v4218_v49 = vadd.f32 %v4217_v38, %v4216_v57  ;;  %v4281_v33 = vpop.f32.mrf.mxu1 }
 0x24b   : > { %v4282_v1 = vadd.f32 %v4281_v33, %v4280_v29  ;;  %v4219_v0 = vpop.f32.mrf.mxu0 }
 0x24c   : > { %v3147_v17 = vadd.f32 %v4218_v49, %v6979_v15  ;;  %v4283_v12 = vpop.f32.mrf.mxu1 }
 0x24d   : > { %v4220_v11 = vpop.f32.mrf.mxu0 }
 0x24e   : > { %v6985_v55 = vadd.f32 %v4282_v1, %v3147_v17  ;;  %v4221_v16 = vadd.f32 %v4220_v11, %v4219_v0  ;;  %v4284_v13 = vpop.f32.mrf.mxu1 }
 0x24f   : > { %v4285_v45 = vadd.f32 %v4284_v13, %v4283_v12  ;;  %v4222_v39 = vpop.f32.mrf.mxu0 }
 0x250   : > { %v3152_v60 = vadd.f32 %v4221_v16, %v6979_v15  ;;  %v4286_v27 = vpop.f32.mrf.mxu1 }
 0x251   : > { %v4223_v54 = vpop.f32.mrf.mxu0 }
 0x252   : > { %v6988_v25 = vadd.f32 %v4285_v45, %v3152_v60  ;;  %v4224_v43 = vadd.f32 %v4223_v54, %v4222_v39  ;;  %v4287_v52 = vpop.f32.mrf.mxu1 }
 0x253   : > { %v4288_v24 = vadd.f32 %v4287_v52, %v4286_v27  ;;  %v4225_v47 = vpop.f32.mrf.mxu0 }
 0x254   : > { %v3155_v18 = vadd.f32 %v4224_v43, %v6979_v15  ;;  %v4289_v44 = vpop.f32.mrf.mxu1 }
 0x255   : > { %v4226_v50 = vpop.f32.mrf.mxu0 }
 0x256   : > { %v6991_v62 = vadd.f32 %v4288_v24, %v3155_v18  ;;  %v4227_v23 = vadd.f32 %v4226_v50, %v4225_v47  ;;  %v4290_v6 = vpop.f32.mrf.mxu1 }
 0x257   : > { %v4291_v5 = vadd.f32 %v4290_v6, %v4289_v44  ;;  %v4228_v9 = vpop.f32.mrf.mxu0 }
 0x258   : > { %v3160_v20 = vadd.f32 %v4227_v23, %v6979_v15  ;;  %v4292_v48 = vpop.f32.mrf.mxu1 }
 0x259   : > { %v4229_v51 = vpop.f32.mrf.mxu0 }
 0x25a   : > { %v6994_v3 = vadd.f32 %v4291_v5, %v3160_v20  ;;  %v4230_v41 = vadd.f32 %v4229_v51, %v4228_v9  ;;  %v4293_v22 = vpop.f32.mrf.mxu1 }
 0x25b   : > { %v4294_v31 = vadd.f32 %v4293_v22, %v4292_v48  ;;  %v4231_v37 = vpop.f32.mrf.mxu0 }
 0x25c   : > { %v3163_v8 = vadd.f32 %v4230_v41, %v6979_v15  ;;  %v4295_v7 = vpop.f32.mrf.mxu1 }
 0x25d   : > { %v4232_v34 = vpop.f32.mrf.mxu0 }
 0x25e   : > { %v6997_v2 = vadd.f32 %v4294_v31, %v3163_v8  ;;  %v4233_v32 = vadd.f32 %v4232_v34, %v4231_v37  ;;  %v4296_v59 = vpop.f32.mrf.mxu1 }
 0x25f   : > { %v4297_v4 = vadd.f32 %v4296_v59, %v4295_v7  ;;  %v4234_v10 = vpop.f32.mrf.mxu0 }
 0x260   : > { %v3168_v40 = vadd.f32 %v4233_v32, %v6979_v15  ;;  %v4298_v53 = vpop.f32.mrf.mxu1 }
 0x261   : > { %v4235_v63 = vpop.f32.mrf.mxu0 }
 0x262   : > { %v7000_v30 = vadd.f32 %v4297_v4, %v3168_v40  ;;  %v4236_v28 = vadd.f32 %v4235_v63, %v4234_v10  ;;  %v4299_v26 = vpop.f32.mrf.mxu1 }
 0x263   : > { %v4300_v19 = vadd.f32 %v4299_v26, %v4298_v53  ;;  %v4237_v21 = vpop.f32.mrf.mxu0 }
 0x264   : > { %v3171_v35 = vadd.f32 %v4236_v28, %v6979_v15  ;;  %v4301_v61 = vpop.f32.mrf.mxu1 }
 0x265   : > { %v4238_v58 = vpop.f32.mrf.mxu0 }
 0x266   : > { %v7003_v46 = vadd.f32 %v4300_v19, %v3171_v35  ;;  %v4239_v36 = vadd.f32 %v4238_v58, %v4237_v21  ;;  %v4302_v14 = vpop.f32.mrf.mxu1 }
 0x267   : > { %v4303_v57 = vadd.f32 %v4302_v14, %v4301_v61  ;;  %v4240_v56 = vpop.f32.mrf.mxu0 }
 0x268   : > { %v3176_v29 = vadd.f32 %v4239_v36, %v6979_v15  ;;  %v4304_v38 = vpop.f32.mrf.mxu1 }
 0x269   : > { %v4241_v49 = vpop.f32.mrf.mxu0 }
 0x26a   : > { %v7006_v33 = vadd.f32 %v4303_v57, %v3176_v29  ;;  %v4242_v1 = vadd.f32 %v4241_v49, %v4240_v56  ;;  %v4305_v0 = vpop.f32.mrf.mxu1 }
 0x26b   : > { %v4306_v17 = vadd.f32 %v4305_v0, %v4304_v38  ;;  %v4243_v12 = vpop.f32.mrf.mxu0 }
 0x26c   : > { %v3179_v11 = vadd.f32 %v4242_v1, %v6979_v15  ;;  %v4307_v16 = vpop.f32.mrf.mxu1 }
 0x26d   : > { %v4244_v13 = vpop.f32.mrf.mxu0 }
 0x26e   : > { %v7009_v45 = vadd.f32 %v4306_v17, %v3179_v11  ;;  %v4245_v39 = vadd.f32 %v4244_v13, %v4243_v12  ;;  %v4308_v60 = vpop.f32.mrf.mxu1 }
 0x26f   : > { %v4309_v27 = vadd.f32 %v4308_v60, %v4307_v16  ;;  %v4246_v54 = vpop.f32.mrf.mxu0 }
 0x270   : > { %7483 = vst [vmem:[#allocation4_spill] sm:$0xff] %v7009_v45  ;;  %v3184_v43 = vadd.f32 %v4245_v39, %v6979_v15  ;;  %v4310_v52 = vpop.f32.mrf.mxu1 }
 0x271   : > { %v4247_v24 = vpop.f32.mrf.mxu0 }
 0x272   : > { %v7012_v47 = vadd.f32 %v4309_v27, %v3184_v43  ;;  %v4248_v18 = vadd.f32 %v4247_v24, %v4246_v54  ;;  %v4311_v44 = vpop.f32.mrf.mxu1 }
 0x273   : > { %v4312_v50 = vadd.f32 %v4311_v44, %v4310_v52  ;;  %v4249_v23 = vpop.f32.mrf.mxu0 }
 0x274   : > { %7484 = vst [vmem:[#allocation5_spill] sm:$0xff] %v7012_v47  ;;  %v3187_v6 = vadd.f32 %v4248_v18, %v6979_v15  ;;  %v4313_v5 = vpop.f32.mrf.mxu1 }
 0x275   : > { %v4250_v9 = vpop.f32.mrf.mxu0 }
 0x276   : > { %v7015_v20 = vadd.f32 %v4312_v50, %v3187_v6  ;;  %v4251_v48 = vadd.f32 %v4250_v9, %v4249_v23  ;;  %v4314_v51 = vpop.f32.mrf.mxu1 }
 0x277   : > { %v4315_v41 = vadd.f32 %v4314_v51, %v4313_v5  ;;  %v4252_v22 = vpop.f32.mrf.mxu0 }
 0x278   : > { %7485 = vst [vmem:[#allocation6_spill] sm:$0xff] %v7015_v20  ;;  %v3192_v31 = vadd.f32 %v4251_v48, %v6979_v15  ;;  %v4316_v37 = vpop.f32.mrf.mxu1 }
 0x279   : > { %v4253_v8 = vpop.f32.mrf.mxu0 }
 0x27a   : > { %v7018_v7 = vadd.f32 %v4315_v41, %v3192_v31  ;;  %v4254_v34 = vadd.f32 %v4253_v8, %v4252_v22  ;;  %v4317_v32 = vpop.f32.mrf.mxu1 }
 0x27b   : > { %v4318_v59 = vadd.f32 %v4317_v32, %v4316_v37  ;;  %v4255_v4 = vpop.f32.mrf.mxu0 }
 0x27c   : > { %7486 = vst [vmem:[#allocation7_spill] sm:$0xff] %v7018_v7  ;;  %v3195_v10 = vadd.f32 %v4254_v34, %v6979_v15  ;;  %v4319_v40 = vpop.f32.mrf.mxu1 }
 0x27d   : > { %v4256_v53 = vpop.f32.mrf.mxu0 }
 0x27e   : > { %v7021_v63 = vadd.f32 %v4318_v59, %v3195_v10  ;;  %v4257_v28 = vadd.f32 %v4256_v53, %v4255_v4  ;;  %v4320_v26 = vpop.f32.mrf.mxu1 }
 0x27f   : > { %v4321_v19 = vadd.f32 %v4320_v26, %v4319_v40  ;;  %v4258_v21 = vpop.f32.mrf.mxu0 }
 0x280   : > { %7487 = vst [vmem:[#allocation8_spill] sm:$0xff] %v7021_v63  ;;  %v3200_v35 = vadd.f32 %v4257_v28, %v6979_v15  ;;  %v4322_v61 = vpop.f32.mrf.mxu1 }
 0x281   : > { %v4259_v58 = vpop.f32.mrf.mxu0 }
 0x282   : > { %v7024_v36 = vadd.f32 %v4321_v19, %v3200_v35  ;;  %v4260_v14 = vadd.f32 %v4259_v58, %v4258_v21  ;;  %v4323_v57 = vpop.f32.mrf.mxu1 }
 0x283   : > { %v4324_v56 = vadd.f32 %v4323_v57, %v4322_v61  ;;  %v4341_v29 = vpop.f32.mrf.mxu0 }
 0x284   : > { %7488 = vst [vmem:[#allocation9_spill] sm:$0xff] %v7024_v36  ;;  %v3203_v38 = vadd.f32 %v4260_v14, %v6979_v15  ;;  %v4405_v49 = vpop.f32.mrf.mxu1 }
 0x285   : > { %v4342_v1 = vpop.f32.mrf.mxu0 }
 0x286   : > { %v7027_v0 = vadd.f32 %v4324_v56, %v3203_v38  ;;  %v4406_v17 = vpop.f32.mrf.mxu1  ;;  %v4343_v56 = vadd.f32 %v4342_v1, %v4341_v29 }
 0x287   : > { %v4344_v12 = vpop.f32.mrf.mxu0  ;;  %v4407_v47 = vadd.f32 %v4406_v17, %v4405_v49 }
 0x288   : > { %7489 = vst [vmem:[#allocation10_spill] sm:$0xff] %v7027_v0  ;;  %v4408_v11 = vpop.f32.mrf.mxu1 }
 0x289   : > { %v4345_v16 = vpop.f32.mrf.mxu0 }
 0x28a   : > { %v4409_v13 = vpop.f32.mrf.mxu1  ;;  %v4346_v0 = vadd.f32 %v4345_v16, %v4344_v12 }
 0x28b   : > { %v4347_v39 = vpop.f32.mrf.mxu0  ;;  %v4410_v45 = vadd.f32 %v4409_v13, %v4408_v11 }
 0x28c   : > { %v4411_v60 = vpop.f32.mrf.mxu1 }
 0x28d   : > { %v4348_v27 = vpop.f32.mrf.mxu0 }
 0x28e   : > { %v4412_v54 = vpop.f32.mrf.mxu1  ;;  %v4349_v36 = vadd.f32 %v4348_v27, %v4347_v39 }
 0x28f   : > { %v4350_v43 = vpop.f32.mrf.mxu0  ;;  %v4413_v12 = vadd.f32 %v4412_v54, %v4411_v60 }
 0x290   : > { %v4414_v52 = vpop.f32.mrf.mxu1 }
 0x291   : > { %v4351_v24 = vpop.f32.mrf.mxu0 }
 0x292   : > { %v4415_v18 = vpop.f32.mrf.mxu1  ;;  %v4352_v20 = vadd.f32 %v4351_v24, %v4350_v43 }
 0x293   : > { %v4353_v44 = vpop.f32.mrf.mxu0 }
 0x294   : > { %v7029_v50 = vpop.f32.mrf.mxu1  ;;  %v3349_v16 = vadd.f32 %v4352_v20, %v6991_v62 }
 0x295   : > { %v4354_v15 = vpop.f32.mrf.mxu0 }
 0x296   : > { %v7031_v23 = vpop.f32.mrf.mxu1 }
 0x297   : > { %v4356_v6 = vpop.f32.mrf.mxu0 }
 0x298   : > { %v7033_v5 = vpop.f32.mrf.mxu1 }
 0x299   : > { %v4357_v9 = vpop.f32.mrf.mxu0 }
 0x29a   : > { %v7035_v48 = vpop.f32.mrf.mxu1  ;;  %v4358_v29 = vadd.f32 %v4357_v9, %v4356_v6  ;;  %v7498_v9 = vld [vmem:[#allocation4_spill] sm:$0xff] }
 0x29b   : > { %v4359_v51 = vpop.f32.mrf.mxu0 }
 0x29c   : > { %v7037_v41 = vpop.f32.mrf.mxu1  ;;  %v3357_v49 = vadd.f32 %v4358_v29, %v6997_v2  ;;  %v7510_v29 = vld [vmem:[#allocation9_spill] sm:$0xff] }
 0x29d   : > { %v4360_v22 = vpop.f32.mrf.mxu0 }
 0x29e   : > { %v7039_v31 = vpop.f32.mrf.mxu1  ;;  %v4361_v39 = vadd.f32 %v4360_v22, %v4359_v51  ;;  %v7499_v22 = vld [vmem:[#allocation5_spill] sm:$0xff] }
 0x29f   : > { %v4362_v37 = vpop.f32.mrf.mxu0  ;;  %v4425_v2 = vadd.f32 %v7039_v31, %v7037_v41 }
 0x2a0   : > { %v7041_v8 = vpop.f32.mrf.mxu1  ;;  %v3362_v62 = vadd.f32 %v4361_v39, %v7000_v30 }
 0x2a1   : > { %v4363_v34 = vpop.f32.mrf.mxu0 }
 0x2a2   : > { %v4427_v32 = vpop.f32.mrf.mxu1  ;;  %v4364_v27 = vadd.f32 %v4363_v34, %v4362_v37 }
 0x2a3   : > { %v4365_v59 = vpop.f32.mrf.mxu0 }
 0x2a4   : > { %v7043_v4 = vpop.f32.mrf.mxu1  ;;  %v3365_v20 = vadd.f32 %v4364_v27, %v7003_v46 }
 0x2a5   : > { %7490 = vst [vmem:[#allocation11_spill] sm:$0xff] %v7043_v4  ;;  %v4366_v10 = vpop.f32.mrf.mxu0  ;;  %v3346_v4 = vadd.f32 %v4349_v36, %v6988_v25 }
 0x2a6   : > { %v7045_v40 = vpop.f32.mrf.mxu1 }
 0x2a7   : > { %7491 = vst [vmem:[#allocation12_spill] sm:$0xff] %v7045_v40  ;;  %v4368_v53 = vpop.f32.mrf.mxu0 }
 0x2a8   : > { %v7047_v28 = vpop.f32.mrf.mxu1 }
 0x2a9   : > { %7492 = vst [vmem:[#allocation13_spill] sm:$0xff] %v7047_v28  ;;  %v4369_v26 = vpop.f32.mrf.mxu0 }
 0x2aa   : > { %v7049_v19 = vpop.f32.mrf.mxu1  ;;  %v4370_v17 = vadd.f32 %v4369_v26, %v4368_v53 }
 0x2ab   : > { %7493 = vst [vmem:[#allocation14_spill] sm:$0xff] %v7049_v19  ;;  %v4371_v21 = vpop.f32.mrf.mxu0  ;;  %v3338_v19 = vadd.f32 %v4343_v56, %v6982_v42  ;;  %v4416_v42 = vadd.f32 %v4415_v18, %v4414_v52  ;;  %v4367_v56 = vadd.f32 %v4366_v10, %v4365_v59  ;;  %v4419_v52 = vadd.f32 %v7031_v23, %v7029_v50  ;;  %v7502_v59 = vld [vmem:[#allocation6_spill] sm:$0xff] }
 0x2ac   : > { %v7051_v35 = vpop.f32.mrf.mxu1  ;;  %v3373_v51 = vadd.f32 %v4370_v17, %v7498_v9 }
 0x2ad   : > { %7494 = vst [vmem:[#allocation15_spill] sm:$0xff] %v7051_v35  ;;  %v4372_v61 = vpop.f32.mrf.mxu0  ;;  %v3341_v35 = vadd.f32 %v4346_v0, %v6985_v55  ;;  %v3443_v0 = vadd.f32 %v4413_v12, %v3346_v4  ;;  %v3446_v54 = vadd.f32 %v4416_v42, %v3349_v16  ;;  %v3370_v30 = vadd.f32 %v4367_v56, %v7006_v33 }
 0x2ae   : > { %v7053_v58 = vpop.f32.mrf.mxu1  ;;  %v4373_v11 = vadd.f32 %v4372_v61, %v4371_v21 }
 0x2af   : > { %7495 = vst [vmem:[#allocation16_spill] sm:$0xff] %v7053_v58  ;;  %v4374_v14 = vpop.f32.mrf.mxu0  ;;  %v7065_v25 = vadd.f32 %v4410_v45, %v3341_v35  ;;  %v4422_v45 = vadd.f32 %v7035_v48, %v7033_v5  ;;  %v7501_v48 = vld [vmem:[#allocation12_spill] sm:$0xff] }
 0x2b0   : > { %v7055_v57 = vpop.f32.mrf.mxu1  ;;  %v3378_v37 = vadd.f32 %v4373_v11, %v7499_v22  ;;  %v7508_v35 = vld [vmem:[#allocation8_spill] sm:$0xff]  ;;  %v7512_v11 = vld [vmem:[#allocation10_spill] sm:$0xff] }
 0x2b1   : > { %7496 = vst [vmem:[#allocation17_spill] sm:$0xff] %v7055_v57  ;;  %v4375_v38 = vpop.f32.mrf.mxu0  ;;  %v4355_v57 = vadd.f32 %v4354_v15, %v4353_v44  ;;  %v4428_v15 = vadd.f32 %v4427_v32, %v7041_v8  ;;  %v7083_v5 = vadd.f32 %v4422_v45, %v3357_v49  ;;  %v7088_v8 = vadd.f32 %v4425_v2, %v3362_v62  ;;  %v7503_v32 = vld [vmem:[#allocation13_spill] sm:$0xff] }
 0x2b2   : > { %v4439_v63 = vpop.f32.mrf.mxu1  ;;  %v4376_v60 = vadd.f32 %v4375_v38, %v4374_v14  ;;  %v7504_v4 = vld [vmem:[#allocation14_spill] sm:$0xff] }
 0x2b3   : > { %v4377_v7 = vpop.f32.mrf.mxu0  ;;  %v3354_v36 = vadd.f32 %v4355_v57, %v6994_v3  ;;  %v7090_v33 = vadd.f32 %v4428_v15, %v3365_v20  ;;  %v4434_v10 = vadd.f32 %v7504_v4, %v7503_v32 }
 0x2b4   : > { %v7057_v28 = vpop.f32.mrf.mxu1  ;;  %v3381_v41 = vadd.f32 %v4376_v60, %v7502_v59 }
 0x2b5   : > { %7497 = vst [vmem:[#allocation18_spill] sm:$0xff] %v7057_v28  ;;  %v4378_v40 = vpop.f32.mrf.mxu0  ;;  %v7063_v28 = vadd.f32 %v4407_v47, %v3338_v19  ;;  %v7081_v23 = vadd.f32 %v4419_v52, %v3354_v36  ;;  %v7507_v19 = vld [vmem:[#allocation7_spill] sm:$0xff]  ;;  %v3470_v49 = vadd.f32 %v4434_v10, %v3373_v51 }
 0x2b6   : > { %v4442_v58 = vpop.f32.mrf.mxu1  ;;  %v4379_v18 = vadd.f32 %v4378_v40, %v4377_v7  ;;  %v7500_v7 = vld [vmem:[#allocation11_spill] sm:$0xff]  ;;  %v7506_v53 = vld [vmem:[#allocation16_spill] sm:$0xff] }
 0x2b7   : > { %v4380_v1 = vpop.f32.mrf.mxu0  ;;  %v4431_v34 = vadd.f32 %v7501_v48, %v7500_v7  ;;  %v7505_v40 = vld [vmem:[#allocation15_spill] sm:$0xff] }
 0x2b8   : > { %v4444_v43 = vpop.f32.mrf.mxu1  ;;  %v4437_v26 = vadd.f32 %v7506_v53, %v7505_v40  ;;  %v3386_v21 = vadd.f32 %v4379_v18, %v7507_v19  ;;  %v7509_v57 = vld [vmem:[#allocation17_spill] sm:$0xff] }
 0x2b9   : > { %v4381_v24 = vpop.f32.mrf.mxu0  ;;  %v4440_v38 = vadd.f32 %v4439_v63, %v7509_v57  ;;  %v3467_v39 = vadd.f32 %v4431_v34, %v3370_v30 }
 0x2ba   : > { %v4445_v55 = vpop.f32.mrf.mxu1  ;;  %v4382_v3 = vadd.f32 %v4381_v24, %v4380_v1  ;;  %v3475_v36 = vadd.f32 %v4437_v26, %v3378_v37 }
 0x2bb   : > { %v4383_v13 = vpop.f32.mrf.mxu0  ;;  %v4446_v42 = vadd.f32 %v4445_v55, %v4444_v43  ;;  %v3478_v60 = vadd.f32 %v4440_v38, %v3381_v41 }
 0x2bc   : > { %v4447_v47 = vpop.f32.mrf.mxu1  ;;  %v3389_v61 = vadd.f32 %v4382_v3, %v7508_v35  ;;  %v7511_v27 = vld [vmem:[#allocation18_spill] sm:$0xff] }
 0x2bd   : > { %v4384_v44 = vpop.f32.mrf.mxu0  ;;  %v4443_v24 = vadd.f32 %v4442_v58, %v7511_v27 }
 0x2be   : > { %v4385_v46 = vadd.f32 %v4384_v44, %v4383_v13  ;;  %v4448_v6 = vpop.f32.mrf.mxu1  ;;  %v7103_v3 = vadd.f32 %v4446_v42, %v3389_v61 }
 0x2bf   : > { %v4386_v50 = vpop.f32.mrf.mxu0  ;;  %v4449_v17 = vadd.f32 %v4448_v6, %v4447_v47  ;;  %v3483_v18 = vadd.f32 %v4443_v24, %v3386_v21 }
 0x2c0   : > { %v4450_v31 = vpop.f32.mrf.mxu1  ;;  %v3394_v1 = vadd.f32 %v4385_v46, %v7510_v29 }
 0x2c1   : > { %v4387_v14 = vpop.f32.mrf.mxu0 }
 0x2c2   : > { %v4388_v12 = vadd.f32 %v4387_v14, %v4386_v50  ;;  %v4451_v16 = vpop.f32.mrf.mxu1  ;;  %v3491_v47 = vadd.f32 %v4449_v17, %v3394_v1 }
 0x2c3   : > { %v4496_v56 = vpop.f32.mrf.mxu0  ;;  %v4452_v63 = vadd.f32 %v4451_v16, %v4450_v31 }
 0x2c4   : > { %v3397_v13 = vadd.f32 %v4388_v12, %v7512_v11  ;;  %v3540_v62 = vadd.f32 %v4496_v56, %v3443_v0  ;;  %v4504_v20 = vpop.f32.mrf.mxu1 }
 0x2c5   : > { %v3572_v52 = vadd.f32 %v4504_v20, %v3475_v36  ;;  %v3531_v45 = vpop.f32.mrf.mxu0 }
 0x2c6   : > { %vm3596_vm15 = vcmp.ge.f32.partialorder %v3540_v62, 0.0  ;;  %v3612_v58 = vmul.f32 0.01, %v3540_v62  ;;  %v3532_v43 = vadd.f32 %v3531_v45, %v7063_v28  ;;  %v3563_v55 = vpop.f32.mrf.mxu1  ;;  %v3494_v15 = vadd.f32 %v4452_v63, %v3397_v13 }
 0x2c7   : > { %vm3604_vm0 = vcmp.ge.f32.partialorder %v3572_v52, 0.0  ;;  %v3620_v0 = vmul.f32 0.01, %v3572_v52  ;;  %v3564_v44 = vadd.f32 %v3563_v55, %v3467_v39  ;;  %v4497_v2 = vpop.f32.mrf.mxu0 }
 0x2c8   : > { %v7109_v30 = vsel %vm3596_vm15, %v3540_v62, %v3612_v58  ;;  %vm3594_vm1 = vcmp.ge.f32.partialorder %v3532_v43, 0.0  ;;  %v3610_v46 = vmul.f32 0.01, %v3532_v43  ;;  %v3543_v6 = vadd.f32 %v4497_v2, %v3446_v54  ;;  %v4505_v9 = vpop.f32.mrf.mxu1 }
 0x2c9   : > { %3646 = vst [vmem:[%s7106_s17 + $0x10] sm:$0xff] %v7109_v30  ;;  %v7113_v51 = vsel %vm3604_vm0, %v3572_v52, %v3620_v0  ;;  %vm3602_vm2 = vcmp.ge.f32.partialorder %v3564_v44, 0.0  ;;  %v3618_v28 = vmul.f32 0.01, %v3564_v44  ;;  %v3575_v22 = vadd.f32 %v4505_v9, %v3478_v60  ;;  %v3534_v37 = vpop.f32.mrf.mxu0 }
 0x2ca   : > { %3654 = vst [vmem:[%s7106_s17 + $0x50] sm:$0xff] %v7113_v51  ;;  %v7117_v50 = vsel %vm3594_vm1, %v3532_v43, %v3610_v46  ;;  %vm3597_vm3 = vcmp.ge.f32.partialorder %v3543_v6, 0.0  ;;  %v3613_v7 = vmul.f32 0.01, %v3543_v6  ;;  %v3535_v48 = vadd.f32 %v3534_v37, %v7065_v25  ;;  %v3566_v54 = vpop.f32.mrf.mxu1 }
 0x2cb   : > { %3644 = vst [vmem:[%s7106_s17] sm:$0xff] %v7117_v50  ;;  %v7122_v34 = vsel %vm3602_vm2, %v3564_v44, %v3618_v28  ;;  %vm3605_vm4 = vcmp.ge.f32.partialorder %v3575_v22, 0.0  ;;  %v3621_v59 = vmul.f32 0.01, %v3575_v22  ;;  %v3567_v41 = vadd.f32 %v3566_v54, %v3470_v49  ;;  %v4500_v31 = vpop.f32.mrf.mxu0 }
 0x2cc   : > { %3652 = vst [vmem:[%s7106_s17 + $0x40] sm:$0xff] %v7122_v34  ;;  %v7126_v32 = vsel %vm3597_vm3, %v3543_v6, %v3613_v7  ;;  %vm3595_vm5 = vcmp.ge.f32.partialorder %v3535_v48, 0.0  ;;  %v3611_v4 = vmul.f32 0.01, %v3535_v48  ;;  %v3556_v10 = vadd.f32 %v4500_v31, %v7088_v8  ;;  %v4508_v25 = vpop.f32.mrf.mxu1 }
 0x2cd   : > { %3647 = vst [vmem:[%s7106_s17 + $0x18] sm:$0xff] %v7126_v32  ;;  %v7131_v40 = vsel %vm3605_vm4, %v3575_v22, %v3621_v59  ;;  %vm3603_vm6 = vcmp.ge.f32.partialorder %v3567_v41, 0.0  ;;  %v3619_v53 = vmul.f32 0.01, %v3567_v41  ;;  %v3588_v26 = vadd.f32 %v4508_v25, %v3491_v47  ;;  %v3547_v19 = vpop.f32.mrf.mxu0 }
 0x2ce   : > { %3655 = vst [vmem:[%s7106_s17 + $0x58] sm:$0xff] %v7131_v40  ;;  %v3627_v21 = vsel %vm3595_vm5, %v3535_v48, %v3611_v4  ;;  %vm3600_vm7 = vcmp.ge.f32.partialorder %v3556_v10, 0.0  ;;  %v3616_v35 = vmul.f32 0.01, %v3556_v10  ;;  %v3548_v61 = vadd.f32 %v3547_v19, %v7081_v23  ;;  %v3579_v14 = vpop.f32.mrf.mxu1 }
 0x2cf   : > { %3645 = vst [vmem:[%s7106_s17 + $0x8] sm:$0xff] %v3627_v21  ;;  %v3635_v8 = vsel %vm3603_vm6, %v3567_v41, %v3619_v53  ;;  %vm3608_vm8 = vcmp.ge.f32.partialorder %v3588_v26, 0.0  ;;  %v3624_v57 = vmul.f32 0.01, %v3588_v26  ;;  %v3580_v38 = vadd.f32 %v3579_v14, %v3483_v18  ;;  %v4501_v29 = vpop.f32.mrf.mxu0 }
 0x2d0   : > { %3653 = vst [vmem:[%s7106_s17 + $0x48] sm:$0xff] %v3635_v8  ;;  %v3632_v1 = vsel %vm3600_vm7, %v3556_v10, %v3616_v35  ;;  %vm3598_vm9 = vcmp.ge.f32.partialorder %v3548_v61, 0.0  ;;  %v3614_v12 = vmul.f32 0.01, %v3548_v61  ;;  %v3559_v16 = vadd.f32 %v4501_v29, %v7090_v33  ;;  %v4509_v39 = vpop.f32.mrf.mxu1 }
 0x2d1   : > { %3650 = vst [vmem:[%s7106_s17 + $0x30] sm:$0xff] %v3632_v1  ;;  %v3640_v27 = vsel %vm3608_vm8, %v3588_v26, %v3624_v57  ;;  %vm3606_vm10 = vcmp.ge.f32.partialorder %v3580_v38, 0.0  ;;  %v3622_v23 = vmul.f32 0.01, %v3580_v38  ;;  %v3591_v24 = vadd.f32 %v4509_v39, %v3494_v15  ;;  %v3550_v42 = vpop.f32.mrf.mxu0 }
 0x2d2   : > { %3658 = vst [vmem:[%s7106_s17 + $0x70] sm:$0xff] %v3640_v27  ;;  %v3630_v56 = vsel %vm3598_vm9, %v3548_v61, %v3614_v12  ;;  %vm3601_vm11 = vcmp.ge.f32.partialorder %v3559_v16, 0.0  ;;  %v3617_v36 = vmul.f32 0.01, %v3559_v16  ;;  %v3551_v49 = vadd.f32 %v3550_v42, %v7083_v5  ;;  %v3582_v17 = vpop.f32.mrf.mxu1 }
 0x2d3   : > { %3648 = vst [vmem:[%s7106_s17 + $0x20] sm:$0xff] %v3630_v56  ;;  %v3638_v33 = vsel %vm3606_vm10, %v3580_v38, %v3622_v23  ;;  %vm3609_vm12 = vcmp.ge.f32.partialorder %v3591_v24, 0.0  ;;  %v3625_v11 = vmul.f32 0.01, %v3591_v24  ;;  %v3583_v13 = vadd.f32 %v3582_v17, %v7103_v3 }
 0x2d4   : > { %3656 = vst [vmem:[%s7106_s17 + $0x60] sm:$0xff] %v3638_v33  ;;  %v3633_v62 = vsel %vm3601_vm11, %v3559_v16, %v3617_v36  ;;  %vm3599_vm13 = vcmp.ge.f32.partialorder %v3551_v49, 0.0  ;;  %v3615_v20 = vmul.f32 0.01, %v3551_v49  ;;  %3662 = sbr.rel (%p3997_p7) target bundleno = 731 (0x2db), region = 60 }
 0x2d5   : > { %3651 = vst [vmem:[%s7106_s17 + $0x38] sm:$0xff] %v3633_v62  ;;  %v3641_v60 = vsel %vm3609_vm12, %v3591_v24, %v3625_v11  ;;  %vm3607_vm14 = vcmp.ge.f32.partialorder %v3583_v13, 0.0  ;;  %v3623_v63 = vmul.f32 0.01, %v3583_v13 }
 0x2d6   : > { %3659 = vst [vmem:[%s7106_s17 + $0x78] sm:$0xff] %v3641_v60  ;;  %v3631_v52 = vsel %vm3599_vm13, %v3551_v49, %v3615_v20 }
 0x2d7   : > { %3649 = vst [vmem:[%s7106_s17 + $0x28] sm:$0xff] %v3631_v52  ;;  %v3639_v5 = vsel %vm3607_vm14, %v3583_v13, %v3623_v63 }
 0x2d8   : > { %3657 = vst [vmem:[%s7106_s17 + $0x68] sm:$0xff] %v3639_v5 }
 0x2d9   : > { %v4821_v45 = vmov 0.0  }
 0x2da   : > { %3663 = vst [vmem:[#allocation3] sm:$0x1] %v4821_v45 }
 0x2db PF: > { %v3665_v18 = vadd.f32 %v3627_v21, %v7117_v50 }
 0x2dd   : > { %v3666_v3 = vadd.f32 %v3665_v18, %v7109_v30 }
 0x2df   : > { %v3667_v58 = vadd.f32 %v3666_v3, %v7126_v32 }
 0x2e1   : > { %v3668_v43 = vadd.f32 %v3667_v58, %v3630_v56  ;;  %v3664_v54 = vld [vmem:[#allocation3] sm:$0x1] }
 0x2e3   : > { %v3669_v55 = vadd.f32 %v3668_v43, %v3631_v52 }
 0x2e5   : > { %v3670_v47 = vadd.f32 %v3669_v55, %v3632_v1 }
 0x2e7   : > { %v3671_v0 = vadd.f32 %v3670_v47, %v3633_v62 }
 0x2e9   : > { %v3672_v44 = vadd.f32 %v3671_v0, %v7122_v34 }
 0x2eb   : > { %v3673_v2 = vadd.f32 %v3672_v44, %v3635_v8 }
 0x2ed   : > { %v3674_v15 = vadd.f32 %v3673_v2, %v7113_v51 }
 0x2ef   : > { %v3675_v46 = vadd.f32 %v3674_v15, %v7131_v40 }
 0x2f1   : > { %v3676_v6 = vadd.f32 %v3675_v46, %v3638_v33 }
 0x2f3   : > { %v3677_v9 = vadd.f32 %v3676_v6, %v3639_v5 }
 0x2f5   : > { %v3678_v28 = vadd.f32 %v3677_v9, %v3640_v27 }
 0x2f7   : > { %v3679_v22 = vadd.f32 %v3678_v28, %v3641_v60 }
 0x2f9   : > { %v3680_v37 = vrot.slane %v3679_v22, 4 }
 0x2fb   : > { %v3681_v50 = vadd.f32 %v3680_v37, %v3679_v22 }
 0x2fd   : > { %v3682_v30 = vrot.slane %v3681_v50, 2 }
 0x2ff   : > { %v3683_v7 = vadd.f32 %v3682_v30, %v3681_v50 }
 0x301   : > { %v3684_v48 = vrot.slane %v3683_v7, 1 }
 0x303   : > { %v3685_v59 = vadd.f32 %v3684_v48, %v3683_v7  ;;  %3690 = sbr.rel (%p4017_p9) target bundleno = 1057 (0x421), region = 64 }
 0x305   : > { %v3686_v41 = vadd.f32 %v3685_v59, %v3664_v54 }
 0x307   : > { %3687 = vst [vmem:[#allocation3] sm:$0x1] %v3686_v41 }
 0x308   : > { %v4767_v51 = vld [vmem:[%s7302_s3 + $0x38] sm:$0xff]   ;;  %v4822_v34 = vmov 0.0   ;;  %v4768_v31 = vld [vmem:[%s7302_s3 + $0x30] sm:$0xff]   ;;  %vm4823_vm15 = vmmov 0   ;;  %v4769_v32 = vld [vmem:[%s7302_s3 + $0x28] sm:$0xff]   ;;  %v3837_v16 = vlaneseq }
 0x309   : > { %4510 = vmatprep.subr.bf16.mxu0 %v4822_v34  ;;  %4526 = vmatprep.mubr.msk.bf16.mxu0 %vm4823_vm15, %v4822_v34  ;;  %v4770_v4 = vld [vmem:[%s7302_s3 + $0x20] sm:$0xff]   ;;  %v4771_v10 = vld [vmem:[%s7302_s3 + $0x18] sm:$0xff]   ;;  %v4772_v25 = vld [vmem:[%s7302_s3 + $0x10] sm:$0xff]  }
 0x30a   : > { %4511 = vmatpush3.bf16.msra.mxu0 %v4767_v51  ;;  %v4773_v40 = vld [vmem:[%s7302_s3 + $0x8] sm:$0xff]   ;;  %v4774_v19 = vld [vmem:[%s7302_s3] sm:$0xff]   ;;  %v3838_v39 = vshrl.u32 %v3837_v16, 7  ;;  %v3807_v42 = vld [vmem:[%s4895_s8 + $0x10] sm:$0xff] }
 0x30b   : > { %4512 = vmatprep.subr.bf16.mxu0 %v4822_v34  ;;  %v3710_v35 = vld [vmem:[%s7303_s4] sm:$0x1]  ;;  %v3806_v24 = vld [vmem:[%s4895_s8 + $0x8] sm:$0xff]  ;;  %v3808_v56 = vld [vmem:[%s4895_s8 + $0x18] sm:$0xff] }
 0x30c   : > { %v3839_v27 = vsub.s32 0, %v3838_v39  ;;  %v3805_v23 = vld [vmem:[%s4895_s8] sm:$0xff]  ;;  %v3810_v49 = vld [vmem:[%s4895_s8 + $0x28] sm:$0xff]  ;;  %v3811_v17 = vld [vmem:[%s4895_s8 + $0x30] sm:$0xff] }
 0x30d   : > { %v3809_v36 = vld [vmem:[%s4895_s8 + $0x20] sm:$0xff]  ;;  %v3812_v33 = vld [vmem:[%s4895_s8 + $0x38] sm:$0xff]  ;;  %v3814_v62 = vld [vmem:[%s4895_s8 + $0x48] sm:$0xff] }
 0x30e   : > { %4513 = vmatpush3.bf16.msra.mxu0 %v4768_v31  ;;  %v3691_v53 = vld [vmem:[#allocation3] sm:$0x1]  ;;  %v3815_v20 = vld [vmem:[%s4895_s8 + $0x50] sm:$0xff]  ;;  %v3816_v60 = vld [vmem:[%s4895_s8 + $0x58] sm:$0xff] }
 0x30f   : > { %4514 = vmatprep.subr.bf16.mxu0 %v4822_v34  ;;  %v3692_v26 = vmul.f32 0.00390625, %v3691_v53  ;;  %v3813_v13 = vld [vmem:[%s4895_s8 + $0x40] sm:$0xff]  ;;  %v3818_v52 = vld [vmem:[%s4895_s8 + $0x68] sm:$0xff]  ;;  %v3819_v45 = vld [vmem:[%s4895_s8 + $0x70] sm:$0xff] }
 0x310   : > { %v3817_v63 = vld [vmem:[%s4895_s8 + $0x60] sm:$0xff]  ;;  %v3820_v18 = vld [vmem:[%s4895_s8 + $0x78] sm:$0xff]  ;;  %v3822_v58 = vld [vmem:[%s4895_s8 + $0x88] sm:$0xff] }
 0x311   : > { %v3693_v21 = vpack.c.bf16 %v3692_v26, %v3692_v26  ;;  %v3821_v3 = vld [vmem:[%s4895_s8 + $0x80] sm:$0xff]  ;;  %v3823_v43 = vld [vmem:[%s4895_s8 + $0x90] sm:$0xff]  ;;  %v3824_v55 = vld [vmem:[%s4895_s8 + $0x98] sm:$0xff] }
 0x312   : > { %4515 = vmatpush3.bf16.msra.mxu0 %v4769_v32  ;;  %v3825_v15 = vld [vmem:[%s4895_s8 + $0xa0] sm:$0xff]  ;;  %v3826_v46 = vld [vmem:[%s4895_s8 + $0xa8] sm:$0xff]  ;;  %v3827_v6 = vld [vmem:[%s4895_s8 + $0xb0] sm:$0xff] }
 0x313   : > { %4516 = vmatprep.subr.bf16.mxu0 %v4822_v34  ;;  %v3828_v50 = vld [vmem:[%s4895_s8 + $0xb8] sm:$0xff]  ;;  %v3829_v30 = vld [vmem:[%s4895_s8 + $0xc0] sm:$0xff]  ;;  %v3830_v7 = vld [vmem:[%s4895_s8 + $0xc8] sm:$0xff] }
 0x314   : > { %v3831_v51 = vld [vmem:[%s4895_s8 + $0xd0] sm:$0xff]  ;;  %v3833_v31 = vld [vmem:[%s4895_s8 + $0xe0] sm:$0xff]  ;;  %v3836_v26 = vld [vmem:[%s4895_s8 + $0xf8] sm:$0xff] }
 0x315   : > { %v3835_v53 = vld [vmem:[%s4895_s8 + $0xf0] sm:$0xff] }
 0x316   : > { %4517 = vmatpush3.bf16.msra.mxu0 %v4770_v4 }
 0x317   : > { %4518 = vmatprep.subr.bf16.mxu0 %v4822_v34 }
 0x31a   : > { %4519 = vmatpush3.bf16.msra.mxu0 %v4771_v10 }
 0x31b   : > { %4520 = vmatprep.subr.bf16.mxu0 %v4822_v34 }
 0x31e   : > { %4521 = vmatpush3.bf16.msra.mxu0 %v4772_v25 }
 0x31f   : > { %4522 = vmatprep.subr.bf16.mxu0 %v4822_v34 }
 0x322   : > { %4523 = vmatpush3.bf16.msra.mxu0 %v4773_v40  ;;  %v3834_v40 = vld [vmem:[%s4895_s8 + $0xe8] sm:$0xff] }
 0x323   : > { %4524 = vmatprep.subr.bf16.mxu0 %v4822_v34  ;;  %v3832_v34 = vld [vmem:[%s4895_s8 + $0xd8] sm:$0xff] }
 0x326   : > { %4525 = vmatpush3.bf16.msra.mxu0 %v4774_v19 }
 0x329   : > { %4527 = vmatmul.mubr.bf16.vlgmr.msra.gmra.mxu0 %v3693_v21 }
 0x3e9   : > { %v3793_v61 = vpop.f32.mrf.mxu0 }
 0x3ea   : > { %v3794_v14 = vadd.f32 %v3793_v61, %v3710_v35 }
 0x3eb   : > { %v4528_v8 = vpop.f32.mrf.mxu0 }
 0x3ec   : > { %v4188_v57 = vmul.f32 -1.442695, %v3794_v14 }
 0x3ed   : > { %v3796_v38 = vpop.f32.mrf.mxu0 }
 0x3ee   : > { %4775 = vpow2.f32 %v4188_v57 }
 0x3ef   : > { %v4529_v29 = vpop.f32.mrf.mxu0 }
 0x3fb   : > { %v4776_v1 = vpop.eup %4775 }
 0x3fc   : > { %v3802_v12 = vadd.f32 1.0, %v4776_v1 }
 0x3fe   : > { %4777 = vrcp.f32 %v3802_v12 }
 0x40b   : > { %v4778_v11 = vpop.eup %4777 }
 0x40c   : > { %v7200_v5 = vrot.slane %v4778_v11, %v3839_v27 }
 0x40e   : > { %v3841_v47 = vmul.f32 %v7200_v5, %v3805_v23  ;;  %v3842_v0 = vmul.f32 %v7200_v5, %v3806_v24  ;;  %v3843_v44 = vmul.f32 %v7200_v5, %v3807_v42  ;;  %v3844_v2 = vmul.f32 %v7200_v5, %v3808_v56 }
 0x40f   : > { %v3845_v9 = vmul.f32 %v7200_v5, %v3809_v36  ;;  %v3846_v28 = vmul.f32 %v7200_v5, %v3810_v49  ;;  %v3847_v22 = vmul.f32 %v7200_v5, %v3811_v17  ;;  %v3848_v37 = vmul.f32 %v7200_v5, %v3812_v33 }
 0x410   : > { %v3849_v48 = vmul.f32 %v7200_v5, %v3813_v13  ;;  %v3850_v54 = vmul.f32 %v7200_v5, %v3814_v62  ;;  %v3851_v59 = vmul.f32 %v7200_v5, %v3815_v20  ;;  %v3852_v41 = vmul.f32 %v7200_v5, %v3816_v60  ;;  %3873 = vst [vmem:[%s4895_s8] sm:$0xff] %v3841_v47 }
 0x411   : > { %3874 = vst [vmem:[%s4895_s8 + $0x8] sm:$0xff] %v3842_v0  ;;  %3875 = vst [vmem:[%s4895_s8 + $0x10] sm:$0xff] %v3843_v44  ;;  %v3853_v32 = vmul.f32 %v7200_v5, %v3817_v63  ;;  %v3854_v4 = vmul.f32 %v7200_v5, %v3818_v52  ;;  %v3855_v10 = vmul.f32 %v7200_v5, %v3819_v45 }
 0x412   : > { %3876 = vst [vmem:[%s4895_s8 + $0x18] sm:$0xff] %v3844_v2  ;;  %v3856_v25 = vmul.f32 %v7200_v5, %v3820_v18  ;;  %3877 = vst [vmem:[%s4895_s8 + $0x20] sm:$0xff] %v3845_v9  ;;  %v3857_v19 = vmul.f32 %v7200_v5, %v3821_v3  ;;  %v3858_v21 = vmul.f32 %v7200_v5, %v3822_v58 }
 0x413   : > { %3878 = vst [vmem:[%s4895_s8 + $0x28] sm:$0xff] %v3846_v28  ;;  %3879 = vst [vmem:[%s4895_s8 + $0x30] sm:$0xff] %v3847_v22  ;;  %v3859_v35 = vmul.f32 %v7200_v5, %v3823_v43  ;;  %v3860_v61 = vmul.f32 %v7200_v5, %v3824_v55  ;;  %v3861_v14 = vmul.f32 %v7200_v5, %v3825_v15 }
 0x414   : > { %3880 = vst [vmem:[%s4895_s8 + $0x38] sm:$0xff] %v3848_v37  ;;  %3881 = vst [vmem:[%s4895_s8 + $0x40] sm:$0xff] %v3849_v48  ;;  %v3862_v8 = vmul.f32 %v7200_v5, %v3826_v46  ;;  %v3863_v57 = vmul.f32 %v7200_v5, %v3827_v6  ;;  %v3864_v38 = vmul.f32 %v7200_v5, %v3828_v50 }
 0x415   : > { %3882 = vst [vmem:[%s4895_s8 + $0x48] sm:$0xff] %v3850_v54  ;;  %3883 = vst [vmem:[%s4895_s8 + $0x50] sm:$0xff] %v3851_v59  ;;  %v3865_v29 = vmul.f32 %v7200_v5, %v3829_v30  ;;  %v3866_v1 = vmul.f32 %v7200_v5, %v3830_v7  ;;  %v3867_v12 = vmul.f32 %v7200_v5, %v3831_v51 }
 0x416   : > { %3884 = vst [vmem:[%s4895_s8 + $0x58] sm:$0xff] %v3852_v41  ;;  %3885 = vst [vmem:[%s4895_s8 + $0x60] sm:$0xff] %v3853_v32  ;;  %v3868_v16 = vmul.f32 %v7200_v5, %v3832_v34  ;;  %v3869_v39 = vmul.f32 %v7200_v5, %v3833_v31  ;;  %v3870_v27 = vmul.f32 %v7200_v5, %v3834_v40 }
 0x417   : > { %3886 = vst [vmem:[%s4895_s8 + $0x68] sm:$0xff] %v3854_v4  ;;  %3887 = vst [vmem:[%s4895_s8 + $0x70] sm:$0xff] %v3855_v10  ;;  %v3871_v23 = vmul.f32 %v7200_v5, %v3835_v53  ;;  %v3872_v24 = vmul.f32 %v7200_v5, %v3836_v26 }
 0x418   : > { %3888 = vst [vmem:[%s4895_s8 + $0x78] sm:$0xff] %v3856_v25  ;;  %3889 = vst [vmem:[%s4895_s8 + $0x80] sm:$0xff] %v3857_v19 }
 0x419   : > { %3890 = vst [vmem:[%s4895_s8 + $0x88] sm:$0xff] %v3858_v21  ;;  %3891 = vst [vmem:[%s4895_s8 + $0x90] sm:$0xff] %v3859_v35 }
 0x41a   : > { %3892 = vst [vmem:[%s4895_s8 + $0x98] sm:$0xff] %v3860_v61  ;;  %3893 = vst [vmem:[%s4895_s8 + $0xa0] sm:$0xff] %v3861_v14 }
 0x41b   : > { %3894 = vst [vmem:[%s4895_s8 + $0xa8] sm:$0xff] %v3862_v8  ;;  %3895 = vst [vmem:[%s4895_s8 + $0xb0] sm:$0xff] %v3863_v57 }
 0x41c   : > { %3896 = vst [vmem:[%s4895_s8 + $0xb8] sm:$0xff] %v3864_v38  ;;  %3897 = vst [vmem:[%s4895_s8 + $0xc0] sm:$0xff] %v3865_v29 }
 0x41d   : > { %3898 = vst [vmem:[%s4895_s8 + $0xc8] sm:$0xff] %v3866_v1  ;;  %3899 = vst [vmem:[%s4895_s8 + $0xd0] sm:$0xff] %v3867_v12 }
 0x41e   : > { %3900 = vst [vmem:[%s4895_s8 + $0xd8] sm:$0xff] %v3868_v16  ;;  %3901 = vst [vmem:[%s4895_s8 + $0xe0] sm:$0xff] %v3869_v39 }
 0x41f   : > { %3902 = vst [vmem:[%s4895_s8 + $0xe8] sm:$0xff] %v3870_v27  ;;  %3903 = vst [vmem:[%s4895_s8 + $0xf0] sm:$0xff] %v3871_v23 }
 0x420   : > { %3904 = vst [vmem:[%s4895_s8 + $0xf8] sm:$0xff] %v3872_v24 }
 0x421 PF: > { %s15_s22 = sadd.s32 1, %s4817_s22   ;;  %s7513_s18 = smov %s4809_s20 }
 0x422   : > { %p12_p10 = scmp.ge.s32.totalorder %s15_s22, 6   ;;  %s7514_s19 = smov %s4813_s21 }
 0x423   : > { %s7515_s20 = smov %s7518_s23  ;;  %s7516_s21 = smov %s7522_s24 }
 0x424   :  { %14 = sbr.rel (!%p12_p10) target bundleno = 3 (0x3), region = 101 }

</bundles_post_ra>
